<compile_context>
chip_gen: v7x
topology: tpu7x:2x2x1
jax: 0.10.0
libtpu: 0.0.40
codegen_flags: <defaults>
</compile_context>

<pallas_src>
import jax
import jax.numpy as jnp
from jax.experimental import pallas as pl
from jax.experimental.pallas import tpu as pltpu

PATCH = 7
PAD = PATCH // 2                 # 3
NUM_TAPS = PATCH * PATCH         # 49

# The 24 "positive" shifts; each (sy, sx) also covers (-sy, -sx) by reuse.
_POS_SHIFTS = tuple(
    (sy, sx)
    for sy in range(0, PAD + 1)
    for sx in range(-PAD, PAD + 1)
    if (sy > 0) or (sy == 0 and sx > 0)
)
assert len(_POS_SHIFTS) == (NUM_TAPS - 1) // 2  # 24


def _ternary_kernel(a0_ref, h0_ref, a1_ref, h1_ref, out_ref, w0_ref, w1_ref):
    # a*_ref: (1, TH, Wp) main row band of the zero-padded image
    # h*_ref: (1, 8, Wp)  halo band (the 8 rows directly below the main band)
    # out_ref: (1, 1, TH, W)
    # w*_ref: (TH+8, Wp) VMEM scratch holding the assembled padded window
    TH = a0_ref.shape[1]
    W = out_ref.shape[3]

    # Assemble the (TH+6)-row window: rows [0,TH) from the main band,
    # rows [TH, TH+6) from the halo band (all 8 rows copied, aligned stores).
    w0_ref[0:TH, :] = a0_ref[0]
    w0_ref[TH:TH + 8, :] = h0_ref[0]
    w1_ref[0:TH, :] = a1_ref[0]
    w1_ref[TH:TH + 8, :] = h1_ref[0]

    def soft_sign(x):
        # x / sqrt(0.81 + x^2)  (odd function -> enables the tap pairing)
        return x * jax.lax.rsqrt(0.81 + x * x)

    acc = jnp.zeros((TH, W), jnp.float32)

    # Unrolled loop over the 24 positive shifts (static slices only).
    for sy, sx in _POS_SHIFTS:
        # Union of the two output-pixel regions that reuse this shift's value
        # (window-local padded coordinates):
        #   +delta tap at p -> q = p          : rows [PAD, PAD+TH)
        #   -delta tap at p -> q = p - delta  : rows [PAD-sy, PAD+TH-sy)
        y0 = PAD - sy
        x0 = PAD - max(sx, 0)
        ny = TH + sy
        nx = W + abs(sx)

        c0 = w0_ref[y0:y0 + ny, x0:x0 + nx]                        # value at q
        s0 = w0_ref[y0 + sy:y0 + sy + ny, x0 + sx:x0 + sx + nx]    # at q+delta
        c1 = w1_ref[y0:y0 + ny, x0:x0 + nx]
        s1 = w1_ref[y0 + sy:y0 + sy + ny, x0 + sx:x0 + sx + nx]

        t0 = soft_sign(s0 - c0)
        t1 = soft_sign(s1 - c1)
        d = (t0 - t1) ** 2
        # Accumulate r = 1/(0.1+d) (approximate EUP reciprocal); the per-tap
        # value d/(0.1+d) = 1 - 0.1*r is folded into the final affine.
        r = pl.reciprocal(d + 0.1, approx=True)

        # tap +delta at output pixel p == value at q = p
        acc = acc + r[sy:sy + TH, max(sx, 0):max(sx, 0) + W]
        # tap -delta at output pixel p == value at q = p - delta
        acc = acc + r[0:TH, max(-sx, 0):max(-sx, 0) + W]

    # 48 non-center taps each contribute (1 - 0.1*r); center tap is exactly 0
    # but still counts in the mean over 49 channels.
    n_pairs = 2 * len(_POS_SHIFTS)                      # 48
    out_ref[0, 0, :, :] = (n_pairs / NUM_TAPS) - (0.1 / NUM_TAPS) * acc


def _round_up(x, m):
    return (x + m - 1) // m * m


def ternary(img0, img1, *, max_tile_rows=256,
            vmem_tile_budget=16 * 1024 * 1024):
    """img0, img1: (N, 1, H, W) -> (N, 1, H, W) float32."""
    assert img0.shape == img1.shape and img0.shape[1] == 1
    N, _, H, W = img0.shape
    Wp = W + 2 * PAD

    # --- choose the row-tile height TH (multiple of 8, VMEM-budgeted) -------
    # Rough live-VMEM estimate ~ 16 * TH rows of Wp f32 (2 imgs x 2 pipeline
    # buffers of input bands, 2 window scratches, compute temporaries, and the
    # double-buffered output block).
    bytes_per_row = Wp * 4
    budget_rows = max(8, vmem_tile_budget // (bytes_per_row * 16))
    th_budget = max(8, (budget_rows // 8) * 8)
    TH = max(8, min(_round_up(H, 8), _round_up(max_tile_rows, 8), th_budget))
    n_row_tiles = pl.cdiv(H, TH)

    # Padded layout: 3 zero rows/cols of conv padding on top/left/right, image
    # rows at [3, H+3), zeros below up to n_row_tiles*TH + 8 rows so every main
    # band and every 8-row halo band is fully in bounds.
    rows_padded = n_row_tiles * TH + 8

    def pad(img):
        return jnp.pad(img[:, 0].astype(jnp.float32),
                       ((0, 0), (PAD, rows_padded - H - PAD), (PAD, PAD)))

    p0 = pad(img0)
    p1 = pad(img1)

    main_spec = pl.BlockSpec((1, TH, Wp), lambda n, r: (n, r, 0))
    halo_spec = pl.BlockSpec((1, 8, Wp),
                             lambda n, r: (n, (r + 1) * (TH // 8), 0))

    return pl.pallas_call(
        _ternary_kernel,
        out_shape=jax.ShapeDtypeStruct((N, 1, H, W), jnp.float32),
        grid_spec=pltpu.PrefetchScalarGridSpec(
            num_scalar_prefetch=0,
            grid=(N, n_row_tiles),
            in_specs=[main_spec, halo_spec, main_spec, halo_spec],
            out_specs=pl.BlockSpec((1, 1, TH, W), lambda n, r: (n, 0, r, 0)),
            scratch_shapes=[pltpu.VMEM((TH + 8, Wp), jnp.float32),
                            pltpu.VMEM((TH + 8, Wp), jnp.float32)]),
        compiler_params=pltpu.CompilerParams(
            dimension_semantics=("parallel", "parallel"),
            vmem_limit_bytes=48 * 1024 * 1024),
    )(p0, p0, p1, p1)


def _ternary_reference(img0, img1):
    """Pure-JAX reference mirroring the PyTorch module exactly."""
    oc = PATCH * PATCH
    w = jnp.eye(oc, dtype=jnp.float32).reshape(PATCH, PATCH, 1, oc)
    w = jnp.transpose(w, (3, 2, 0, 1))          # (49,1,7,7) OIHW

    def transform(img):
        patches = jax.lax.conv_general_dilated(
            img.astype(jnp.float32), w, window_strides=(1, 1),
            padding=((PAD, PAD), (PAD, PAD)),
            dimension_numbers=("NCHW", "OIHW", "NCHW"))
        transf = patches - img
        return transf / jnp.sqrt(0.81 + transf ** 2)

    t1 = transform(img0)
    t2 = transform(img1)
    dist = (t1 - t2) ** 2
    return jnp.mean(dist / (0.1 + dist), axis=1, keepdims=True)


if __name__ == "__main__":
    key = jax.random.PRNGKey(0)
    k0, k1 = jax.random.split(key)

    # Smoke test (single row tile per batch element).
    N, C, H, W = 2, 1, 16, 16       # Ternary conv expects single-channel imgs
    img0 = jax.random.uniform(k0, (N, C, H, W), dtype=jnp.float32)
    img1 = jax.random.uniform(k1, (N, C, H, W), dtype=jnp.float32)
    out = jax.block_until_ready(ternary(img0, img1))
    ref = jax.block_until_ready(_ternary_reference(img0, img1))
    assert out.shape == (N, 1, H, W), out.shape
    # Tolerance relaxed vs 1e-5 because the kernel uses the approximate EUP
    # reciprocal for d/(0.1+d).
    assert jnp.allclose(out, ref, atol=5e-3, rtol=5e-3), (
        float(jnp.max(jnp.abs(out - ref))))

    # Multi-row-tile path: 3 tiles of 16 rows incl. a partial last tile.
    H2, W2 = 40, 20
    j0 = jax.random.uniform(k0, (N, C, H2, W2), dtype=jnp.float32)
    j1 = jax.random.uniform(k1, (N, C, H2, W2), dtype=jnp.float32)
    out2 = jax.block_until_ready(ternary(j0, j1, max_tile_rows=16))
    ref2 = jax.block_until_ready(_ternary_reference(j0, j1))
    assert out2.shape == (N, 1, H2, W2), out2.shape
    assert jnp.allclose(out2, ref2, atol=5e-3, rtol=5e-3), (
        float(jnp.max(jnp.abs(out2 - ref2))))

    print("KERNEL_OK")
</pallas_src>

<mosaic_0001>
module attributes {stable_mosaic.version = 11 : i64} {
  func.func @_ternary_kernel(%arg0: i32, %arg1: i32, %arg2: memref<1x16x22xf32, #tpu.memory_space<vmem>>, %arg3: memref<1x8x22xf32, #tpu.memory_space<vmem>>, %arg4: memref<1x16x22xf32, #tpu.memory_space<vmem>>, %arg5: memref<1x8x22xf32, #tpu.memory_space<vmem>>, %arg6: memref<1x1x16x16xf32, #tpu.memory_space<vmem>>, %arg7: memref<24x22xf32, #tpu.memory_space<vmem>>, %arg8: memref<24x22xf32, #tpu.memory_space<vmem>>) attributes {dimension_semantics = [#tpu.dimension_semantics<parallel>, #tpu.dimension_semantics<parallel>], iteration_bounds = array<i64: 2, 1>, scalar_prefetch = 0 : i64, scratch_operands = 2 : i64, tpu.core_type = #tpu.core_type<tc>, window_params = [{transform_indices = @transform_0, window_bounds = array<i64: 1, 16, 22>}, {transform_indices = @transform_1, window_bounds = array<i64: 1, 8, 22>}, {transform_indices = @transform_2, window_bounds = array<i64: 1, 16, 22>}, {transform_indices = @transform_3, window_bounds = array<i64: 1, 8, 22>}, {transform_indices = @transform_4, window_bounds = array<i64: 1, 1, 16, 16>}]} {
    %c0 = arith.constant 0 : index
    %c0_0 = arith.constant 0 : index
    %c0_1 = arith.constant 0 : index
    %0 = vector.load %arg2[%c0, %c0_0, %c0_1] : memref<1x16x22xf32, #tpu.memory_space<vmem>>, vector<1x16x22xf32>
    %1 = vector.shape_cast %0 : vector<1x16x22xf32> to vector<16x22xf32>
    %c0_2 = arith.constant 0 : index
    %c0_3 = arith.constant 0 : index
    %2 = vector.load %arg7[%c0_2, %c0_3] : memref<24x22xf32, #tpu.memory_space<vmem>>, vector<16x22xf32>
    tpu.vector_store %arg7[%c0_2, %c0_3], %1 {strides = array<i32>} : memref<24x22xf32, #tpu.memory_space<vmem>>, vector<16x22xf32>,
    %c0_4 = arith.constant 0 : index
    %c0_5 = arith.constant 0 : index
    %c0_6 = arith.constant 0 : index
    %3 = vector.load %arg3[%c0_4, %c0_5, %c0_6] : memref<1x8x22xf32, #tpu.memory_space<vmem>>, vector<1x8x22xf32>
    %4 = vector.shape_cast %3 : vector<1x8x22xf32> to vector<8x22xf32>
    %c16 = arith.constant 16 : index
    %c0_7 = arith.constant 0 : index
    %5 = vector.load %arg7[%c16, %c0_7] : memref<24x22xf32, #tpu.memory_space<vmem>>, vector<8x22xf32>
    tpu.vector_store %arg7[%c16, %c0_7], %4 {strides = array<i32>} : memref<24x22xf32, #tpu.memory_space<vmem>>, vector<8x22xf32>,
    %c0_8 = arith.constant 0 : index
    %c0_9 = arith.constant 0 : index
    %c0_10 = arith.constant 0 : index
    %6 = vector.load %arg4[%c0_8, %c0_9, %c0_10] : memref<1x16x22xf32, #tpu.memory_space<vmem>>, vector<1x16x22xf32>
    %7 = vector.shape_cast %6 : vector<1x16x22xf32> to vector<16x22xf32>
    %c0_11 = arith.constant 0 : index
    %c0_12 = arith.constant 0 : index
    %8 = vector.load %arg8[%c0_11, %c0_12] : memref<24x22xf32, #tpu.memory_space<vmem>>, vector<16x22xf32>
    tpu.vector_store %arg8[%c0_11, %c0_12], %7 {strides = array<i32>} : memref<24x22xf32, #tpu.memory_space<vmem>>, vector<16x22xf32>,
    %c0_13 = arith.constant 0 : index
    %c0_14 = arith.constant 0 : index
    %c0_15 = arith.constant 0 : index
    %9 = vector.load %arg5[%c0_13, %c0_14, %c0_15] : memref<1x8x22xf32, #tpu.memory_space<vmem>>, vector<1x8x22xf32>
    %10 = vector.shape_cast %9 : vector<1x8x22xf32> to vector<8x22xf32>
    %c16_16 = arith.constant 16 : index
    %c0_17 = arith.constant 0 : index
    %11 = vector.load %arg8[%c16_16, %c0_17] : memref<24x22xf32, #tpu.memory_space<vmem>>, vector<8x22xf32>
    tpu.vector_store %arg8[%c16_16, %c0_17], %10 {strides = array<i32>} : memref<24x22xf32, #tpu.memory_space<vmem>>, vector<8x22xf32>,
    %cst = arith.constant 0.000000e+00 : f32
    %12 = vector.broadcast %cst : f32 to vector<16x16xf32>
    %c3 = arith.constant 3 : index
    %c2 = arith.constant 2 : index
    %13 = vector.load %arg7[%c3, %c2] : memref<24x22xf32, #tpu.memory_space<vmem>>, vector<16x17xf32>
    %c3_18 = arith.constant 3 : index
    %c3_19 = arith.constant 3 : index
    %14 = vector.load %arg7[%c3_18, %c3_19] : memref<24x22xf32, #tpu.memory_space<vmem>>, vector<16x17xf32>
    %c3_20 = arith.constant 3 : index
    %c2_21 = arith.constant 2 : index
    %15 = vector.load %arg8[%c3_20, %c2_21] : memref<24x22xf32, #tpu.memory_space<vmem>>, vector<16x17xf32>
    %c3_22 = arith.constant 3 : index
    %c3_23 = arith.constant 3 : index
    %16 = vector.load %arg8[%c3_22, %c3_23] : memref<24x22xf32, #tpu.memory_space<vmem>>, vector<16x17xf32>
    %17 = arith.subf %14, %13 : vector<16x17xf32>
    %18 = arith.mulf %17, %17 : vector<16x17xf32>
    %cst_24 = arith.constant 8.100000e-01 : f32
    %19 = vector.broadcast %cst_24 : f32 to vector<16x17xf32>
    %20 = arith.addf %19, %18 : vector<16x17xf32>
    %21 = math.rsqrt %20 : vector<16x17xf32>
    %22 = arith.mulf %17, %21 : vector<16x17xf32>
    %23 = arith.subf %16, %15 : vector<16x17xf32>
    %24 = arith.mulf %23, %23 : vector<16x17xf32>
    %cst_25 = arith.constant 8.100000e-01 : f32
    %25 = vector.broadcast %cst_25 : f32 to vector<16x17xf32>
    %26 = arith.addf %25, %24 : vector<16x17xf32>
    %27 = math.rsqrt %26 : vector<16x17xf32>
    %28 = arith.mulf %23, %27 : vector<16x17xf32>
    %29 = arith.subf %22, %28 : vector<16x17xf32>
    %30 = arith.mulf %29, %29 : vector<16x17xf32>
    %cst_26 = arith.constant 1.000000e-01 : f32
    %31 = vector.broadcast %cst_26 : f32 to vector<16x17xf32>
    %32 = arith.addf %30, %31 : vector<16x17xf32>
    %33 = tpu.reciprocal %32 {approx = true} : vector<16x17xf32> -> vector<16x17xf32>
    %34 = vector.extract_strided_slice %33 {offsets = [0, 1], sizes = [16, 16], strides = [1, 1]} : vector<16x17xf32> to vector<16x16xf32>
    %35 = arith.addf %12, %34 : vector<16x16xf32>
    %36 = vector.extract_strided_slice %33 {offsets = [0, 0], sizes = [16, 16], strides = [1, 1]} : vector<16x17xf32> to vector<16x16xf32>
    %37 = arith.addf %35, %36 : vector<16x16xf32>
    %c3_27 = arith.constant 3 : index
    %c1 = arith.constant 1 : index
    %38 = vector.load %arg7[%c3_27, %c1] : memref<24x22xf32, #tpu.memory_space<vmem>>, vector<16x18xf32>
    %c3_28 = arith.constant 3 : index
    %c3_29 = arith.constant 3 : index
    %39 = vector.load %arg7[%c3_28, %c3_29] : memref<24x22xf32, #tpu.memory_space<vmem>>, vector<16x18xf32>
    %c3_30 = arith.constant 3 : index
    %c1_31 = arith.constant 1 : index
    %40 = vector.load %arg8[%c3_30, %c1_31] : memref<24x22xf32, #tpu.memory_space<vmem>>, vector<16x18xf32>
    %c3_32 = arith.constant 3 : index
    %c3_33 = arith.constant 3 : index
    %41 = vector.load %arg8[%c3_32, %c3_33] : memref<24x22xf32, #tpu.memory_space<vmem>>, vector<16x18xf32>
    %42 = arith.subf %39, %38 : vector<16x18xf32>
    %43 = arith.mulf %42, %42 : vector<16x18xf32>
    %cst_34 = arith.constant 8.100000e-01 : f32
    %44 = vector.broadcast %cst_34 : f32 to vector<16x18xf32>
    %45 = arith.addf %44, %43 : vector<16x18xf32>
    %46 = math.rsqrt %45 : vector<16x18xf32>
    %47 = arith.mulf %42, %46 : vector<16x18xf32>
    %48 = arith.subf %41, %40 : vector<16x18xf32>
    %49 = arith.mulf %48, %48 : vector<16x18xf32>
    %cst_35 = arith.constant 8.100000e-01 : f32
    %50 = vector.broadcast %cst_35 : f32 to vector<16x18xf32>
    %51 = arith.addf %50, %49 : vector<16x18xf32>
    %52 = math.rsqrt %51 : vector<16x18xf32>
    %53 = arith.mulf %48, %52 : vector<16x18xf32>
    %54 = arith.subf %47, %53 : vector<16x18xf32>
    %55 = arith.mulf %54, %54 : vector<16x18xf32>
    %cst_36 = arith.constant 1.000000e-01 : f32
    %56 = vector.broadcast %cst_36 : f32 to vector<16x18xf32>
    %57 = arith.addf %55, %56 : vector<16x18xf32>
    %58 = tpu.reciprocal %57 {approx = true} : vector<16x18xf32> -> vector<16x18xf32>
    %59 = vector.extract_strided_slice %58 {offsets = [0, 2], sizes = [16, 16], strides = [1, 1]} : vector<16x18xf32> to vector<16x16xf32>
    %60 = arith.addf %37, %59 : vector<16x16xf32>
    %61 = vector.extract_strided_slice %58 {offsets = [0, 0], sizes = [16, 16], strides = [1, 1]} : vector<16x18xf32> to vector<16x16xf32>
    %62 = arith.addf %60, %61 : vector<16x16xf32>
    %c3_37 = arith.constant 3 : index
    %c0_38 = arith.constant 0 : index
    %63 = vector.load %arg7[%c3_37, %c0_38] : memref<24x22xf32, #tpu.memory_space<vmem>>, vector<16x19xf32>
    %c3_39 = arith.constant 3 : index
    %c3_40 = arith.constant 3 : index
    %64 = vector.load %arg7[%c3_39, %c3_40] : memref<24x22xf32, #tpu.memory_space<vmem>>, vector<16x19xf32>
    %c3_41 = arith.constant 3 : index
    %c0_42 = arith.constant 0 : index
    %65 = vector.load %arg8[%c3_41, %c0_42] : memref<24x22xf32, #tpu.memory_space<vmem>>, vector<16x19xf32>
    %c3_43 = arith.constant 3 : index
    %c3_44 = arith.constant 3 : index
    %66 = vector.load %arg8[%c3_43, %c3_44] : memref<24x22xf32, #tpu.memory_space<vmem>>, vector<16x19xf32>
    %67 = arith.subf %64, %63 : vector<16x19xf32>
    %68 = arith.mulf %67, %67 : vector<16x19xf32>
    %cst_45 = arith.constant 8.100000e-01 : f32
    %69 = vector.broadcast %cst_45 : f32 to vector<16x19xf32>
    %70 = arith.addf %69, %68 : vector<16x19xf32>
    %71 = math.rsqrt %70 : vector<16x19xf32>
    %72 = arith.mulf %67, %71 : vector<16x19xf32>
    %73 = arith.subf %66, %65 : vector<16x19xf32>
    %74 = arith.mulf %73, %73 : vector<16x19xf32>
    %cst_46 = arith.constant 8.100000e-01 : f32
    %75 = vector.broadcast %cst_46 : f32 to vector<16x19xf32>
    %76 = arith.addf %75, %74 : vector<16x19xf32>
    %77 = math.rsqrt %76 : vector<16x19xf32>
    %78 = arith.mulf %73, %77 : vector<16x19xf32>
    %79 = arith.subf %72, %78 : vector<16x19xf32>
    %80 = arith.mulf %79, %79 : vector<16x19xf32>
    %cst_47 = arith.constant 1.000000e-01 : f32
    %81 = vector.broadcast %cst_47 : f32 to vector<16x19xf32>
    %82 = arith.addf %80, %81 : vector<16x19xf32>
    %83 = tpu.reciprocal %82 {approx = true} : vector<16x19xf32> -> vector<16x19xf32>
    %84 = vector.extract_strided_slice %83 {offsets = [0, 3], sizes = [16, 16], strides = [1, 1]} : vector<16x19xf32> to vector<16x16xf32>
    %85 = arith.addf %62, %84 : vector<16x16xf32>
    %86 = vector.extract_strided_slice %83 {offsets = [0, 0], sizes = [16, 16], strides = [1, 1]} : vector<16x19xf32> to vector<16x16xf32>
    %87 = arith.addf %85, %86 : vector<16x16xf32>
    %c2_48 = arith.constant 2 : index
    %c3_49 = arith.constant 3 : index
    %88 = vector.load %arg7[%c2_48, %c3_49] : memref<24x22xf32, #tpu.memory_space<vmem>>, vector<17x19xf32>
    %c3_50 = arith.constant 3 : index
    %c0_51 = arith.constant 0 : index
    %89 = vector.load %arg7[%c3_50, %c0_51] : memref<24x22xf32, #tpu.memory_space<vmem>>, vector<17x19xf32>
    %c2_52 = arith.constant 2 : index
    %c3_53 = arith.constant 3 : index
    %90 = vector.load %arg8[%c2_52, %c3_53] : memref<24x22xf32, #tpu.memory_space<vmem>>, vector<17x19xf32>
    %c3_54 = arith.constant 3 : index
    %c0_55 = arith.constant 0 : index
    %91 = vector.load %arg8[%c3_54, %c0_55] : memref<24x22xf32, #tpu.memory_space<vmem>>, vector<17x19xf32>
    %92 = arith.subf %89, %88 : vector<17x19xf32>
    %93 = arith.mulf %92, %92 : vector<17x19xf32>
    %cst_56 = arith.constant 8.100000e-01 : f32
    %94 = vector.broadcast %cst_56 : f32 to vector<17x19xf32>
    %95 = arith.addf %94, %93 : vector<17x19xf32>
    %96 = math.rsqrt %95 : vector<17x19xf32>
    %97 = arith.mulf %92, %96 : vector<17x19xf32>
    %98 = arith.subf %91, %90 : vector<17x19xf32>
    %99 = arith.mulf %98, %98 : vector<17x19xf32>
    %cst_57 = arith.constant 8.100000e-01 : f32
    %100 = vector.broadcast %cst_57 : f32 to vector<17x19xf32>
    %101 = arith.addf %100, %99 : vector<17x19xf32>
    %102 = math.rsqrt %101 : vector<17x19xf32>
    %103 = arith.mulf %98, %102 : vector<17x19xf32>
    %104 = arith.subf %97, %103 : vector<17x19xf32>
    %105 = arith.mulf %104, %104 : vector<17x19xf32>
    %cst_58 = arith.constant 1.000000e-01 : f32
    %106 = vector.broadcast %cst_58 : f32 to vector<17x19xf32>
    %107 = arith.addf %105, %106 : vector<17x19xf32>
    %108 = tpu.reciprocal %107 {approx = true} : vector<17x19xf32> -> vector<17x19xf32>
    %109 = vector.extract_strided_slice %108 {offsets = [1, 0], sizes = [16, 16], strides = [1, 1]} : vector<17x19xf32> to vector<16x16xf32>
    %110 = arith.addf %87, %109 : vector<16x16xf32>
    %111 = vector.extract_strided_slice %108 {offsets = [0, 3], sizes = [16, 16], strides = [1, 1]} : vector<17x19xf32> to vector<16x16xf32>
    %112 = arith.addf %110, %111 : vector<16x16xf32>
    %c2_59 = arith.constant 2 : index
    %c3_60 = arith.constant 3 : index
    %113 = vector.load %arg7[%c2_59, %c3_60] : memref<24x22xf32, #tpu.memory_space<vmem>>, vector<17x18xf32>
    %c3_61 = arith.constant 3 : index
    %c1_62 = arith.constant 1 : index
    %114 = vector.load %arg7[%c3_61, %c1_62] : memref<24x22xf32, #tpu.memory_space<vmem>>, vector<17x18xf32>
    %c2_63 = arith.constant 2 : index
    %c3_64 = arith.constant 3 : index
    %115 = vector.load %arg8[%c2_63, %c3_64] : memref<24x22xf32, #tpu.memory_space<vmem>>, vector<17x18xf32>
    %c3_65 = arith.constant 3 : index
    %c1_66 = arith.constant 1 : index
    %116 = vector.load %arg8[%c3_65, %c1_66] : memref<24x22xf32, #tpu.memory_space<vmem>>, vector<17x18xf32>
    %117 = arith.subf %114, %113 : vector<17x18xf32>
    %118 = arith.mulf %117, %117 : vector<17x18xf32>
    %cst_67 = arith.constant 8.100000e-01 : f32
    %119 = vector.broadcast %cst_67 : f32 to vector<17x18xf32>
    %120 = arith.addf %119, %118 : vector<17x18xf32>
    %121 = math.rsqrt %120 : vector<17x18xf32>
    %122 = arith.mulf %117, %121 : vector<17x18xf32>
    %123 = arith.subf %116, %115 : vector<17x18xf32>
    %124 = arith.mulf %123, %123 : vector<17x18xf32>
    %cst_68 = arith.constant 8.100000e-01 : f32
    %125 = vector.broadcast %cst_68 : f32 to vector<17x18xf32>
    %126 = arith.addf %125, %124 : vector<17x18xf32>
    %127 = math.rsqrt %126 : vector<17x18xf32>
    %128 = arith.mulf %123, %127 : vector<17x18xf32>
    %129 = arith.subf %122, %128 : vector<17x18xf32>
    %130 = arith.mulf %129, %129 : vector<17x18xf32>
    %cst_69 = arith.constant 1.000000e-01 : f32
    %131 = vector.broadcast %cst_69 : f32 to vector<17x18xf32>
    %132 = arith.addf %130, %131 : vector<17x18xf32>
    %133 = tpu.reciprocal %132 {approx = true} : vector<17x18xf32> -> vector<17x18xf32>
    %134 = vector.extract_strided_slice %133 {offsets = [1, 0], sizes = [16, 16], strides = [1, 1]} : vector<17x18xf32> to vector<16x16xf32>
    %135 = arith.addf %112, %134 : vector<16x16xf32>
    %136 = vector.extract_strided_slice %133 {offsets = [0, 2], sizes = [16, 16], strides = [1, 1]} : vector<17x18xf32> to vector<16x16xf32>
    %137 = arith.addf %135, %136 : vector<16x16xf32>
    %c2_70 = arith.constant 2 : index
    %c3_71 = arith.constant 3 : index
    %138 = vector.load %arg7[%c2_70, %c3_71] : memref<24x22xf32, #tpu.memory_space<vmem>>, vector<17x17xf32>
    %c3_72 = arith.constant 3 : index
    %c2_73 = arith.constant 2 : index
    %139 = vector.load %arg7[%c3_72, %c2_73] : memref<24x22xf32, #tpu.memory_space<vmem>>, vector<17x17xf32>
    %c2_74 = arith.constant 2 : index
    %c3_75 = arith.constant 3 : index
    %140 = vector.load %arg8[%c2_74, %c3_75] : memref<24x22xf32, #tpu.memory_space<vmem>>, vector<17x17xf32>
    %c3_76 = arith.constant 3 : index
    %c2_77 = arith.constant 2 : index
    %141 = vector.load %arg8[%c3_76, %c2_77] : memref<24x22xf32, #tpu.memory_space<vmem>>, vector<17x17xf32>
    %142 = arith.subf %139, %138 : vector<17x17xf32>
    %143 = arith.mulf %142, %142 : vector<17x17xf32>
    %cst_78 = arith.constant 8.100000e-01 : f32
    %144 = vector.broadcast %cst_78 : f32 to vector<17x17xf32>
    %145 = arith.addf %144, %143 : vector<17x17xf32>
    %146 = math.rsqrt %145 : vector<17x17xf32>
    %147 = arith.mulf %142, %146 : vector<17x17xf32>
    %148 = arith.subf %141, %140 : vector<17x17xf32>
    %149 = arith.mulf %148, %148 : vector<17x17xf32>
    %cst_79 = arith.constant 8.100000e-01 : f32
    %150 = vector.broadcast %cst_79 : f32 to vector<17x17xf32>
    %151 = arith.addf %150, %149 : vector<17x17xf32>
    %152 = math.rsqrt %151 : vector<17x17xf32>
    %153 = arith.mulf %148, %152 : vector<17x17xf32>
    %154 = arith.subf %147, %153 : vector<17x17xf32>
    %155 = arith.mulf %154, %154 : vector<17x17xf32>
    %cst_80 = arith.constant 1.000000e-01 : f32
    %156 = vector.broadcast %cst_80 : f32 to vector<17x17xf32>
    %157 = arith.addf %155, %156 : vector<17x17xf32>
    %158 = tpu.reciprocal %157 {approx = true} : vector<17x17xf32> -> vector<17x17xf32>
    %159 = vector.extract_strided_slice %158 {offsets = [1, 0], sizes = [16, 16], strides = [1, 1]} : vector<17x17xf32> to vector<16x16xf32>
    %160 = arith.addf %137, %159 : vector<16x16xf32>
    %161 = vector.extract_strided_slice %158 {offsets = [0, 1], sizes = [16, 16], strides = [1, 1]} : vector<17x17xf32> to vector<16x16xf32>
    %162 = arith.addf %160, %161 : vector<16x16xf32>
    %c2_81 = arith.constant 2 : index
    %c3_82 = arith.constant 3 : index
    %163 = vector.load %arg7[%c2_81, %c3_82] : memref<24x22xf32, #tpu.memory_space<vmem>>, vector<17x16xf32>
    %c3_83 = arith.constant 3 : index
    %c3_84 = arith.constant 3 : index
    %164 = vector.load %arg7[%c3_83, %c3_84] : memref<24x22xf32, #tpu.memory_space<vmem>>, vector<17x16xf32>
    %c2_85 = arith.constant 2 : index
    %c3_86 = arith.constant 3 : index
    %165 = vector.load %arg8[%c2_85, %c3_86] : memref<24x22xf32, #tpu.memory_space<vmem>>, vector<17x16xf32>
    %c3_87 = arith.constant 3 : index
    %c3_88 = arith.constant 3 : index
    %166 = vector.load %arg8[%c3_87, %c3_88] : memref<24x22xf32, #tpu.memory_space<vmem>>, vector<17x16xf32>
    %167 = arith.subf %164, %163 : vector<17x16xf32>
    %168 = arith.mulf %167, %167 : vector<17x16xf32>
    %cst_89 = arith.constant 8.100000e-01 : f32
    %169 = vector.broadcast %cst_89 : f32 to vector<17x16xf32>
    %170 = arith.addf %169, %168 : vector<17x16xf32>
    %171 = math.rsqrt %170 : vector<17x16xf32>
    %172 = arith.mulf %167, %171 : vector<17x16xf32>
    %173 = arith.subf %166, %165 : vector<17x16xf32>
    %174 = arith.mulf %173, %173 : vector<17x16xf32>
    %cst_90 = arith.constant 8.100000e-01 : f32
    %175 = vector.broadcast %cst_90 : f32 to vector<17x16xf32>
    %176 = arith.addf %175, %174 : vector<17x16xf32>
    %177 = math.rsqrt %176 : vector<17x16xf32>
    %178 = arith.mulf %173, %177 : vector<17x16xf32>
    %179 = arith.subf %172, %178 : vector<17x16xf32>
    %180 = arith.mulf %179, %179 : vector<17x16xf32>
    %cst_91 = arith.constant 1.000000e-01 : f32
    %181 = vector.broadcast %cst_91 : f32 to vector<17x16xf32>
    %182 = arith.addf %180, %181 : vector<17x16xf32>
    %183 = tpu.reciprocal %182 {approx = true} : vector<17x16xf32> -> vector<17x16xf32>
    %184 = vector.extract_strided_slice %183 {offsets = [1, 0], sizes = [16, 16], strides = [1, 1]} : vector<17x16xf32> to vector<16x16xf32>
    %185 = arith.addf %162, %184 : vector<16x16xf32>
    %186 = vector.extract_strided_slice %183 {offsets = [0, 0], sizes = [16, 16], strides = [1, 1]} : vector<17x16xf32> to vector<16x16xf32>
    %187 = arith.addf %185, %186 : vector<16x16xf32>
    %c2_92 = arith.constant 2 : index
    %c2_93 = arith.constant 2 : index
    %188 = vector.load %arg7[%c2_92, %c2_93] : memref<24x22xf32, #tpu.memory_space<vmem>>, vector<17x17xf32>
    %c3_94 = arith.constant 3 : index
    %c3_95 = arith.constant 3 : index
    %189 = vector.load %arg7[%c3_94, %c3_95] : memref<24x22xf32, #tpu.memory_space<vmem>>, vector<17x17xf32>
    %c2_96 = arith.constant 2 : index
    %c2_97 = arith.constant 2 : index
    %190 = vector.load %arg8[%c2_96, %c2_97] : memref<24x22xf32, #tpu.memory_space<vmem>>, vector<17x17xf32>
    %c3_98 = arith.constant 3 : index
    %c3_99 = arith.constant 3 : index
    %191 = vector.load %arg8[%c3_98, %c3_99] : memref<24x22xf32, #tpu.memory_space<vmem>>, vector<17x17xf32>
    %192 = arith.subf %189, %188 : vector<17x17xf32>
    %193 = arith.mulf %192, %192 : vector<17x17xf32>
    %cst_100 = arith.constant 8.100000e-01 : f32
    %194 = vector.broadcast %cst_100 : f32 to vector<17x17xf32>
    %195 = arith.addf %194, %193 : vector<17x17xf32>
    %196 = math.rsqrt %195 : vector<17x17xf32>
    %197 = arith.mulf %192, %196 : vector<17x17xf32>
    %198 = arith.subf %191, %190 : vector<17x17xf32>
    %199 = arith.mulf %198, %198 : vector<17x17xf32>
    %cst_101 = arith.constant 8.100000e-01 : f32
    %200 = vector.broadcast %cst_101 : f32 to vector<17x17xf32>
    %201 = arith.addf %200, %199 : vector<17x17xf32>
    %202 = math.rsqrt %201 : vector<17x17xf32>
    %203 = arith.mulf %198, %202 : vector<17x17xf32>
    %204 = arith.subf %197, %203 : vector<17x17xf32>
    %205 = arith.mulf %204, %204 : vector<17x17xf32>
    %cst_102 = arith.constant 1.000000e-01 : f32
    %206 = vector.broadcast %cst_102 : f32 to vector<17x17xf32>
    %207 = arith.addf %205, %206 : vector<17x17xf32>
    %208 = tpu.reciprocal %207 {approx = true} : vector<17x17xf32> -> vector<17x17xf32>
    %209 = vector.extract_strided_slice %208 {offsets = [1, 1], sizes = [16, 16], strides = [1, 1]} : vector<17x17xf32> to vector<16x16xf32>
    %210 = arith.addf %187, %209 : vector<16x16xf32>
    %211 = vector.extract_strided_slice %208 {offsets = [0, 0], sizes = [16, 16], strides = [1, 1]} : vector<17x17xf32> to vector<16x16xf32>
    %212 = arith.addf %210, %211 : vector<16x16xf32>
    %c2_103 = arith.constant 2 : index
    %c1_104 = arith.constant 1 : index
    %213 = vector.load %arg7[%c2_103, %c1_104] : memref<24x22xf32, #tpu.memory_space<vmem>>, vector<17x18xf32>
    %c3_105 = arith.constant 3 : index
    %c3_106 = arith.constant 3 : index
    %214 = vector.load %arg7[%c3_105, %c3_106] : memref<24x22xf32, #tpu.memory_space<vmem>>, vector<17x18xf32>
    %c2_107 = arith.constant 2 : index
    %c1_108 = arith.constant 1 : index
    %215 = vector.load %arg8[%c2_107, %c1_108] : memref<24x22xf32, #tpu.memory_space<vmem>>, vector<17x18xf32>
    %c3_109 = arith.constant 3 : index
    %c3_110 = arith.constant 3 : index
    %216 = vector.load %arg8[%c3_109, %c3_110] : memref<24x22xf32, #tpu.memory_space<vmem>>, vector<17x18xf32>
    %217 = arith.subf %214, %213 : vector<17x18xf32>
    %218 = arith.mulf %217, %217 : vector<17x18xf32>
    %cst_111 = arith.constant 8.100000e-01 : f32
    %219 = vector.broadcast %cst_111 : f32 to vector<17x18xf32>
    %220 = arith.addf %219, %218 : vector<17x18xf32>
    %221 = math.rsqrt %220 : vector<17x18xf32>
    %222 = arith.mulf %217, %221 : vector<17x18xf32>
    %223 = arith.subf %216, %215 : vector<17x18xf32>
    %224 = arith.mulf %223, %223 : vector<17x18xf32>
    %cst_112 = arith.constant 8.100000e-01 : f32
    %225 = vector.broadcast %cst_112 : f32 to vector<17x18xf32>
    %226 = arith.addf %225, %224 : vector<17x18xf32>
    %227 = math.rsqrt %226 : vector<17x18xf32>
    %228 = arith.mulf %223, %227 : vector<17x18xf32>
    %229 = arith.subf %222, %228 : vector<17x18xf32>
    %230 = arith.mulf %229, %229 : vector<17x18xf32>
    %cst_113 = arith.constant 1.000000e-01 : f32
    %231 = vector.broadcast %cst_113 : f32 to vector<17x18xf32>
    %232 = arith.addf %230, %231 : vector<17x18xf32>
    %233 = tpu.reciprocal %232 {approx = true} : vector<17x18xf32> -> vector<17x18xf32>
    %234 = vector.extract_strided_slice %233 {offsets = [1, 2], sizes = [16, 16], strides = [1, 1]} : vector<17x18xf32> to vector<16x16xf32>
    %235 = arith.addf %212, %234 : vector<16x16xf32>
    %236 = vector.extract_strided_slice %233 {offsets = [0, 0], sizes = [16, 16], strides = [1, 1]} : vector<17x18xf32> to vector<16x16xf32>
    %237 = arith.addf %235, %236 : vector<16x16xf32>
    %c2_114 = arith.constant 2 : index
    %c0_115 = arith.constant 0 : index
    %238 = vector.load %arg7[%c2_114, %c0_115] : memref<24x22xf32, #tpu.memory_space<vmem>>, vector<17x19xf32>
    %c3_116 = arith.constant 3 : index
    %c3_117 = arith.constant 3 : index
    %239 = vector.load %arg7[%c3_116, %c3_117] : memref<24x22xf32, #tpu.memory_space<vmem>>, vector<17x19xf32>
    %c2_118 = arith.constant 2 : index
    %c0_119 = arith.constant 0 : index
    %240 = vector.load %arg8[%c2_118, %c0_119] : memref<24x22xf32, #tpu.memory_space<vmem>>, vector<17x19xf32>
    %c3_120 = arith.constant 3 : index
    %c3_121 = arith.constant 3 : index
    %241 = vector.load %arg8[%c3_120, %c3_121] : memref<24x22xf32, #tpu.memory_space<vmem>>, vector<17x19xf32>
    %242 = arith.subf %239, %238 : vector<17x19xf32>
    %243 = arith.mulf %242, %242 : vector<17x19xf32>
    %cst_122 = arith.constant 8.100000e-01 : f32
    %244 = vector.broadcast %cst_122 : f32 to vector<17x19xf32>
    %245 = arith.addf %244, %243 : vector<17x19xf32>
    %246 = math.rsqrt %245 : vector<17x19xf32>
    %247 = arith.mulf %242, %246 : vector<17x19xf32>
    %248 = arith.subf %241, %240 : vector<17x19xf32>
    %249 = arith.mulf %248, %248 : vector<17x19xf32>
    %cst_123 = arith.constant 8.100000e-01 : f32
    %250 = vector.broadcast %cst_123 : f32 to vector<17x19xf32>
    %251 = arith.addf %250, %249 : vector<17x19xf32>
    %252 = math.rsqrt %251 : vector<17x19xf32>
    %253 = arith.mulf %248, %252 : vector<17x19xf32>
    %254 = arith.subf %247, %253 : vector<17x19xf32>
    %255 = arith.mulf %254, %254 : vector<17x19xf32>
    %cst_124 = arith.constant 1.000000e-01 : f32
    %256 = vector.broadcast %cst_124 : f32 to vector<17x19xf32>
    %257 = arith.addf %255, %256 : vector<17x19xf32>
    %258 = tpu.reciprocal %257 {approx = true} : vector<17x19xf32> -> vector<17x19xf32>
    %259 = vector.extract_strided_slice %258 {offsets = [1, 3], sizes = [16, 16], strides = [1, 1]} : vector<17x19xf32> to vector<16x16xf32>
    %260 = arith.addf %237, %259 : vector<16x16xf32>
    %261 = vector.extract_strided_slice %258 {offsets = [0, 0], sizes = [16, 16], strides = [1, 1]} : vector<17x19xf32> to vector<16x16xf32>
    %262 = arith.addf %260, %261 : vector<16x16xf32>
    %c1_125 = arith.constant 1 : index
    %c3_126 = arith.constant 3 : index
    %263 = vector.load %arg7[%c1_125, %c3_126] : memref<24x22xf32, #tpu.memory_space<vmem>>, vector<18x19xf32>
    %c3_127 = arith.constant 3 : index
    %c0_128 = arith.constant 0 : index
    %264 = vector.load %arg7[%c3_127, %c0_128] : memref<24x22xf32, #tpu.memory_space<vmem>>, vector<18x19xf32>
    %c1_129 = arith.constant 1 : index
    %c3_130 = arith.constant 3 : index
    %265 = vector.load %arg8[%c1_129, %c3_130] : memref<24x22xf32, #tpu.memory_space<vmem>>, vector<18x19xf32>
    %c3_131 = arith.constant 3 : index
    %c0_132 = arith.constant 0 : index
    %266 = vector.load %arg8[%c3_131, %c0_132] : memref<24x22xf32, #tpu.memory_space<vmem>>, vector<18x19xf32>
    %267 = arith.subf %264, %263 : vector<18x19xf32>
    %268 = arith.mulf %267, %267 : vector<18x19xf32>
    %cst_133 = arith.constant 8.100000e-01 : f32
    %269 = vector.broadcast %cst_133 : f32 to vector<18x19xf32>
    %270 = arith.addf %269, %268 : vector<18x19xf32>
    %271 = math.rsqrt %270 : vector<18x19xf32>
    %272 = arith.mulf %267, %271 : vector<18x19xf32>
    %273 = arith.subf %266, %265 : vector<18x19xf32>
    %274 = arith.mulf %273, %273 : vector<18x19xf32>
    %cst_134 = arith.constant 8.100000e-01 : f32
    %275 = vector.broadcast %cst_134 : f32 to vector<18x19xf32>
    %276 = arith.addf %275, %274 : vector<18x19xf32>
    %277 = math.rsqrt %276 : vector<18x19xf32>
    %278 = arith.mulf %273, %277 : vector<18x19xf32>
    %279 = arith.subf %272, %278 : vector<18x19xf32>
    %280 = arith.mulf %279, %279 : vector<18x19xf32>
    %cst_135 = arith.constant 1.000000e-01 : f32
    %281 = vector.broadcast %cst_135 : f32 to vector<18x19xf32>
    %282 = arith.addf %280, %281 : vector<18x19xf32>
    %283 = tpu.reciprocal %282 {approx = true} : vector<18x19xf32> -> vector<18x19xf32>
    %284 = vector.extract_strided_slice %283 {offsets = [2, 0], sizes = [16, 16], strides = [1, 1]} : vector<18x19xf32> to vector<16x16xf32>
    %285 = arith.addf %262, %284 : vector<16x16xf32>
    %286 = vector.extract_strided_slice %283 {offsets = [0, 3], sizes = [16, 16], strides = [1, 1]} : vector<18x19xf32> to vector<16x16xf32>
    %287 = arith.addf %285, %286 : vector<16x16xf32>
    %c1_136 = arith.constant 1 : index
    %c3_137 = arith.constant 3 : index
    %288 = vector.load %arg7[%c1_136, %c3_137] : memref<24x22xf32, #tpu.memory_space<vmem>>, vector<18x18xf32>
    %c3_138 = arith.constant 3 : index
    %c1_139 = arith.constant 1 : index
    %289 = vector.load %arg7[%c3_138, %c1_139] : memref<24x22xf32, #tpu.memory_space<vmem>>, vector<18x18xf32>
    %c1_140 = arith.constant 1 : index
    %c3_141 = arith.constant 3 : index
    %290 = vector.load %arg8[%c1_140, %c3_141] : memref<24x22xf32, #tpu.memory_space<vmem>>, vector<18x18xf32>
    %c3_142 = arith.constant 3 : index
    %c1_143 = arith.constant 1 : index
    %291 = vector.load %arg8[%c3_142, %c1_143] : memref<24x22xf32, #tpu.memory_space<vmem>>, vector<18x18xf32>
    %292 = arith.subf %289, %288 : vector<18x18xf32>
    %293 = arith.mulf %292, %292 : vector<18x18xf32>
    %cst_144 = arith.constant 8.100000e-01 : f32
    %294 = vector.broadcast %cst_144 : f32 to vector<18x18xf32>
    %295 = arith.addf %294, %293 : vector<18x18xf32>
    %296 = math.rsqrt %295 : vector<18x18xf32>
    %297 = arith.mulf %292, %296 : vector<18x18xf32>
    %298 = arith.subf %291, %290 : vector<18x18xf32>
    %299 = arith.mulf %298, %298 : vector<18x18xf32>
    %cst_145 = arith.constant 8.100000e-01 : f32
    %300 = vector.broadcast %cst_145 : f32 to vector<18x18xf32>
    %301 = arith.addf %300, %299 : vector<18x18xf32>
    %302 = math.rsqrt %301 : vector<18x18xf32>
    %303 = arith.mulf %298, %302 : vector<18x18xf32>
    %304 = arith.subf %297, %303 : vector<18x18xf32>
    %305 = arith.mulf %304, %304 : vector<18x18xf32>
    %cst_146 = arith.constant 1.000000e-01 : f32
    %306 = vector.broadcast %cst_146 : f32 to vector<18x18xf32>
    %307 = arith.addf %305, %306 : vector<18x18xf32>
    %308 = tpu.reciprocal %307 {approx = true} : vector<18x18xf32> -> vector<18x18xf32>
    %309 = vector.extract_strided_slice %308 {offsets = [2, 0], sizes = [16, 16], strides = [1, 1]} : vector<18x18xf32> to vector<16x16xf32>
    %310 = arith.addf %287, %309 : vector<16x16xf32>
    %311 = vector.extract_strided_slice %308 {offsets = [0, 2], sizes = [16, 16], strides = [1, 1]} : vector<18x18xf32> to vector<16x16xf32>
    %312 = arith.addf %310, %311 : vector<16x16xf32>
    %c1_147 = arith.constant 1 : index
    %c3_148 = arith.constant 3 : index
    %313 = vector.load %arg7[%c1_147, %c3_148] : memref<24x22xf32, #tpu.memory_space<vmem>>, vector<18x17xf32>
    %c3_149 = arith.constant 3 : index
    %c2_150 = arith.constant 2 : index
    %314 = vector.load %arg7[%c3_149, %c2_150] : memref<24x22xf32, #tpu.memory_space<vmem>>, vector<18x17xf32>
    %c1_151 = arith.constant 1 : index
    %c3_152 = arith.constant 3 : index
    %315 = vector.load %arg8[%c1_151, %c3_152] : memref<24x22xf32, #tpu.memory_space<vmem>>, vector<18x17xf32>
    %c3_153 = arith.constant 3 : index
    %c2_154 = arith.constant 2 : index
    %316 = vector.load %arg8[%c3_153, %c2_154] : memref<24x22xf32, #tpu.memory_space<vmem>>, vector<18x17xf32>
    %317 = arith.subf %314, %313 : vector<18x17xf32>
    %318 = arith.mulf %317, %317 : vector<18x17xf32>
    %cst_155 = arith.constant 8.100000e-01 : f32
    %319 = vector.broadcast %cst_155 : f32 to vector<18x17xf32>
    %320 = arith.addf %319, %318 : vector<18x17xf32>
    %321 = math.rsqrt %320 : vector<18x17xf32>
    %322 = arith.mulf %317, %321 : vector<18x17xf32>
    %323 = arith.subf %316, %315 : vector<18x17xf32>
    %324 = arith.mulf %323, %323 : vector<18x17xf32>
    %cst_156 = arith.constant 8.100000e-01 : f32
    %325 = vector.broadcast %cst_156 : f32 to vector<18x17xf32>
    %326 = arith.addf %325, %324 : vector<18x17xf32>
    %327 = math.rsqrt %326 : vector<18x17xf32>
    %328 = arith.mulf %323, %327 : vector<18x17xf32>
    %329 = arith.subf %322, %328 : vector<18x17xf32>
    %330 = arith.mulf %329, %329 : vector<18x17xf32>
    %cst_157 = arith.constant 1.000000e-01 : f32
    %331 = vector.broadcast %cst_157 : f32 to vector<18x17xf32>
    %332 = arith.addf %330, %331 : vector<18x17xf32>
    %333 = tpu.reciprocal %332 {approx = true} : vector<18x17xf32> -> vector<18x17xf32>
    %334 = vector.extract_strided_slice %333 {offsets = [2, 0], sizes = [16, 16], strides = [1, 1]} : vector<18x17xf32> to vector<16x16xf32>
    %335 = arith.addf %312, %334 : vector<16x16xf32>
    %336 = vector.extract_strided_slice %333 {offsets = [0, 1], sizes = [16, 16], strides = [1, 1]} : vector<18x17xf32> to vector<16x16xf32>
    %337 = arith.addf %335, %336 : vector<16x16xf32>
    %c1_158 = arith.constant 1 : index
    %c3_159 = arith.constant 3 : index
    %338 = vector.load %arg7[%c1_158, %c3_159] : memref<24x22xf32, #tpu.memory_space<vmem>>, vector<18x16xf32>
    %c3_160 = arith.constant 3 : index
    %c3_161 = arith.constant 3 : index
    %339 = vector.load %arg7[%c3_160, %c3_161] : memref<24x22xf32, #tpu.memory_space<vmem>>, vector<18x16xf32>
    %c1_162 = arith.constant 1 : index
    %c3_163 = arith.constant 3 : index
    %340 = vector.load %arg8[%c1_162, %c3_163] : memref<24x22xf32, #tpu.memory_space<vmem>>, vector<18x16xf32>
    %c3_164 = arith.constant 3 : index
    %c3_165 = arith.constant 3 : index
    %341 = vector.load %arg8[%c3_164, %c3_165] : memref<24x22xf32, #tpu.memory_space<vmem>>, vector<18x16xf32>
    %342 = arith.subf %339, %338 : vector<18x16xf32>
    %343 = arith.mulf %342, %342 : vector<18x16xf32>
    %cst_166 = arith.constant 8.100000e-01 : f32
    %344 = vector.broadcast %cst_166 : f32 to vector<18x16xf32>
    %345 = arith.addf %344, %343 : vector<18x16xf32>
    %346 = math.rsqrt %345 : vector<18x16xf32>
    %347 = arith.mulf %342, %346 : vector<18x16xf32>
    %348 = arith.subf %341, %340 : vector<18x16xf32>
    %349 = arith.mulf %348, %348 : vector<18x16xf32>
    %cst_167 = arith.constant 8.100000e-01 : f32
    %350 = vector.broadcast %cst_167 : f32 to vector<18x16xf32>
    %351 = arith.addf %350, %349 : vector<18x16xf32>
    %352 = math.rsqrt %351 : vector<18x16xf32>
    %353 = arith.mulf %348, %352 : vector<18x16xf32>
    %354 = arith.subf %347, %353 : vector<18x16xf32>
    %355 = arith.mulf %354, %354 : vector<18x16xf32>
    %cst_168 = arith.constant 1.000000e-01 : f32
    %356 = vector.broadcast %cst_168 : f32 to vector<18x16xf32>
    %357 = arith.addf %355, %356 : vector<18x16xf32>
    %358 = tpu.reciprocal %357 {approx = true} : vector<18x16xf32> -> vector<18x16xf32>
    %359 = vector.extract_strided_slice %358 {offsets = [2, 0], sizes = [16, 16], strides = [1, 1]} : vector<18x16xf32> to vector<16x16xf32>
    %360 = arith.addf %337, %359 : vector<16x16xf32>
    %361 = vector.extract_strided_slice %358 {offsets = [0, 0], sizes = [16, 16], strides = [1, 1]} : vector<18x16xf32> to vector<16x16xf32>
    %362 = arith.addf %360, %361 : vector<16x16xf32>
    %c1_169 = arith.constant 1 : index
    %c2_170 = arith.constant 2 : index
    %363 = vector.load %arg7[%c1_169, %c2_170] : memref<24x22xf32, #tpu.memory_space<vmem>>, vector<18x17xf32>
    %c3_171 = arith.constant 3 : index
    %c3_172 = arith.constant 3 : index
    %364 = vector.load %arg7[%c3_171, %c3_172] : memref<24x22xf32, #tpu.memory_space<vmem>>, vector<18x17xf32>
    %c1_173 = arith.constant 1 : index
    %c2_174 = arith.constant 2 : index
    %365 = vector.load %arg8[%c1_173, %c2_174] : memref<24x22xf32, #tpu.memory_space<vmem>>, vector<18x17xf32>
    %c3_175 = arith.constant 3 : index
    %c3_176 = arith.constant 3 : index
    %366 = vector.load %arg8[%c3_175, %c3_176] : memref<24x22xf32, #tpu.memory_space<vmem>>, vector<18x17xf32>
    %367 = arith.subf %364, %363 : vector<18x17xf32>
    %368 = arith.mulf %367, %367 : vector<18x17xf32>
    %cst_177 = arith.constant 8.100000e-01 : f32
    %369 = vector.broadcast %cst_177 : f32 to vector<18x17xf32>
    %370 = arith.addf %369, %368 : vector<18x17xf32>
    %371 = math.rsqrt %370 : vector<18x17xf32>
    %372 = arith.mulf %367, %371 : vector<18x17xf32>
    %373 = arith.subf %366, %365 : vector<18x17xf32>
    %374 = arith.mulf %373, %373 : vector<18x17xf32>
    %cst_178 = arith.constant 8.100000e-01 : f32
    %375 = vector.broadcast %cst_178 : f32 to vector<18x17xf32>
    %376 = arith.addf %375, %374 : vector<18x17xf32>
    %377 = math.rsqrt %376 : vector<18x17xf32>
    %378 = arith.mulf %373, %377 : vector<18x17xf32>
    %379 = arith.subf %372, %378 : vector<18x17xf32>
    %380 = arith.mulf %379, %379 : vector<18x17xf32>
    %cst_179 = arith.constant 1.000000e-01 : f32
    %381 = vector.broadcast %cst_179 : f32 to vector<18x17xf32>
    %382 = arith.addf %380, %381 : vector<18x17xf32>
    %383 = tpu.reciprocal %382 {approx = true} : vector<18x17xf32> -> vector<18x17xf32>
    %384 = vector.extract_strided_slice %383 {offsets = [2, 1], sizes = [16, 16], strides = [1, 1]} : vector<18x17xf32> to vector<16x16xf32>
    %385 = arith.addf %362, %384 : vector<16x16xf32>
    %386 = vector.extract_strided_slice %383 {offsets = [0, 0], sizes = [16, 16], strides = [1, 1]} : vector<18x17xf32> to vector<16x16xf32>
    %387 = arith.addf %385, %386 : vector<16x16xf32>
    %c1_180 = arith.constant 1 : index
    %c1_181 = arith.constant 1 : index
    %388 = vector.load %arg7[%c1_180, %c1_181] : memref<24x22xf32, #tpu.memory_space<vmem>>, vector<18x18xf32>
    %c3_182 = arith.constant 3 : index
    %c3_183 = arith.constant 3 : index
    %389 = vector.load %arg7[%c3_182, %c3_183] : memref<24x22xf32, #tpu.memory_space<vmem>>, vector<18x18xf32>
    %c1_184 = arith.constant 1 : index
    %c1_185 = arith.constant 1 : index
    %390 = vector.load %arg8[%c1_184, %c1_185] : memref<24x22xf32, #tpu.memory_space<vmem>>, vector<18x18xf32>
    %c3_186 = arith.constant 3 : index
    %c3_187 = arith.constant 3 : index
    %391 = vector.load %arg8[%c3_186, %c3_187] : memref<24x22xf32, #tpu.memory_space<vmem>>, vector<18x18xf32>
    %392 = arith.subf %389, %388 : vector<18x18xf32>
    %393 = arith.mulf %392, %392 : vector<18x18xf32>
    %cst_188 = arith.constant 8.100000e-01 : f32
    %394 = vector.broadcast %cst_188 : f32 to vector<18x18xf32>
    %395 = arith.addf %394, %393 : vector<18x18xf32>
    %396 = math.rsqrt %395 : vector<18x18xf32>
    %397 = arith.mulf %392, %396 : vector<18x18xf32>
    %398 = arith.subf %391, %390 : vector<18x18xf32>
    %399 = arith.mulf %398, %398 : vector<18x18xf32>
    %cst_189 = arith.constant 8.100000e-01 : f32
    %400 = vector.broadcast %cst_189 : f32 to vector<18x18xf32>
    %401 = arith.addf %400, %399 : vector<18x18xf32>
    %402 = math.rsqrt %401 : vector<18x18xf32>
    %403 = arith.mulf %398, %402 : vector<18x18xf32>
    %404 = arith.subf %397, %403 : vector<18x18xf32>
    %405 = arith.mulf %404, %404 : vector<18x18xf32>
    %cst_190 = arith.constant 1.000000e-01 : f32
    %406 = vector.broadcast %cst_190 : f32 to vector<18x18xf32>
    %407 = arith.addf %405, %406 : vector<18x18xf32>
    %408 = tpu.reciprocal %407 {approx = true} : vector<18x18xf32> -> vector<18x18xf32>
    %409 = vector.extract_strided_slice %408 {offsets = [2, 2], sizes = [16, 16], strides = [1, 1]} : vector<18x18xf32> to vector<16x16xf32>
    %410 = arith.addf %387, %409 : vector<16x16xf32>
    %411 = vector.extract_strided_slice %408 {offsets = [0, 0], sizes = [16, 16], strides = [1, 1]} : vector<18x18xf32> to vector<16x16xf32>
    %412 = arith.addf %410, %411 : vector<16x16xf32>
    %c1_191 = arith.constant 1 : index
    %c0_192 = arith.constant 0 : index
    %413 = vector.load %arg7[%c1_191, %c0_192] : memref<24x22xf32, #tpu.memory_space<vmem>>, vector<18x19xf32>
    %c3_193 = arith.constant 3 : index
    %c3_194 = arith.constant 3 : index
    %414 = vector.load %arg7[%c3_193, %c3_194] : memref<24x22xf32, #tpu.memory_space<vmem>>, vector<18x19xf32>
    %c1_195 = arith.constant 1 : index
    %c0_196 = arith.constant 0 : index
    %415 = vector.load %arg8[%c1_195, %c0_196] : memref<24x22xf32, #tpu.memory_space<vmem>>, vector<18x19xf32>
    %c3_197 = arith.constant 3 : index
    %c3_198 = arith.constant 3 : index
    %416 = vector.load %arg8[%c3_197, %c3_198] : memref<24x22xf32, #tpu.memory_space<vmem>>, vector<18x19xf32>
    %417 = arith.subf %414, %413 : vector<18x19xf32>
    %418 = arith.mulf %417, %417 : vector<18x19xf32>
    %cst_199 = arith.constant 8.100000e-01 : f32
    %419 = vector.broadcast %cst_199 : f32 to vector<18x19xf32>
    %420 = arith.addf %419, %418 : vector<18x19xf32>
    %421 = math.rsqrt %420 : vector<18x19xf32>
    %422 = arith.mulf %417, %421 : vector<18x19xf32>
    %423 = arith.subf %416, %415 : vector<18x19xf32>
    %424 = arith.mulf %423, %423 : vector<18x19xf32>
    %cst_200 = arith.constant 8.100000e-01 : f32
    %425 = vector.broadcast %cst_200 : f32 to vector<18x19xf32>
    %426 = arith.addf %425, %424 : vector<18x19xf32>
    %427 = math.rsqrt %426 : vector<18x19xf32>
    %428 = arith.mulf %423, %427 : vector<18x19xf32>
    %429 = arith.subf %422, %428 : vector<18x19xf32>
    %430 = arith.mulf %429, %429 : vector<18x19xf32>
    %cst_201 = arith.constant 1.000000e-01 : f32
    %431 = vector.broadcast %cst_201 : f32 to vector<18x19xf32>
    %432 = arith.addf %430, %431 : vector<18x19xf32>
    %433 = tpu.reciprocal %432 {approx = true} : vector<18x19xf32> -> vector<18x19xf32>
    %434 = vector.extract_strided_slice %433 {offsets = [2, 3], sizes = [16, 16], strides = [1, 1]} : vector<18x19xf32> to vector<16x16xf32>
    %435 = arith.addf %412, %434 : vector<16x16xf32>
    %436 = vector.extract_strided_slice %433 {offsets = [0, 0], sizes = [16, 16], strides = [1, 1]} : vector<18x19xf32> to vector<16x16xf32>
    %437 = arith.addf %435, %436 : vector<16x16xf32>
    %c0_202 = arith.constant 0 : index
    %c3_203 = arith.constant 3 : index
    %438 = vector.load %arg7[%c0_202, %c3_203] : memref<24x22xf32, #tpu.memory_space<vmem>>, vector<19x19xf32>
    %c3_204 = arith.constant 3 : index
    %c0_205 = arith.constant 0 : index
    %439 = vector.load %arg7[%c3_204, %c0_205] : memref<24x22xf32, #tpu.memory_space<vmem>>, vector<19x19xf32>
    %c0_206 = arith.constant 0 : index
    %c3_207 = arith.constant 3 : index
    %440 = vector.load %arg8[%c0_206, %c3_207] : memref<24x22xf32, #tpu.memory_space<vmem>>, vector<19x19xf32>
    %c3_208 = arith.constant 3 : index
    %c0_209 = arith.constant 0 : index
    %441 = vector.load %arg8[%c3_208, %c0_209] : memref<24x22xf32, #tpu.memory_space<vmem>>, vector<19x19xf32>
    %442 = arith.subf %439, %438 : vector<19x19xf32>
    %443 = arith.mulf %442, %442 : vector<19x19xf32>
    %cst_210 = arith.constant 8.100000e-01 : f32
    %444 = vector.broadcast %cst_210 : f32 to vector<19x19xf32>
    %445 = arith.addf %444, %443 : vector<19x19xf32>
    %446 = math.rsqrt %445 : vector<19x19xf32>
    %447 = arith.mulf %442, %446 : vector<19x19xf32>
    %448 = arith.subf %441, %440 : vector<19x19xf32>
    %449 = arith.mulf %448, %448 : vector<19x19xf32>
    %cst_211 = arith.constant 8.100000e-01 : f32
    %450 = vector.broadcast %cst_211 : f32 to vector<19x19xf32>
    %451 = arith.addf %450, %449 : vector<19x19xf32>
    %452 = math.rsqrt %451 : vector<19x19xf32>
    %453 = arith.mulf %448, %452 : vector<19x19xf32>
    %454 = arith.subf %447, %453 : vector<19x19xf32>
    %455 = arith.mulf %454, %454 : vector<19x19xf32>
    %cst_212 = arith.constant 1.000000e-01 : f32
    %456 = vector.broadcast %cst_212 : f32 to vector<19x19xf32>
    %457 = arith.addf %455, %456 : vector<19x19xf32>
    %458 = tpu.reciprocal %457 {approx = true} : vector<19x19xf32> -> vector<19x19xf32>
    %459 = vector.extract_strided_slice %458 {offsets = [3, 0], sizes = [16, 16], strides = [1, 1]} : vector<19x19xf32> to vector<16x16xf32>
    %460 = arith.addf %437, %459 : vector<16x16xf32>
    %461 = vector.extract_strided_slice %458 {offsets = [0, 3], sizes = [16, 16], strides = [1, 1]} : vector<19x19xf32> to vector<16x16xf32>
    %462 = arith.addf %460, %461 : vector<16x16xf32>
    %c0_213 = arith.constant 0 : index
    %c3_214 = arith.constant 3 : index
    %463 = vector.load %arg7[%c0_213, %c3_214] : memref<24x22xf32, #tpu.memory_space<vmem>>, vector<19x18xf32>
    %c3_215 = arith.constant 3 : index
    %c1_216 = arith.constant 1 : index
    %464 = vector.load %arg7[%c3_215, %c1_216] : memref<24x22xf32, #tpu.memory_space<vmem>>, vector<19x18xf32>
    %c0_217 = arith.constant 0 : index
    %c3_218 = arith.constant 3 : index
    %465 = vector.load %arg8[%c0_217, %c3_218] : memref<24x22xf32, #tpu.memory_space<vmem>>, vector<19x18xf32>
    %c3_219 = arith.constant 3 : index
    %c1_220 = arith.constant 1 : index
    %466 = vector.load %arg8[%c3_219, %c1_220] : memref<24x22xf32, #tpu.memory_space<vmem>>, vector<19x18xf32>
    %467 = arith.subf %464, %463 : vector<19x18xf32>
    %468 = arith.mulf %467, %467 : vector<19x18xf32>
    %cst_221 = arith.constant 8.100000e-01 : f32
    %469 = vector.broadcast %cst_221 : f32 to vector<19x18xf32>
    %470 = arith.addf %469, %468 : vector<19x18xf32>
    %471 = math.rsqrt %470 : vector<19x18xf32>
    %472 = arith.mulf %467, %471 : vector<19x18xf32>
    %473 = arith.subf %466, %465 : vector<19x18xf32>
    %474 = arith.mulf %473, %473 : vector<19x18xf32>
    %cst_222 = arith.constant 8.100000e-01 : f32
    %475 = vector.broadcast %cst_222 : f32 to vector<19x18xf32>
    %476 = arith.addf %475, %474 : vector<19x18xf32>
    %477 = math.rsqrt %476 : vector<19x18xf32>
    %478 = arith.mulf %473, %477 : vector<19x18xf32>
    %479 = arith.subf %472, %478 : vector<19x18xf32>
    %480 = arith.mulf %479, %479 : vector<19x18xf32>
    %cst_223 = arith.constant 1.000000e-01 : f32
    %481 = vector.broadcast %cst_223 : f32 to vector<19x18xf32>
    %482 = arith.addf %480, %481 : vector<19x18xf32>
    %483 = tpu.reciprocal %482 {approx = true} : vector<19x18xf32> -> vector<19x18xf32>
    %484 = vector.extract_strided_slice %483 {offsets = [3, 0], sizes = [16, 16], strides = [1, 1]} : vector<19x18xf32> to vector<16x16xf32>
    %485 = arith.addf %462, %484 : vector<16x16xf32>
    %486 = vector.extract_strided_slice %483 {offsets = [0, 2], sizes = [16, 16], strides = [1, 1]} : vector<19x18xf32> to vector<16x16xf32>
    %487 = arith.addf %485, %486 : vector<16x16xf32>
    %c0_224 = arith.constant 0 : index
    %c3_225 = arith.constant 3 : index
    %488 = vector.load %arg7[%c0_224, %c3_225] : memref<24x22xf32, #tpu.memory_space<vmem>>, vector<19x17xf32>
    %c3_226 = arith.constant 3 : index
    %c2_227 = arith.constant 2 : index
    %489 = vector.load %arg7[%c3_226, %c2_227] : memref<24x22xf32, #tpu.memory_space<vmem>>, vector<19x17xf32>
    %c0_228 = arith.constant 0 : index
    %c3_229 = arith.constant 3 : index
    %490 = vector.load %arg8[%c0_228, %c3_229] : memref<24x22xf32, #tpu.memory_space<vmem>>, vector<19x17xf32>
    %c3_230 = arith.constant 3 : index
    %c2_231 = arith.constant 2 : index
    %491 = vector.load %arg8[%c3_230, %c2_231] : memref<24x22xf32, #tpu.memory_space<vmem>>, vector<19x17xf32>
    %492 = arith.subf %489, %488 : vector<19x17xf32>
    %493 = arith.mulf %492, %492 : vector<19x17xf32>
    %cst_232 = arith.constant 8.100000e-01 : f32
    %494 = vector.broadcast %cst_232 : f32 to vector<19x17xf32>
    %495 = arith.addf %494, %493 : vector<19x17xf32>
    %496 = math.rsqrt %495 : vector<19x17xf32>
    %497 = arith.mulf %492, %496 : vector<19x17xf32>
    %498 = arith.subf %491, %490 : vector<19x17xf32>
    %499 = arith.mulf %498, %498 : vector<19x17xf32>
    %cst_233 = arith.constant 8.100000e-01 : f32
    %500 = vector.broadcast %cst_233 : f32 to vector<19x17xf32>
    %501 = arith.addf %500, %499 : vector<19x17xf32>
    %502 = math.rsqrt %501 : vector<19x17xf32>
    %503 = arith.mulf %498, %502 : vector<19x17xf32>
    %504 = arith.subf %497, %503 : vector<19x17xf32>
    %505 = arith.mulf %504, %504 : vector<19x17xf32>
    %cst_234 = arith.constant 1.000000e-01 : f32
    %506 = vector.broadcast %cst_234 : f32 to vector<19x17xf32>
    %507 = arith.addf %505, %506 : vector<19x17xf32>
    %508 = tpu.reciprocal %507 {approx = true} : vector<19x17xf32> -> vector<19x17xf32>
    %509 = vector.extract_strided_slice %508 {offsets = [3, 0], sizes = [16, 16], strides = [1, 1]} : vector<19x17xf32> to vector<16x16xf32>
    %510 = arith.addf %487, %509 : vector<16x16xf32>
    %511 = vector.extract_strided_slice %508 {offsets = [0, 1], sizes = [16, 16], strides = [1, 1]} : vector<19x17xf32> to vector<16x16xf32>
    %512 = arith.addf %510, %511 : vector<16x16xf32>
    %c0_235 = arith.constant 0 : index
    %c3_236 = arith.constant 3 : index
    %513 = vector.load %arg7[%c0_235, %c3_236] : memref<24x22xf32, #tpu.memory_space<vmem>>, vector<19x16xf32>
    %c3_237 = arith.constant 3 : index
    %c3_238 = arith.constant 3 : index
    %514 = vector.load %arg7[%c3_237, %c3_238] : memref<24x22xf32, #tpu.memory_space<vmem>>, vector<19x16xf32>
    %c0_239 = arith.constant 0 : index
    %c3_240 = arith.constant 3 : index
    %515 = vector.load %arg8[%c0_239, %c3_240] : memref<24x22xf32, #tpu.memory_space<vmem>>, vector<19x16xf32>
    %c3_241 = arith.constant 3 : index
    %c3_242 = arith.constant 3 : index
    %516 = vector.load %arg8[%c3_241, %c3_242] : memref<24x22xf32, #tpu.memory_space<vmem>>, vector<19x16xf32>
    %517 = arith.subf %514, %513 : vector<19x16xf32>
    %518 = arith.mulf %517, %517 : vector<19x16xf32>
    %cst_243 = arith.constant 8.100000e-01 : f32
    %519 = vector.broadcast %cst_243 : f32 to vector<19x16xf32>
    %520 = arith.addf %519, %518 : vector<19x16xf32>
    %521 = math.rsqrt %520 : vector<19x16xf32>
    %522 = arith.mulf %517, %521 : vector<19x16xf32>
    %523 = arith.subf %516, %515 : vector<19x16xf32>
    %524 = arith.mulf %523, %523 : vector<19x16xf32>
    %cst_244 = arith.constant 8.100000e-01 : f32
    %525 = vector.broadcast %cst_244 : f32 to vector<19x16xf32>
    %526 = arith.addf %525, %524 : vector<19x16xf32>
    %527 = math.rsqrt %526 : vector<19x16xf32>
    %528 = arith.mulf %523, %527 : vector<19x16xf32>
    %529 = arith.subf %522, %528 : vector<19x16xf32>
    %530 = arith.mulf %529, %529 : vector<19x16xf32>
    %cst_245 = arith.constant 1.000000e-01 : f32
    %531 = vector.broadcast %cst_245 : f32 to vector<19x16xf32>
    %532 = arith.addf %530, %531 : vector<19x16xf32>
    %533 = tpu.reciprocal %532 {approx = true} : vector<19x16xf32> -> vector<19x16xf32>
    %534 = vector.extract_strided_slice %533 {offsets = [3, 0], sizes = [16, 16], strides = [1, 1]} : vector<19x16xf32> to vector<16x16xf32>
    %535 = arith.addf %512, %534 : vector<16x16xf32>
    %536 = vector.extract_strided_slice %533 {offsets = [0, 0], sizes = [16, 16], strides = [1, 1]} : vector<19x16xf32> to vector<16x16xf32>
    %537 = arith.addf %535, %536 : vector<16x16xf32>
    %c0_246 = arith.constant 0 : index
    %c2_247 = arith.constant 2 : index
    %538 = vector.load %arg7[%c0_246, %c2_247] : memref<24x22xf32, #tpu.memory_space<vmem>>, vector<19x17xf32>
    %c3_248 = arith.constant 3 : index
    %c3_249 = arith.constant 3 : index
    %539 = vector.load %arg7[%c3_248, %c3_249] : memref<24x22xf32, #tpu.memory_space<vmem>>, vector<19x17xf32>
    %c0_250 = arith.constant 0 : index
    %c2_251 = arith.constant 2 : index
    %540 = vector.load %arg8[%c0_250, %c2_251] : memref<24x22xf32, #tpu.memory_space<vmem>>, vector<19x17xf32>
    %c3_252 = arith.constant 3 : index
    %c3_253 = arith.constant 3 : index
    %541 = vector.load %arg8[%c3_252, %c3_253] : memref<24x22xf32, #tpu.memory_space<vmem>>, vector<19x17xf32>
    %542 = arith.subf %539, %538 : vector<19x17xf32>
    %543 = arith.mulf %542, %542 : vector<19x17xf32>
    %cst_254 = arith.constant 8.100000e-01 : f32
    %544 = vector.broadcast %cst_254 : f32 to vector<19x17xf32>
    %545 = arith.addf %544, %543 : vector<19x17xf32>
    %546 = math.rsqrt %545 : vector<19x17xf32>
    %547 = arith.mulf %542, %546 : vector<19x17xf32>
    %548 = arith.subf %541, %540 : vector<19x17xf32>
    %549 = arith.mulf %548, %548 : vector<19x17xf32>
    %cst_255 = arith.constant 8.100000e-01 : f32
    %550 = vector.broadcast %cst_255 : f32 to vector<19x17xf32>
    %551 = arith.addf %550, %549 : vector<19x17xf32>
    %552 = math.rsqrt %551 : vector<19x17xf32>
    %553 = arith.mulf %548, %552 : vector<19x17xf32>
    %554 = arith.subf %547, %553 : vector<19x17xf32>
    %555 = arith.mulf %554, %554 : vector<19x17xf32>
    %cst_256 = arith.constant 1.000000e-01 : f32
    %556 = vector.broadcast %cst_256 : f32 to vector<19x17xf32>
    %557 = arith.addf %555, %556 : vector<19x17xf32>
    %558 = tpu.reciprocal %557 {approx = true} : vector<19x17xf32> -> vector<19x17xf32>
    %559 = vector.extract_strided_slice %558 {offsets = [3, 1], sizes = [16, 16], strides = [1, 1]} : vector<19x17xf32> to vector<16x16xf32>
    %560 = arith.addf %537, %559 : vector<16x16xf32>
    %561 = vector.extract_strided_slice %558 {offsets = [0, 0], sizes = [16, 16], strides = [1, 1]} : vector<19x17xf32> to vector<16x16xf32>
    %562 = arith.addf %560, %561 : vector<16x16xf32>
    %c0_257 = arith.constant 0 : index
    %c1_258 = arith.constant 1 : index
    %563 = vector.load %arg7[%c0_257, %c1_258] : memref<24x22xf32, #tpu.memory_space<vmem>>, vector<19x18xf32>
    %c3_259 = arith.constant 3 : index
    %c3_260 = arith.constant 3 : index
    %564 = vector.load %arg7[%c3_259, %c3_260] : memref<24x22xf32, #tpu.memory_space<vmem>>, vector<19x18xf32>
    %c0_261 = arith.constant 0 : index
    %c1_262 = arith.constant 1 : index
    %565 = vector.load %arg8[%c0_261, %c1_262] : memref<24x22xf32, #tpu.memory_space<vmem>>, vector<19x18xf32>
    %c3_263 = arith.constant 3 : index
    %c3_264 = arith.constant 3 : index
    %566 = vector.load %arg8[%c3_263, %c3_264] : memref<24x22xf32, #tpu.memory_space<vmem>>, vector<19x18xf32>
    %567 = arith.subf %564, %563 : vector<19x18xf32>
    %568 = arith.mulf %567, %567 : vector<19x18xf32>
    %cst_265 = arith.constant 8.100000e-01 : f32
    %569 = vector.broadcast %cst_265 : f32 to vector<19x18xf32>
    %570 = arith.addf %569, %568 : vector<19x18xf32>
    %571 = math.rsqrt %570 : vector<19x18xf32>
    %572 = arith.mulf %567, %571 : vector<19x18xf32>
    %573 = arith.subf %566, %565 : vector<19x18xf32>
    %574 = arith.mulf %573, %573 : vector<19x18xf32>
    %cst_266 = arith.constant 8.100000e-01 : f32
    %575 = vector.broadcast %cst_266 : f32 to vector<19x18xf32>
    %576 = arith.addf %575, %574 : vector<19x18xf32>
    %577 = math.rsqrt %576 : vector<19x18xf32>
    %578 = arith.mulf %573, %577 : vector<19x18xf32>
    %579 = arith.subf %572, %578 : vector<19x18xf32>
    %580 = arith.mulf %579, %579 : vector<19x18xf32>
    %cst_267 = arith.constant 1.000000e-01 : f32
    %581 = vector.broadcast %cst_267 : f32 to vector<19x18xf32>
    %582 = arith.addf %580, %581 : vector<19x18xf32>
    %583 = tpu.reciprocal %582 {approx = true} : vector<19x18xf32> -> vector<19x18xf32>
    %584 = vector.extract_strided_slice %583 {offsets = [3, 2], sizes = [16, 16], strides = [1, 1]} : vector<19x18xf32> to vector<16x16xf32>
    %585 = arith.addf %562, %584 : vector<16x16xf32>
    %586 = vector.extract_strided_slice %583 {offsets = [0, 0], sizes = [16, 16], strides = [1, 1]} : vector<19x18xf32> to vector<16x16xf32>
    %587 = arith.addf %585, %586 : vector<16x16xf32>
    %c0_268 = arith.constant 0 : index
    %c0_269 = arith.constant 0 : index
    %588 = vector.load %arg7[%c0_268, %c0_269] : memref<24x22xf32, #tpu.memory_space<vmem>>, vector<19x19xf32>
    %c3_270 = arith.constant 3 : index
    %c3_271 = arith.constant 3 : index
    %589 = vector.load %arg7[%c3_270, %c3_271] : memref<24x22xf32, #tpu.memory_space<vmem>>, vector<19x19xf32>
    %c0_272 = arith.constant 0 : index
    %c0_273 = arith.constant 0 : index
    %590 = vector.load %arg8[%c0_272, %c0_273] : memref<24x22xf32, #tpu.memory_space<vmem>>, vector<19x19xf32>
    %c3_274 = arith.constant 3 : index
    %c3_275 = arith.constant 3 : index
    %591 = vector.load %arg8[%c3_274, %c3_275] : memref<24x22xf32, #tpu.memory_space<vmem>>, vector<19x19xf32>
    %592 = arith.subf %589, %588 : vector<19x19xf32>
    %593 = arith.mulf %592, %592 : vector<19x19xf32>
    %cst_276 = arith.constant 8.100000e-01 : f32
    %594 = vector.broadcast %cst_276 : f32 to vector<19x19xf32>
    %595 = arith.addf %594, %593 : vector<19x19xf32>
    %596 = math.rsqrt %595 : vector<19x19xf32>
    %597 = arith.mulf %592, %596 : vector<19x19xf32>
    %598 = arith.subf %591, %590 : vector<19x19xf32>
    %599 = arith.mulf %598, %598 : vector<19x19xf32>
    %cst_277 = arith.constant 8.100000e-01 : f32
    %600 = vector.broadcast %cst_277 : f32 to vector<19x19xf32>
    %601 = arith.addf %600, %599 : vector<19x19xf32>
    %602 = math.rsqrt %601 : vector<19x19xf32>
    %603 = arith.mulf %598, %602 : vector<19x19xf32>
    %604 = arith.subf %597, %603 : vector<19x19xf32>
    %605 = arith.mulf %604, %604 : vector<19x19xf32>
    %cst_278 = arith.constant 1.000000e-01 : f32
    %606 = vector.broadcast %cst_278 : f32 to vector<19x19xf32>
    %607 = arith.addf %605, %606 : vector<19x19xf32>
    %608 = tpu.reciprocal %607 {approx = true} : vector<19x19xf32> -> vector<19x19xf32>
    %609 = vector.extract_strided_slice %608 {offsets = [3, 3], sizes = [16, 16], strides = [1, 1]} : vector<19x19xf32> to vector<16x16xf32>
    %610 = arith.addf %587, %609 : vector<16x16xf32>
    %611 = vector.extract_strided_slice %608 {offsets = [0, 0], sizes = [16, 16], strides = [1, 1]} : vector<19x19xf32> to vector<16x16xf32>
    %612 = arith.addf %610, %611 : vector<16x16xf32>
    %cst_279 = arith.constant 0.00204081624 : f32
    %613 = vector.broadcast %cst_279 : f32 to vector<16x16xf32>
    %614 = arith.mulf %613, %612 : vector<16x16xf32>
    %cst_280 = arith.constant 0.979591846 : f32
    %615 = vector.broadcast %cst_280 : f32 to vector<16x16xf32>
    %616 = arith.subf %615, %614 : vector<16x16xf32>
    %c0_281 = arith.constant 0 : index
    %c0_282 = arith.constant 0 : index
    %c0_283 = arith.constant 0 : index
    %c0_284 = arith.constant 0 : index
    %617 = vector.load %arg6[%c0_281, %c0_282, %c0_283, %c0_284] : memref<1x1x16x16xf32, #tpu.memory_space<vmem>>, vector<1x1x16x16xf32>
    %618 = vector.shape_cast %617 : vector<1x1x16x16xf32> to vector<16x16xf32>
    %619 = vector.shape_cast %616 : vector<16x16xf32> to vector<1x1x16x16xf32>
    tpu.vector_store %arg6[%c0_281, %c0_282, %c0_283, %c0_284], %619 {strides = array<i32>} : memref<1x1x16x16xf32, #tpu.memory_space<vmem>>, vector<1x1x16x16xf32>,
    return
  }
  func.func @transform_0(%arg0: i32, %arg1: i32) -> (i32, i32, i32) {
    %c0_i32 = arith.constant 0 : i32
    %c0_i32_0 = arith.constant 0 : i32
    return %arg0, %arg1, %c0_i32 : i32, i32, i32
  }
  func.func @transform_1(%arg0: i32, %arg1: i32) -> (i32, i32, i32) {
    %c1_i32 = arith.constant 1 : i32
    %0 = arith.addi %arg1, %c1_i32 : i32
    %c2_i32 = arith.constant 2 : i32
    %1 = arith.muli %0, %c2_i32 : i32
    %c0_i32 = arith.constant 0 : i32
    %c0_i32_0 = arith.constant 0 : i32
    return %arg0, %1, %c0_i32 : i32, i32, i32
  }
  func.func @transform_2(%arg0: i32, %arg1: i32) -> (i32, i32, i32) {
    %c0_i32 = arith.constant 0 : i32
    %c0_i32_0 = arith.constant 0 : i32
    return %arg0, %arg1, %c0_i32 : i32, i32, i32
  }
  func.func @transform_3(%arg0: i32, %arg1: i32) -> (i32, i32, i32) {
    %c1_i32 = arith.constant 1 : i32
    %0 = arith.addi %arg1, %c1_i32 : i32
    %c2_i32 = arith.constant 2 : i32
    %1 = arith.muli %0, %c2_i32 : i32
    %c0_i32 = arith.constant 0 : i32
    %c0_i32_0 = arith.constant 0 : i32
    return %arg0, %1, %c0_i32 : i32, i32, i32
  }
  func.func @transform_4(%arg0: i32, %arg1: i32) -> (i32, i32, i32, i32) {
    %c0_i32 = arith.constant 0 : i32
    %c0_i32_0 = arith.constant 0 : i32
    %c0_i32_1 = arith.constant 0 : i32
    return %arg0, %c0_i32, %arg1, %c0_i32_0 : i32, i32, i32, i32
  }
}

</mosaic_0001>

<bundles_post_ra>
// kernel: tpu_custom_call.1
= control target key start
LH: loop header
LB: loop body
LE: loop exit
PB: predicated region body
PF: predicated region fallthrough
CT: control target
= control target key end

     0   :  { %9 = vsyncpa [#allocation5], 0  ;;  %s4863_s0 = inlined_call_operand.vmem [shape: f32[2,24,22], index: 0, kind: input, shape index: {}]   ;;  %s4864_s1 = inlined_call_operand.vmem [shape: f32[2,24,22], index: 1, kind: input, shape index: {}]   ;;  %s4865_s2 = inlined_call_operand.vmem [shape: f32[2,24,22], index: 2, kind: input, shape index: {}]   ;;  %s4866_s3 = inlined_call_operand.vmem [shape: f32[2,24,22], index: 3, kind: input, shape index: {}]   ;;  %s4867_s4 = inlined_call_operand.hbm [shape: f32[2,1,16,16], index: 4, kind: output, shape index: {}]  }
   0x1   :  { %11 = vsyncpa [#allocation5 + $0x1], 0  ;;  %s3127_s15 = smov 0   ;;  %s3129_s16 = smov 0  }
   0x2   :  { %s3131_s17 = smov 0   ;;  %s3133_s18 = smov 0  }
   0x3   :  { %s3135_s19 = smov 0   ;;  %s3137_s20 = smov 0  }
   0x4 LB: > { %s2489_s21 = sadd.s32 4294967295, %s3089_s20   ;;  %s2490_s22 = sadd.s32 4294967294, %s3089_s20   ;;  %s3089_s20 = sphi %s3137_s20, %s17_s20   ;;  %s3085_s19 = sphi %s3135_s19, %s4944_s19   ;;  %s3081_s18 = sphi %s3133_s18, %s4943_s18   ;;  %s3077_s17 = sphi %s3131_s17, %s4942_s17   ;;  %s3073_s16 = sphi %s3129_s16, %s4941_s16   ;;  %s3069_s15 = sphi %s3127_s15, %s4940_s15  }
   0x5   : > { %s29_s23 = sadd.s32 1, %s3085_s19  ;;  %s158_s24 = sadd.s32 1, %s3077_s17 }
   0x6   : > { %p31_p0 = scmp.ge.s32.totalorder %s29_s23, 2  ;;  %p168_p1 = scmp.ne.s32.totalorder %s3077_s17, %s3073_s16 }
   0x7   : > { %p169_p2 = scmp.eq.s32.totalorder %s2489_s21, 1  ;;  %p174_p3 = scmp.ne.s32.totalorder %s3073_s16, %s3069_s15 }
   0x8   : > { %s4946_s23 = smov (%p31_p0, %s29_s23), 0  ;;  %p175_p5 = scmp.eq.s32.totalorder %s2490_s22, 1 }
   0x9   : > { %p3167_p4 = por %p169_p2, %p168_p1  ;;  %s153_s26 = ssub.s32 %s3085_s19, %s4946_s23 }
   0xa   : > { %p2493_p6 = scmp.ge.s32.totalorder %s3089_s20, 1  ;;  %p156_p7 = scmp.eq.s32.totalorder %s153_s26, 0 }
   0xb   : > { %p3174_p8 = por %p175_p5, %p174_p3  ;;  %p265_p9 = scmp.lt.s32.totalorder %s3089_s20, 3 }
   0xc   : > { %s3180_s28 = scalar_select %p156_p7, %s3077_s17, %s158_s24  }
   0xd   : > { %p266_p10 = pnand %p2493_p6, %p265_p9 }
   0xf   : > { %269 = sbr.rel (%p266_p10) target bundleno = 812 (0x32c), region = 36 }
  0x16   : > { %p337_p11 = scmp.lt.s32.totalorder %s3081_s18, 1  ;;  %vm395_vm0 = vcmask 179200   ;;  %s3091_s26 = smov 1   ;;  %vm659_vm1 = vcmask 1046528   ;;  %vm1240_vm2 = vcmask 1045504   ;;  %vm1821_vm3 = vcmask 1044480  }
  0x17   : > { %s3094_s5 = smov 125   ;;  %s3095_s6 = smov 126   ;;  %vm2337_vm4 = vcmask 130048  }
  0x18   : > { %s338_s29 = scalar_select %p337_p11, %s3081_s18, 1 }
  0x19   : > { %s3097_s8 = smov 4   ;;  %s3098_s9 = smov 124  }
  0x1a   : > { %s2509_s30 = smul.u32 24, %s338_s29  ;;  %s3092_s29 = smov 2  }
  0x1c   : > { %s374_s7 = scalar_lea.vmem %s4865_s2, %s2509_s30  ;;  %s344_s10 = scalar_lea.vmem %s4863_s0, %s2509_s30 }
  0x1d   : > { %v400_v0 = vld [vmem:[%s374_s7] sm:$0xff]  ;;  %v401_v1 = vld [vmem:[%s374_s7 + $0x8] sm:$0xff]  ;;  %s2505_s11 = sadd.s32 16, %s2509_s30  ;;  %s3093_s30 = smov 3  }
  0x1e   : > { %v393_v2 = vld [vmem:[%s344_s10] sm:$0xff]  ;;  %402 = vst.msk [vmem:[#allocation3] sm:$0xff] %vm395_vm0, %v400_v0  ;;  %403 = vst.msk [vmem:[#allocation3 + $0x8] sm:$0xff] %vm395_vm0, %v401_v1  ;;  %v394_v3 = vld [vmem:[%s344_s10 + $0x8] sm:$0xff]  ;;  %s389_s14 = scalar_lea.vmem %s4866_s3, %s2505_s11  ;;  %s359_s24 = scalar_lea.vmem %s4864_s1, %s2505_s11 }
  0x1f   : > { %396 = vst.msk [vmem:[#allocation2] sm:$0xff] %vm395_vm0, %v393_v2  ;;  %397 = vst.msk [vmem:[#allocation2 + $0x8] sm:$0xff] %vm395_vm0, %v394_v3  ;;  %v404_v4 = vld [vmem:[%s389_s14] sm:$0xff]  ;;  %s3096_s7 = smov 127   ;;  %s329_s10 = sand.u32 1, %s3073_s16  }
  0x20   : > { %v398_v5 = vld [vmem:[%s359_s24] sm:$0xff]  ;;  %405 = vst.msk [vmem:[#allocation3 + $0x10] sm:$0xff] %vm395_vm0, %v404_v4  ;;  %s2494_s11 = sshll.u32 %s329_s10, 4  ;;  %s2508_s14 = sshll.u32 %s3081_s18, 8 }
  0x21   : > { %399 = vst.msk [vmem:[#allocation2 + $0x10] sm:$0xff] %vm395_vm0, %v398_v5  ;;  %s331_s12 = scalar_lea.vmem [#allocation4], %s2494_s11  ;;  %s4815_s24 = scalar_lea.hbm %s4867_s4, %s2508_s14 }
  0x22   : > { %s2356_s13 = sshll.u32 %s331_s12, 4  ;;  %s3099_s18 = smov [#allocation4]   ;;  %s4810_s13 = int_to_ptr.vmem [resolvable:$true] %s2356_s13 }
  0x25   : > { %v3202_v6 = vld [vmem:[#allocation3 + $0x3] sm:$0xff] }
  0x26   : > { %v3204_v7 = vld [vmem:[#allocation3 + $0x2] sm:$0xff]  ;;  %430 = vrot.lane.b32.xlu1 %v3202_v6, %s3091_s26  ;;  %v3208_v8 = vld [vmem:[#allocation2 + $0x3] sm:$0xff] }
  0x27   : > { %v3210_v9 = vld [vmem:[#allocation2 + $0x2] sm:$0xff]  ;;  %v864_v10 = vsub.f32 %v3202_v6, %v3204_v7  ;;  %412 = vrot.lane.b32.xlu0 %v3208_v8, %s3091_s26  ;;  %v3226_v16 = vld [vmem:[#allocation3 + $0x12] sm:$0x1]  ;;  %v3234_v21 = vld [vmem:[#allocation3 + $0x13] sm:$0x1] }
  0x28   : > { %v3216_v11 = vld [vmem:[#allocation3 + $0xb] sm:$0xff]  ;;  %v3218_v12 = vld [vmem:[#allocation2 + $0xb] sm:$0xff]  ;;  %v849_v14 = vsub.f32 %v3208_v8, %v3210_v9  ;;  %v3232_v20 = vld [vmem:[#allocation2 + $0x13] sm:$0x1]  ;;  %v866_v26 = vsub.f32 %v3234_v21, %v3226_v16 }
  0x29   : > { %v3220_v13 = vld [vmem:[#allocation2 + $0xa] sm:$0xff]  ;;  %v3224_v15 = vld [vmem:[#allocation2 + $0x12] sm:$0x1]  ;;  %v3228_v17 = vld [vmem:[#allocation3 + $0xa] sm:$0xff]  ;;  %v867_v19 = vmul.f32 %v864_v10, %v864_v10 }
  0x2a   : > { %v850_v18 = vsub.f32 %v3218_v12, %v3220_v13  ;;  %v865_v22 = vsub.f32 %v3216_v11, %v3228_v17  ;;  %v852_v23 = vmul.f32 %v849_v14, %v849_v14  ;;  %432 = vrot.lane.b32.xlu1 %v3216_v11, %s3091_s26  ;;  %v851_v24 = vsub.f32 %v3232_v20, %v3224_v15  ;;  %v3340_v1 = vld [vmem:[#allocation2 + $0x1] sm:$0xff]  ;;  %v3342_v2 = vld [vmem:[#allocation2 + $0x9] sm:$0xff]  ;;  %v3348_v3 = vld [vmem:[#allocation2 + $0x11] sm:$0x3] }
  0x2b   : > { %v870_v27 = vadd.f32 0.81, %v867_v19  ;;  %466 = vrot.lane.b32.xlu0 %v3208_v8, %s3092_s29  ;;  %v869_v31 = vmul.f32 %v866_v26, %v866_v26  ;;  %v3350_v4 = vld [vmem:[#allocation3 + $0x1] sm:$0xff]  ;;  %v3356_v5 = vld [vmem:[#allocation3 + $0x9] sm:$0xff] }
  0x2c   : > { %v853_v25 = vmul.f32 %v850_v18, %v850_v18  ;;  %v868_v28 = vmul.f32 %v865_v22, %v865_v22  ;;  %v854_v29 = vmul.f32 %v851_v24, %v851_v24  ;;  %v855_v35 = vadd.f32 0.81, %v852_v23 }
  0x2d   : > { %2577 = vrsqrt.f32 %v870_v27  ;;  %v872_v34 = vadd.f32 0.81, %v869_v31 }
  0x2e   : > { %v856_v30 = vadd.f32 0.81, %v853_v25  ;;  %v871_v32 = vadd.f32 0.81, %v868_v28  ;;  %468 = vrot.lane.b32.xlu1 %v3218_v12, %s3092_s29  ;;  %v857_v33 = vadd.f32 0.81, %v854_v29 }
  0x2f   : > { %482 = vrot.lane.b32.xlu0 %v3202_v6, %s3092_s29 }
  0x30   : > { %2579 = vrsqrt.f32 %v856_v30 }
  0x31   : > { %2581 = vrsqrt.f32 %v871_v32 }
  0x32   : > { %2583 = vrsqrt.f32 %v857_v33  ;;  %484 = vrot.lane.b32.xlu1 %v3216_v11, %s3092_s29 }
  0x33   : > { %2585 = vrsqrt.f32 %v872_v34  ;;  %524 = vrot.lane.b32.xlu0 %v3208_v8, %s3093_s30 }
  0x34   : > { %2587 = vrsqrt.f32 %v855_v35 }
  0x36   : > { %526 = vrot.lane.b32.xlu1 %v3218_v12, %s3093_s30 }
  0x37   : > { %v2578_v36 = vpop.eup %2577  ;;  %414 = vrot.lane.b32.xlu0 %v3218_v12, %s3091_s26 }
  0x38   : > { %v876_v47 = vmul.f32 %v2578_v36, %v864_v10 }
  0x3a   : > { %v2580_v37 = vpop.eup %2579  ;;  %542 = vrot.lane.b32.xlu1 %v3216_v11, %s3093_s30 }
  0x3b   : > { %v2582_v38 = vpop.eup %2581  ;;  %540 = vrot.lane.b32.xlu0 %v3202_v6, %s3093_s30  ;;  %v862_v42 = vmul.f32 %v2580_v37, %v850_v18 }
  0x3c   : > { %v2584_v39 = vpop.eup %2583  ;;  %v877_v43 = vmul.f32 %v2582_v38, %v865_v22 }
  0x3d   : > { %v2586_v40 = vpop.eup %2585  ;;  %v863_v44 = vmul.f32 %v2584_v39, %v851_v24 }
  0x3e   : > { %v2588_v41 = vpop.eup %2587  ;;  %595 = vrot.lane.b32.xlu1 %v3220_v13, %s3094_s5  ;;  %v878_v45 = vmul.f32 %v2586_v40, %v866_v26  ;;  %v880_v48 = vsub.f32 %v862_v42, %v877_v43 }
  0x3f   : > { %593 = vrot.lane.b32.xlu0 %v3210_v9, %s3094_s5  ;;  %v861_v46 = vmul.f32 %v2588_v41, %v849_v14 }
  0x40   : > { %v881_v49 = vsub.f32 %v863_v44, %v878_v45  ;;  %v883_v51 = vmul.f32 %v880_v48, %v880_v48 }
  0x41   : > { %v879_v50 = vsub.f32 %v861_v46, %v876_v47 }
  0x42   : > { %620 = vrot.lane.b32.xlu1 %v3204_v7, %s3094_s5  ;;  %v884_v52 = vmul.f32 %v881_v49, %v881_v49  ;;  %v886_v54 = vadd.f32 0.1, %v883_v51 }
  0x43   : > { %597 = vrot.lane.b32.xlu0 %v3224_v15, %s3094_s5  ;;  %v882_v53 = vmul.f32 %v879_v50, %v879_v50 }
  0x44   : > { %v887_v55 = vadd.f32 0.1, %v884_v52  ;;  %2589 = vrcp.f32 %v886_v54 }
  0x45   : > { %v885_v56 = vadd.f32 0.1, %v882_v53 }
  0x46   : > { %624 = vrot.lane.b32.xlu1 %v3226_v16, %s3094_s5  ;;  %2591 = vrcp.f32 %v887_v55 }
  0x47   : > { %622 = vrot.lane.b32.xlu0 %v3228_v17, %s3094_s5  ;;  %2593 = vrcp.f32 %v885_v56 }
  0x4a   : > { %683 = vrot.lane.b32.xlu1 %v3220_v13, %s3095_s6 }
  0x4b   : > { %681 = vrot.lane.b32.xlu0 %v3210_v9, %s3095_s6 }
  0x4e   : > { %705 = vrot.lane.b32.xlu1 %v3204_v7, %s3095_s6  ;;  %v2590_v57 = vpop.eup %2589 }
  0x4f   : > { %685 = vrot.lane.b32.xlu0 %v3224_v15, %s3095_s6  ;;  %v895_v60 = vrot.slane %v2590_v57, 1 }
  0x50   : > { %v2592_v58 = vpop.eup %2591 }
  0x51   : > { %v2594_v59 = vpop.eup %2593  ;;  %v897_v61 = vrot.slane %v2592_v58, 1 }
  0x52   : > { %709 = vrot.lane.b32.xlu1 %v3226_v16, %s3095_s6  ;;  %v894_v62 = vrot.slane %v2594_v59, 1 }
  0x53   : > { %707 = vrot.lane.b32.xlu0 %v3228_v17, %s3095_s6  ;;  %v898_v63 = vsel %vm659_vm1, %v895_v60, %v897_v61 }
  0x54   : > { %v896_v0 = vsel %vm659_vm1, %v894_v62, %v895_v60 }
  0x56   : > { %767 = vrot.lane.b32.xlu1 %v3220_v13, %s3096_s7 }
  0x57   : > { %765 = vrot.lane.b32.xlu0 %v3210_v9, %s3096_s7 }
  0x5a   : > { %789 = vrot.lane.b32.xlu1 %v3204_v7, %s3096_s7 }
  0x5b   : > { %769 = vrot.lane.b32.xlu0 %v3224_v15, %s3096_s7 }
  0x5e   : > { %793 = vrot.lane.b32.xlu1 %v3226_v16, %s3096_s7 }
  0x5f   : > { %791 = vrot.lane.b32.xlu0 %v3228_v17, %s3096_s7 }
  0x62   : > { %901 = vrot.lane.b32.xlu1 %v898_v63, %s3091_s26 }
  0x63   : > { %899 = vrot.lane.b32.xlu0 %v896_v0, %s3091_s26 }
  0x66   : > { %909 = vrot.lane.b32.xlu1 %v2590_v57, %s3091_s26 }
  0x67   : > { %907 = vrot.lane.b32.xlu0 %v2594_v59, %s3091_s26 }
  0x6a   : > { %917 = vrot.lane.b32.xlu1 %v3220_v13, %s3091_s26 }
  0x6b   : > { %915 = vrot.lane.b32.xlu0 %v3210_v9, %s3091_s26 }
  0x6e   : > { %939 = vrot.lane.b32.xlu1 %v3204_v7, %s3091_s26 }
  0x6f   : > { %919 = vrot.lane.b32.xlu0 %v3224_v15, %s3091_s26 }
  0x72   : > { %943 = vrot.lane.b32.xlu1 %v3226_v16, %s3091_s26 }
  0x73   : > { %941 = vrot.lane.b32.xlu0 %v3228_v17, %s3091_s26 }
  0x76   : > { %997 = vrot.lane.b32.xlu1 %v3220_v13, %s3092_s29 }
  0x77   : > { %995 = vrot.lane.b32.xlu0 %v3210_v9, %s3092_s29 }
  0x7a   : > { %1019 = vrot.lane.b32.xlu1 %v3204_v7, %s3092_s29 }
  0x7b   : > { %999 = vrot.lane.b32.xlu0 %v3224_v15, %s3092_s29 }
  0x7e   : > { %1023 = vrot.lane.b32.xlu1 %v3226_v16, %s3092_s29 }
  0x7f   : > { %1021 = vrot.lane.b32.xlu0 %v3228_v17, %s3092_s29 }
  0x82   : > { %1079 = vrot.lane.b32.xlu1 %v3210_v9, %s3093_s30 }
  0x83   : > { %1081 = vrot.lane.b32.xlu0 %v3220_v13, %s3093_s30 }
  0x86   : > { %1083 = vrot.lane.b32.xlu1 %v3224_v15, %s3093_s30 }
  0x87   : > { %1103 = vrot.lane.b32.xlu0 %v3204_v7, %s3093_s30  ;;  %v3358_v7 = vld [vmem:[#allocation3 + $0x11] sm:$0x3] }
  0x8a   : > { %1105 = vrot.lane.b32.xlu1 %v3228_v17, %s3093_s30 }
  0x8b   : > { %1107 = vrot.lane.b32.xlu0 %v3226_v16, %s3093_s30 }
  0x8e   : > { %1174 = vrot.lane.b32.xlu1 %v3340_v1, %s3094_s5 }
  0x8f   : > { %1176 = vrot.lane.b32.xlu0 %v3342_v2, %s3094_s5 }
  0x92   : > { %1178 = vrot.lane.b32.xlu1 %v3348_v3, %s3094_s5 }
  0x93   : > { %1201 = vrot.lane.b32.xlu0 %v3350_v4, %s3094_s5 }
  0x96   : > { %1203 = vrot.lane.b32.xlu1 %v3356_v5, %s3094_s5 }
  0x97   : > { %1205 = vrot.lane.b32.xlu0 %v3358_v7, %s3094_s5 }
  0x98   : > { %v431_v9 = vpop.permute.xlu1 %430 }
  0x99   : > { %v436_v10 = vsub.f32 %v3202_v6, %v431_v9  ;;  %v413_v13 = vpop.permute.xlu0 %412 }
  0x9a   : > { %v418_v14 = vsub.f32 %v3208_v8, %v413_v13  ;;  %1262 = vrot.lane.b32.xlu1 %v3340_v1, %s3095_s6 }
  0x9b   : > { %v438_v15 = vmul.f32 %v436_v10, %v436_v10  ;;  %1264 = vrot.lane.b32.xlu0 %v3342_v2, %s3095_s6 }
  0x9c   : > { %v420_v16 = vmul.f32 %v418_v14, %v418_v14  ;;  %v433_v17 = vpop.permute.xlu1 %432 }
  0x9d   : > { %v440_v18 = vadd.f32 0.81, %v438_v15  ;;  %v467_v19 = vpop.permute.xlu0 %466  ;;  %v3378_v26 = vsub.f32 %v3216_v11, %v433_v17 }
  0x9e   : > { %v422_v22 = vadd.f32 0.81, %v420_v16  ;;  %v3371_v23 = vsub.f32 %v3208_v8, %v467_v19  ;;  %1266 = vrot.lane.b32.xlu1 %v3348_v3, %s3095_s6 }
  0x9f   : > { %2595 = vrsqrt.f32 %v440_v18  ;;  %v439_v34 = vmul.f32 %v3378_v26, %v3378_v26 }
  0xa0   : > { %2597 = vrsqrt.f32 %v422_v22  ;;  %v474_v24 = vmul.f32 %v3371_v23, %v3371_v23  ;;  %v469_v25 = vpop.permute.xlu1 %468 }
  0xa1   : > { %v3381_v27 = vsub.f32 %v3218_v12, %v469_v25  ;;  %v483_v28 = vpop.permute.xlu0 %482  ;;  %v441_v49 = vadd.f32 0.81, %v439_v34 }
  0xa2   : > { %v476_v29 = vadd.f32 0.81, %v474_v24  ;;  %v488_v30 = vsub.f32 %v3202_v6, %v483_v28 }
  0xa3   : > { %v475_v31 = vmul.f32 %v3381_v27, %v3381_v27 }
  0xa4   : > { %v490_v32 = vmul.f32 %v488_v30, %v488_v30  ;;  %v485_v33 = vpop.permute.xlu1 %484  ;;  %2599 = vrsqrt.f32 %v476_v29 }
  0xa5   : > { %v489_v35 = vsub.f32 %v3216_v11, %v485_v33  ;;  %v525_v36 = vpop.permute.xlu0 %524  ;;  %v477_v37 = vadd.f32 0.81, %v475_v31 }
  0xa6   : > { %v492_v38 = vadd.f32 0.81, %v490_v32  ;;  %v3390_v39 = vsub.f32 %v3208_v8, %v525_v36 }
  0xa7   : > { %v491_v40 = vmul.f32 %v489_v35, %v489_v35 }
  0xa8   : > { %2601 = vrsqrt.f32 %v492_v38  ;;  %v527_v41 = vpop.permute.xlu1 %526  ;;  %v532_v44 = vmul.f32 %v3390_v39, %v3390_v39 }
  0xa9   : > { %v2596_v42 = vpop.eup %2595  ;;  %v493_v43 = vadd.f32 0.81, %v491_v40  ;;  %v3395_v45 = vsub.f32 %v3218_v12, %v527_v41  ;;  %v415_v46 = vpop.permute.xlu0 %414  ;;  %2603 = vrsqrt.f32 %v477_v37 }
  0xaa   : > { %v2598_v47 = vpop.eup %2597  ;;  %v444_v48 = vmul.f32 %v2596_v42, %v436_v10  ;;  %v419_v50 = vsub.f32 %v3218_v12, %v415_v46  ;;  %v534_v56 = vadd.f32 0.81, %v532_v44 }
  0xab   : > { %v426_v51 = vmul.f32 %v2598_v47, %v418_v14  ;;  %2605 = vrsqrt.f32 %v493_v43  ;;  %v533_v52 = vmul.f32 %v3395_v45, %v3395_v45 }
  0xac   : > { %v421_v53 = vmul.f32 %v419_v50, %v419_v50  ;;  %v543_v54 = vpop.permute.xlu1 %542  ;;  %2607 = vrsqrt.f32 %v441_v49 }
  0xad   : > { %v446_v55 = vsub.f32 %v426_v51, %v444_v48  ;;  %v3401_v57 = vsub.f32 %v3216_v11, %v543_v54  ;;  %v541_v58 = vpop.permute.xlu0 %540  ;;  %v535_v59 = vadd.f32 0.81, %v533_v52 }
  0xae   : > { %v423_v60 = vadd.f32 0.81, %v421_v53  ;;  %v3404_v61 = vsub.f32 %v3202_v6, %v541_v58  ;;  %v2600_v0 = vpop.eup %2599 }
  0xaf   : > { %v448_v62 = vmul.f32 %v446_v55, %v446_v55  ;;  %v549_v63 = vmul.f32 %v3401_v57, %v3401_v57  ;;  %v480_v22 = vmul.f32 %v2600_v0, %v3371_v23 }
  0xb0   : > { %2609 = vrsqrt.f32 %v423_v60  ;;  %v548_v9 = vmul.f32 %v3404_v61, %v3404_v61  ;;  %v596_v10 = vpop.permute.xlu1 %595 }
  0xb1   : > { %v450_v13 = vadd.f32 0.1, %v448_v62  ;;  %2611 = vrsqrt.f32 %v534_v56  ;;  %v551_v14 = vadd.f32 0.81, %v549_v63  ;;  %v594_v15 = vpop.permute.xlu0 %593  ;;  %v3411_v18 = vsub.f32 %v3218_v12, %v596_v10 }
  0xb2   : > { %v2602_v16 = vpop.eup %2601  ;;  %2613 = vrsqrt.f32 %v535_v59  ;;  %v550_v17 = vadd.f32 0.81, %v548_v9  ;;  %v3414_v19 = vsub.f32 %v3208_v8, %v594_v15 }
  0xb3   : > { %2615 = vrcp.f32 %v450_v13  ;;  %v496_v24 = vmul.f32 %v2602_v16, %v488_v30  ;;  %v2604_v25 = vpop.eup %2603  ;;  %v606_v37 = vmul.f32 %v3411_v18, %v3411_v18 }
  0xb4   : > { %2617 = vrsqrt.f32 %v551_v14  ;;  %v605_v28 = vmul.f32 %v3414_v19, %v3414_v19  ;;  %v621_v29 = vpop.permute.xlu1 %620  ;;  %v481_v30 = vmul.f32 %v2604_v25, %v3381_v27 }
  0xb5   : > { %v2606_v31 = vpop.eup %2605  ;;  %v498_v32 = vsub.f32 %v480_v22, %v496_v24  ;;  %2619 = vrsqrt.f32 %v550_v17  ;;  %v3420_v33 = vsub.f32 %v3202_v6, %v621_v29  ;;  %v3422_v34 = vpop.permute.xlu0 %597  ;;  %v609_v49 = vadd.f32 0.81, %v606_v37 }
  0xb6   : > { %v497_v36 = vmul.f32 %v2606_v31, %v489_v35  ;;  %v608_v23 = vadd.f32 0.81, %v605_v28  ;;  %v2608_v41 = vpop.eup %2607 }
  0xb7   : > { %v500_v38 = vmul.f32 %v498_v32, %v498_v32  ;;  %v632_v40 = vmul.f32 %v3420_v33, %v3420_v33  ;;  %v445_v27 = vmul.f32 %v2608_v41, %v3378_v26 }
  0xb8   : > { %v3429_v42 = vpop.permute.xlu1 %624  ;;  %v499_v44 = vsub.f32 %v481_v30, %v497_v36  ;;  %2621 = vrsqrt.f32 %v608_v23 }
  0xb9   : > { %v502_v43 = vadd.f32 0.1, %v500_v38  ;;  %v635_v46 = vadd.f32 0.81, %v632_v40  ;;  %v623_v47 = vpop.permute.xlu0 %622 }
  0xba   : > { %v2610_v48 = vpop.eup %2609  ;;  %v3432_v35 = vsub.f32 %v3216_v11, %v623_v47  ;;  %v501_v58 = vmul.f32 %v499_v44, %v499_v44 }
  0xbb   : > { %v2612_v51 = vpop.eup %2611  ;;  %2623 = vrcp.f32 %v502_v43  ;;  %v427_v52 = vmul.f32 %v2610_v48, %v419_v50 }
  0xbc   : > { %v2614_v53 = vpop.eup %2613  ;;  %2625 = vrsqrt.f32 %v635_v46  ;;  %v633_v54 = vmul.f32 %v3432_v35, %v3432_v35  ;;  %v684_v55 = vpop.permute.xlu1 %683  ;;  %v538_v9 = vmul.f32 %v2612_v51, %v3390_v39  ;;  %v503_v24 = vadd.f32 0.1, %v501_v58 }
  0xbd   : > { %v3437_v56 = vpop.eup %2615  ;;  %v447_v59 = vsub.f32 %v427_v52, %v445_v27  ;;  %v3440_v60 = vsub.f32 %v3218_v12, %v684_v55  ;;  %v682_v62 = vpop.permute.xlu0 %681  ;;  %2627 = vrsqrt.f32 %v609_v49  ;;  %v539_v15 = vmul.f32 %v2614_v53, %v3395_v45 }
  0xbe   : > { %4876 = vst [vmem:[#allocation7_spill] sm:$0xff] %v3437_v56  ;;  %v2618_v63 = vpop.eup %2617  ;;  %v636_v0 = vadd.f32 0.81, %v633_v54  ;;  %v3443_v26 = vsub.f32 %v3208_v8, %v682_v62  ;;  %458 = vrot.lane.b32.xlu0 %v3437_v56, %s3091_s26 }
  0xbf   : > { %v2620_v50 = vpop.eup %2619  ;;  %v449_v10 = vmul.f32 %v447_v59, %v447_v59  ;;  %v555_v13 = vmul.f32 %v2618_v63, %v3401_v57  ;;  %v694_v14 = vmul.f32 %v3440_v60, %v3440_v60 }
  0xc0   : > { %v554_v16 = vmul.f32 %v2620_v50, %v3404_v61  ;;  %2629 = vrsqrt.f32 %v636_v0  ;;  %v693_v17 = vmul.f32 %v3443_v26, %v3443_v26  ;;  %v706_v22 = vpop.permute.xlu1 %705 }
  0xc1   : > { %v451_v25 = vadd.f32 0.1, %v449_v10  ;;  %v3456_v28 = vsub.f32 %v3202_v6, %v706_v22  ;;  %v3458_v39 = vpop.permute.xlu0 %685  ;;  %v557_v57 = vsub.f32 %v539_v15, %v555_v13  ;;  %v697_v31 = vadd.f32 0.81, %v694_v14 }
  0xc2   : > { %v556_v29 = vsub.f32 %v538_v9, %v554_v16  ;;  %v696_v32 = vadd.f32 0.81, %v693_v17  ;;  %v2622_v61 = vpop.eup %2621 }
  0xc3   : > { %2631 = vrcp.f32 %v451_v25  ;;  %v717_v45 = vmul.f32 %v3456_v28, %v3456_v28  ;;  %v559_v41 = vmul.f32 %v557_v57, %v557_v57  ;;  %v614_v46 = vmul.f32 %v2622_v61, %v3414_v19 }
  0xc4   : > { %v558_v36 = vmul.f32 %v556_v29, %v556_v29  ;;  %v3462_v37 = vpop.permute.xlu1 %709  ;;  %2633 = vrcp.f32 %v503_v24 }
  0xc5   : > { %v2624_v23 = vpop.eup %2623  ;;  %v720_v30 = vadd.f32 0.81, %v717_v45  ;;  %v708_v38 = vpop.permute.xlu0 %707  ;;  %2635 = vrsqrt.f32 %v697_v31  ;;  %v561_v54 = vadd.f32 0.1, %v559_v41 }
  0xc6   : > { %v2626_v40 = vpop.eup %2625  ;;  %v560_v43 = vadd.f32 0.1, %v558_v36  ;;  %v3465_v44 = vsub.f32 %v3216_v11, %v708_v38  ;;  %508 = vrot.lane.b32.xlu0 %v2624_v23, %s3096_s7  ;;  %2637 = vrsqrt.f32 %v696_v32  ;;  %v3500_v36 = vsub.f32 %v3234_v21, %v3429_v42 }
  0xc7   : > { %v641_v47 = vmul.f32 %v2626_v40, %v3420_v33  ;;  %v2628_v48 = vpop.eup %2627 }
  0xc8   : > { %2639 = vrcp.f32 %v560_v43  ;;  %v718_v49 = vmul.f32 %v3465_v44, %v3465_v44  ;;  %v768_v51 = vpop.permute.xlu1 %767  ;;  %v615_v33 = vmul.f32 %v2628_v48, %v3411_v18  ;;  %v3511_v43 = vsub.f32 %v3232_v20, %v3422_v34 }
  0xc9   : > { %v644_v27 = vsub.f32 %v614_v46, %v641_v47  ;;  %2641 = vrsqrt.f32 %v720_v30  ;;  %v766_v52 = vpop.permute.xlu0 %765  ;;  %v3473_v58 = vsub.f32 %v3218_v12, %v768_v51  ;;  %v3517_v48 = vsub.f32 %v3232_v20, %v3458_v39 }
  0xca   : > { %v2630_v53 = vpop.eup %2629  ;;  %v721_v55 = vadd.f32 0.81, %v718_v49  ;;  %v3476_v19 = vsub.f32 %v3208_v8, %v766_v52  ;;  %516 = vrot.lane.b32.xlu0 %v2624_v23, %s3091_s26  ;;  %v634_v51 = vmul.f32 %v3500_v36, %v3500_v36  ;;  %v3527_v39 = vsub.f32 %v3234_v21, %v3462_v37 }
  0xcb   : > { %v647_v59 = vmul.f32 %v644_v27, %v644_v27  ;;  %v642_v62 = vmul.f32 %v2630_v53, %v3432_v35  ;;  %v778_v18 = vmul.f32 %v3473_v58, %v3473_v58 }
  0xcc   : > { %2643 = vrsqrt.f32 %v721_v55  ;;  %v777_v63 = vmul.f32 %v3476_v19, %v3476_v19  ;;  %v790_v0 = vpop.permute.xlu1 %789 }
  0xcd   : > { %v3483_v50 = vpop.eup %2631  ;;  %v650_v9 = vadd.f32 0.1, %v647_v59  ;;  %v645_v10 = vsub.f32 %v615_v33, %v642_v62  ;;  %v3486_v13 = vsub.f32 %v3202_v6, %v790_v0  ;;  %v770_v14 = vpop.permute.xlu0 %769  ;;  %2645 = vrcp.f32 %v561_v54 }
  0xce   : > { %4877 = vst [vmem:[#allocation8_spill] sm:$0xff] %v3483_v50  ;;  %v780_v15 = vadd.f32 0.81, %v777_v63  ;;  %460 = vrot.lane.b32.xlu1 %v3483_v50, %s3091_s26  ;;  %v2634_v35 = vpop.eup %2633  ;;  %v781_v32 = vadd.f32 0.81, %v778_v18  ;;  %v695_v59 = vmul.f32 %v3517_v48, %v3517_v48  ;;  %v719_v0 = vmul.f32 %v3527_v39, %v3527_v39 }
  0xcf   : > { %2647 = vrcp.f32 %v650_v9  ;;  %v648_v16 = vmul.f32 %v645_v10, %v645_v10  ;;  %v801_v17 = vmul.f32 %v3486_v13, %v3486_v13  ;;  %v2636_v22 = vpop.eup %2635  ;;  %v637_v63 = vadd.f32 0.81, %v634_v51 }
  0xd0   : > { %v794_v24 = vpop.permute.xlu1 %793  ;;  %v2638_v25 = vpop.eup %2637  ;;  %2649 = vrsqrt.f32 %v780_v15 }
  0xd1   : > { %v804_v57 = vadd.f32 0.81, %v801_v17  ;;  %v792_v29 = vpop.permute.xlu0 %791  ;;  %v651_v23 = vadd.f32 0.1, %v648_v16  ;;  %v702_v30 = vmul.f32 %v2638_v25, %v3443_v26  ;;  %v3536_v54 = vsub.f32 %v3234_v21, %v794_v24 }
  0xd2   : > { %v2640_v31 = vpop.eup %2639  ;;  %v3495_v45 = vsub.f32 %v3216_v11, %v792_v29  ;;  %510 = vrot.lane.b32.xlu1 %v2634_v35, %s3096_s7  ;;  %v3548_v21 = vsub.f32 %v3232_v20, %v770_v14  ;;  %v698_v17 = vadd.f32 0.81, %v695_v59 }
  0xd3   : > { %v2642_v61 = vpop.eup %2641  ;;  %566 = vrot.lane.b32.xlu0 %v2640_v31, %s3095_s6  ;;  %2651 = vrsqrt.f32 %v804_v57  ;;  %v803_v15 = vmul.f32 %v3536_v54, %v3536_v54  ;;  %v722_v57 = vadd.f32 0.81, %v719_v0 }
  0xd4   : > { %v726_v38 = vmul.f32 %v2642_v61, %v3456_v28  ;;  %v802_v40 = vmul.f32 %v3495_v45, %v3495_v45  ;;  %v3507_v41 = vpop.permute.xlu1 %901  ;;  %2653 = vrsqrt.f32 %v781_v32  ;;  %v703_v28 = vmul.f32 %v2636_v22, %v3440_v60 }
  0xd5   : > { %4878 = vst [vmem:[#allocation9_spill] sm:$0xff] %v3507_v41  ;;  %v3513_v46 = vpop.permute.xlu0 %899  ;;  %2655 = vrcp.f32 %v651_v23  ;;  %v607_v60 = vmul.f32 %v3511_v43, %v3511_v43  ;;  %v779_v29 = vmul.f32 %v3548_v21, %v3548_v21 }
  0xd6   : > { %4879 = vst [vmem:[#allocation10_spill] sm:$0xff] %v3513_v46  ;;  %v2644_v42 = vpop.eup %2643  ;;  %v729_v47 = vsub.f32 %v702_v30, %v726_v38  ;;  %v805_v26 = vadd.f32 0.81, %v802_v40  ;;  %518 = vrot.lane.b32.xlu1 %v2634_v35, %s3091_s26  ;;  %v806_v30 = vadd.f32 0.81, %v803_v15 }
  0xd7   : > { %v727_v49 = vmul.f32 %v2644_v42, %v3465_v44  ;;  %574 = vrot.lane.b32.xlu0 %v2640_v31, %s3091_s26  ;;  %v2646_v34 = vpop.eup %2645  ;;  %v610_v10 = vadd.f32 0.81, %v607_v60 }
  0xd8   : > { %v732_v27 = vmul.f32 %v729_v47, %v729_v47  ;;  %2657 = vrsqrt.f32 %v805_v26  ;;  %v3529_v52 = vpop.permute.xlu1 %909 }
  0xd9   : > { %4880 = vst [vmem:[#allocation11_spill] sm:$0xff] %v3529_v52  ;;  %v3531_v53 = vpop.eup %2647  ;;  %v730_v44 = vsub.f32 %v703_v28, %v727_v49  ;;  %v3538_v55 = vpop.permute.xlu0 %907 }
  0xda   : > { %4881 = vst [vmem:[#allocation12_spill] sm:$0xff] %v3538_v55  ;;  %v735_v33 = vadd.f32 0.1, %v732_v27  ;;  %568 = vrot.lane.b32.xlu1 %v2646_v34, %s3095_s6  ;;  %v2650_v62 = vpop.eup %2649 }
  0xdb   : > { %v733_v37 = vmul.f32 %v730_v44, %v730_v44  ;;  %673 = vrot.lane.b32.xlu0 %v3531_v53, %s3091_s26  ;;  %v786_v20 = vmul.f32 %v2650_v62, %v3476_v19 }
  0xdc   : > { %2659 = vrcp.f32 %v735_v33  ;;  %v918_v9 = vpop.permute.xlu1 %917 }
  0xdd   : > { %v736_v18 = vadd.f32 0.1, %v733_v37  ;;  %v916_v35 = vpop.permute.xlu0 %915  ;;  %v2652_v16 = vpop.eup %2651  ;;  %v3553_v22 = vsub.f32 %v3218_v12, %v918_v9 }
  0xde   : > { %v3556_v24 = vsub.f32 %v3208_v8, %v916_v35  ;;  %576 = vrot.lane.b32.xlu1 %v2646_v34, %s3091_s26  ;;  %v810_v14 = vmul.f32 %v2652_v16, %v3486_v13  ;;  %v2654_v25 = vpop.eup %2653  ;;  %v782_v34 = vadd.f32 0.81, %v779_v29 }
  0xdf   : > { %2661 = vrcp.f32 %v736_v18  ;;  %v3565_v61 = vpop.eup %2655  ;;  %v928_v40 = vmul.f32 %v3553_v22, %v3553_v22  ;;  %v787_v47 = vmul.f32 %v2654_v25, %v3473_v58 }
  0xe0   : > { %2663 = vrsqrt.f32 %v637_v63  ;;  %v927_v31 = vmul.f32 %v3556_v24, %v3556_v24  ;;  %v940_v32 = vpop.permute.xlu1 %939  ;;  %v813_v23 = vsub.f32 %v786_v20, %v810_v14 }
  0xe1   : > { %2665 = vrsqrt.f32 %v610_v10  ;;  %v3568_v38 = vsub.f32 %v3202_v6, %v940_v32  ;;  %v3570_v19 = vpop.permute.xlu0 %919  ;;  %v931_v37 = vadd.f32 0.81, %v928_v40 }
  0xe2   : > { %v2658_v13 = vpop.eup %2657  ;;  %2667 = vrsqrt.f32 %v698_v17  ;;  %v930_v42 = vadd.f32 0.81, %v927_v31  ;;  %675 = vrot.lane.b32.xlu1 %v3565_v61, %s3091_s26  ;;  %v816_v26 = vmul.f32 %v813_v23, %v813_v23 }
  0xe3   : > { %v811_v28 = vmul.f32 %v2658_v13, %v3495_v45  ;;  %v951_v49 = vmul.f32 %v3568_v38, %v3568_v38  ;;  %2669 = vrsqrt.f32 %v722_v57 }
  0xe4   : > { %v3580_v51 = vpop.permute.xlu1 %943  ;;  %v819_v27 = vadd.f32 0.1, %v816_v26  ;;  %2671 = vrsqrt.f32 %v806_v30 }
  0xe5   : > { %v814_v60 = vsub.f32 %v787_v47, %v811_v28  ;;  %v954_v44 = vadd.f32 0.81, %v951_v49  ;;  %v942_v33 = vpop.permute.xlu0 %941  ;;  %2673 = vrsqrt.f32 %v930_v42 }
  0xe6   : > { %v3582_v59 = vpop.eup %2659  ;;  %v949_v58 = vsub.f32 %v3216_v11, %v942_v33  ;;  %2675 = vrcp.f32 %v819_v27 }
  0xe7   : > { %v817_v45 = vmul.f32 %v814_v60, %v814_v60  ;;  %757 = vrot.lane.b32.xlu0 %v3582_v59, %s3091_s26  ;;  %2677 = vrsqrt.f32 %v954_v44 }
  0xe8   : > { %v952_v62 = vmul.f32 %v949_v58, %v949_v58  ;;  %v998_v63 = vpop.permute.xlu1 %997  ;;  %2679 = vrsqrt.f32 %v782_v34 }
  0xe9   : > { %v3587_v0 = vpop.eup %2661  ;;  %v820_v9 = vadd.f32 0.1, %v817_v45  ;;  %v996_v10 = vpop.permute.xlu0 %995  ;;  %2681 = vrsqrt.f32 %v931_v37  ;;  %v3590_v35 = vsub.f32 %v3218_v12, %v998_v63 }
  0xea   : > { %v2664_v18 = vpop.eup %2663  ;;  %v955_v15 = vadd.f32 0.81, %v952_v62  ;;  %v1004_v16 = vsub.f32 %v3208_v8, %v996_v10  ;;  %759 = vrot.lane.b32.xlu1 %v3587_v0, %s3091_s26 }
  0xeb   : > { %v2666_v17 = vpop.eup %2665  ;;  %2683 = vrcp.f32 %v820_v9  ;;  %v643_v57 = vmul.f32 %v2664_v18, %v3500_v36  ;;  %v1008_v12 = vmul.f32 %v3590_v35, %v3590_v35 }
  0xec   : > { %v2668_v20 = vpop.eup %2667  ;;  %v1007_v14 = vmul.f32 %v1004_v16, %v1004_v16  ;;  %v1020_v25 = vpop.permute.xlu1 %1019  ;;  %2685 = vrsqrt.f32 %v955_v15  ;;  %v616_v30 = vmul.f32 %v2666_v17, %v3511_v43 }
  0xed   : > { %v1028_v29 = vsub.f32 %v3202_v6, %v1020_v25  ;;  %v3597_v31 = vpop.permute.xlu0 %999  ;;  %v2670_v32 = vpop.eup %2669  ;;  %v1011_v49 = vadd.f32 0.81, %v1008_v12  ;;  %v704_v43 = vmul.f32 %v2668_v20, %v3517_v48 }
  0xee   : > { %v1010_v8 = vadd.f32 0.81, %v1007_v14  ;;  %v2672_v23 = vpop.eup %2671  ;;  %v646_v47 = vsub.f32 %v616_v30, %v643_v57  ;;  %v728_v36 = vmul.f32 %v2670_v32, %v3527_v39 }
  0xef   : > { %v1031_v13 = vmul.f32 %v1028_v29, %v1028_v29  ;;  %v2674_v40 = vpop.eup %2673  ;;  %v812_v63 = vmul.f32 %v2672_v23, %v3536_v54 }
  0xf0   : > { %v3602_v42 = vpop.eup %2675  ;;  %2687 = vrsqrt.f32 %v1010_v8  ;;  %v936_v60 = vmul.f32 %v2674_v40, %v3556_v24  ;;  %v649_v45 = vmul.f32 %v646_v47, %v646_v47  ;;  %v731_v62 = vsub.f32 %v704_v43, %v728_v36 }
  0xf1   : > { %v1034_v26 = vadd.f32 0.81, %v1031_v13  ;;  %v1022_v6 = vpop.permute.xlu0 %1021  ;;  %v2678_v28 = vpop.eup %2677  ;;  %841 = vrot.lane.b32.xlu0 %v3602_v42, %s3091_s26  ;;  %v660_v43 = vrot.slane %v3531_v53, 1 }
  0xf2   : > { %v1029_v34 = vsub.f32 %v3216_v11, %v1022_v6  ;;  %v2680_v27 = vpop.eup %2679  ;;  %v960_v44 = vmul.f32 %v2678_v28, %v3568_v38  ;;  %v652_v15 = vadd.f32 0.1, %v649_v45  ;;  %v734_v17 = vmul.f32 %v731_v62, %v731_v62 }
  0xf3   : > { %2689 = vrsqrt.f32 %v1034_v26  ;;  %v2682_v33 = vpop.eup %2681  ;;  %v788_v24 = vmul.f32 %v2680_v27, %v3548_v21  ;;  %v661_v27 = vrot.slane %v3565_v61, 1  ;;  %v744_v61 = vrot.slane %v3582_v59, 1 }
  0xf4   : > { %v1032_v39 = vmul.f32 %v1029_v34, %v1029_v34  ;;  %v963_v11 = vsub.f32 %v936_v60, %v960_v44  ;;  %2691 = vrsqrt.f32 %v1011_v49  ;;  %v937_v38 = vmul.f32 %v2682_v33, %v3553_v22 }
  0xf5   : > { %v3611_v37 = vpop.eup %2683  ;;  %v815_v20 = vsub.f32 %v788_v24, %v812_v63  ;;  %v737_v12 = vadd.f32 0.1, %v734_v17  ;;  %v662_v44 = vsel %vm659_vm1, %v660_v43, %v661_v27  ;;  %v745_v33 = vrot.slane %v3587_v0, 1  ;;  %v3768_v43 = vld [vmem:[#allocation3 + $0x13] sm:$0x1] }
  0xf6   : > { %v1035_v9 = vadd.f32 0.81, %v1032_v39  ;;  %843 = vrot.lane.b32.xlu1 %v3611_v37, %s3091_s26  ;;  %v2686_v48 = vpop.eup %2685  ;;  %v966_v10 = vmul.f32 %v963_v11, %v963_v11  ;;  %v829_v0 = vrot.slane %v3611_v37, 1  ;;  %v828_v59 = vrot.slane %v3602_v42, 1 }
  0xf7   : > { %v961_v18 = vmul.f32 %v2686_v48, %v949_v58  ;;  %v818_v8 = vmul.f32 %v815_v20, %v815_v20  ;;  %v746_v62 = vsel %vm659_vm1, %v744_v61, %v745_v33 }
  0xf8   : > { %2693 = vrsqrt.f32 %v1035_v9  ;;  %v969_v14 = vadd.f32 0.1, %v966_v10  ;;  %v830_v24 = vsel %vm659_vm1, %v828_v59, %v829_v0 }
  0xf9   : > { %v964_v25 = vsub.f32 %v937_v38, %v961_v18  ;;  %v821_v58 = vadd.f32 0.1, %v818_v8 }
  0xfa   : > { %v2688_v54 = vpop.eup %2687  ;;  %2695 = vrcp.f32 %v969_v14  ;;  %v1024_v14 = vpop.permute.xlu1 %1023 }
  0xfb   : > { %v967_v57 = vmul.f32 %v964_v25, %v964_v25  ;;  %2697 = vrcp.f32 %v652_v15  ;;  %v1016_v30 = vmul.f32 %v2688_v54, %v1004_v16  ;;  %v1082_v54 = vpop.permute.xlu0 %1081 }
  0xfd   : > { %v2690_v32 = vpop.eup %2689  ;;  %v970_v23 = vadd.f32 0.1, %v967_v57 }
  0xfe   : > { %v1040_v21 = vmul.f32 %v2690_v32, %v1028_v29  ;;  %v2692_v13 = vpop.eup %2691  ;;  %v3666_v25 = vpop.permute.xlu1 %1079 }
  0xff   : > { %2699 = vrcp.f32 %v970_v23  ;;  %v1017_v36 = vmul.f32 %v2692_v13, %v3590_v35  ;;  %v1104_v32 = vpop.permute.xlu0 %1103 }
 0x100   : > { %v1043_v22 = vsub.f32 %v1016_v30, %v1040_v21  ;;  %2701 = vrcp.f32 %v737_v12 }
 0x101   : > { %2703 = vrcp.f32 %v821_v58 }
 0x102   : > { %v2694_v40 = vpop.eup %2693  ;;  %v1046_v47 = vmul.f32 %v1043_v22, %v1043_v22  ;;  %v3674_v57 = vpop.permute.xlu1 %1083 }
 0x103   : > { %v1041_v26 = vmul.f32 %v2694_v40, %v1029_v34  ;;  %v1108_v8 = vpop.permute.xlu0 %1107 }
 0x104   : > { %v2696_v6 = vpop.eup %2695  ;;  %v1049_v28 = vadd.f32 0.1, %v1046_v47 }
 0x105   : > { %v1044_v49 = vsub.f32 %v1017_v36, %v1041_v26  ;;  %987 = vrot.lane.b32.xlu0 %v2696_v6, %s3091_s26  ;;  %v2698_v16 = vpop.eup %2697  ;;  %v978_v53 = vrot.slane %v2696_v6, 1  ;;  %v3738_v26 = vld [vmem:[#allocation2 + $0x8] sm:$0xff] }
 0x106   : > { %2705 = vrcp.f32 %v1049_v28  ;;  %v663_v34 = vrot.slane %v2698_v16, 1  ;;  %v3682_v12 = vpop.permute.xlu1 %1105  ;;  %v3748_v28 = vld [vmem:[#allocation3] sm:$0xff] }
 0x107   : > { %v1047_v29 = vmul.f32 %v1044_v49, %v1044_v49  ;;  %v3698_v30 = vpop.permute.xlu0 %1176  ;;  %v3760_v16 = vld [vmem:[#allocation3 + $0x3] sm:$0xff] }
 0x108   : > { %v664_v11 = vsel %vm659_vm1, %v661_v27, %v663_v34 }
 0x109   : > { %v1050_v60 = vadd.f32 0.1, %v1047_v29  ;;  %v3624_v35 = vpop.eup %2699  ;;  %665 = vrot.lane.b32.xlu0 %v662_v44, %s3097_s8  ;;  %v3764_v29 = vsub.f32 %v3760_v16, %v3350_v4 }
 0x10a   : > { %4882 = vst [vmem:[#allocation13_spill] sm:$0xff] %v3624_v35  ;;  %v2702_v39 = vpop.eup %2701  ;;  %989 = vrot.lane.b32.xlu1 %v3624_v35, %s3091_s26  ;;  %v4868_v45 = vrot.slane %v3624_v35, 1  ;;  %v3690_v23 = vpop.permute.xlu1 %1174 }
 0x10b   : > { %2707 = vrcp.f32 %v1050_v60  ;;  %v747_v9 = vrot.slane %v2702_v39, 1  ;;  %v2704_v48 = vpop.eup %2703  ;;  %v3708_v13 = vpop.permute.xlu0 %1201  ;;  %v3771_v60 = vsub.f32 %v3768_v43, %v1024_v14  ;;  %v1448_v61 = vmul.f32 %v3764_v29, %v3764_v29 }
 0x10c   : > { %v3636_v63 = vsel %vm659_vm1, %v978_v53, %v4868_v45  ;;  %v831_v10 = vrot.slane %v2704_v48, 1  ;;  %v3792_v53 = vld [vmem:[#allocation2 + $0x3] sm:$0xff]  ;;  %v3856_v45 = vld [vmem:[#allocation3 + $0x13] sm:$0x3] }
 0x10d   : > { %4883 = vst [vmem:[#allocation14_spill] sm:$0xff] %v3636_v63  ;;  %749 = vrot.lane.b32.xlu0 %v746_v62, %s3093_s30  ;;  %v748_v37 = vsel %vm659_vm1, %v745_v33, %v747_v9  ;;  %v3775_v33 = vld [vmem:[#allocation3 + $0x10] sm:$0x7]  ;;  %v3796_v62 = vsub.f32 %v3792_v53, %v3666_v25 }
 0x10e   : > { %667 = vrot.lane.b32.xlu1 %v664_v11, %s3097_s8  ;;  %v832_v15 = vsel %vm659_vm1, %v829_v0, %v831_v10  ;;  %v3700_v21 = vpop.permute.xlu1 %1178  ;;  %v1033_v0 = vmul.f32 %v3771_v60, %v3771_v60  ;;  %v3805_v11 = vsub.f32 %v3760_v16, %v1104_v32  ;;  %v3838_v32 = vld [vmem:[#allocation2 + $0x13] sm:$0x3] }
 0x10f   : > { %v3718_v58 = vpop.permute.xlu0 %1205 }
 0x110   : > { %v3645_v38 = vpop.eup %2705  ;;  %v1036_v25 = vadd.f32 0.81, %v1033_v0 }
 0x111   : > { %833 = vrot.lane.b32.xlu0 %v830_v24, %s3092_s29  ;;  %4884 = vst [vmem:[#allocation15_spill] sm:$0xff] %v3645_v38  ;;  %v1058_v17 = vrot.slane %v3645_v38, 1 }
 0x112   : > { %751 = vrot.lane.b32.xlu1 %v748_v37, %s3093_s30  ;;  %v3710_v22 = vpop.permute.xlu1 %1203  ;;  %v3818_v37 = vsub.f32 %v3768_v43, %v1108_v8 }
 0x113   : > { %v3730_v47 = vpop.permute.xlu0 %1264 }
 0x115   : > { %v3648_v18 = vpop.eup %2707 }
 0x116   : > { %v4869_v20 = vrot.slane %v3648_v18, 1  ;;  %835 = vrot.lane.b32.xlu1 %v832_v15, %s3092_s29  ;;  %v3720_v40 = vpop.permute.xlu1 %1262  ;;  %v1451_v15 = vadd.f32 0.81, %v1448_v61 }
 0x118   : > { %v1060_v42 = vsel %vm659_vm1, %v1058_v17, %v4869_v20  ;;  %v1091_v17 = vmul.f32 %v3796_v62, %v3796_v62 }
 0x119   : > { %1063 = vrot.lane.b32.xlu0 %v1060_v42, %s3096_s7  ;;  %v3824_v42 = vld [vmem:[#allocation3 + $0xb] sm:$0xff] }
 0x11a   : > { %1288 = vrot.lane.b32.xlu1 %v3356_v5, %s3095_s6  ;;  %v3734_v36 = vpop.permute.xlu1 %1266  ;;  %v3828_v14 = vsub.f32 %v3824_v42, %v3682_v12  ;;  %v1094_v20 = vadd.f32 0.81, %v1091_v17  ;;  %v3872_v52 = vsub.f32 %v3824_v42, %v3710_v22 }
 0x11c   : > { %v1116_v35 = vmul.f32 %v3828_v14, %v3828_v14 }
 0x11d   : > { %1286 = vrot.lane.b32.xlu0 %v3350_v4, %s3095_s6 }
 0x11e   : > { %1346 = vrot.lane.b32.xlu1 %v3340_v1, %s3096_s7 }
 0x121   : > { %1290 = vrot.lane.b32.xlu0 %v3358_v7, %s3095_s6 }
 0x122   : > { %1350 = vrot.lane.b32.xlu1 %v3348_v3, %s3096_s7 }
 0x125   : > { %1348 = vrot.lane.b32.xlu0 %v3342_v2, %s3096_s7 }
 0x126   : > { %1372 = vrot.lane.b32.xlu1 %v3356_v5, %s3096_s7 }
 0x129   : > { %1370 = vrot.lane.b32.xlu0 %v3350_v4, %s3096_s7 }
 0x12a   : > { %1576 = vrot.lane.b32.xlu1 %v3340_v1, %s3092_s29 }
 0x12d   : > { %1374 = vrot.lane.b32.xlu0 %v3358_v7, %s3096_s7 }
 0x12e   : > { %1580 = vrot.lane.b32.xlu1 %v3348_v3, %s3092_s29 }
 0x130   : > { %v3746_v6 = vpop.permute.xlu0 %458 }
 0x131   : > { %1578 = vrot.lane.b32.xlu0 %v3342_v2, %s3092_s29 }
 0x132   : > { %1602 = vrot.lane.b32.xlu1 %v3356_v5, %s3092_s29 }
 0x135   : > { %1600 = vrot.lane.b32.xlu0 %v3350_v4, %s3092_s29 }
 0x136   : > { %1496 = vrot.lane.b32.xlu1 %v3340_v1, %s3091_s26 }
 0x138   : > { %v3773_v44 = vpop.permute.xlu0 %508 }
 0x139   : > { %1604 = vrot.lane.b32.xlu0 %v3358_v7, %s3092_s29  ;;  %4886 = vst [vmem:[#allocation17_spill] sm:$0xff] %v3773_v44 }
 0x13a   : > { %1520 = vrot.lane.b32.xlu1 %v3350_v4, %s3091_s26 }
 0x13c   : > { %v3820_v10 = vpop.permute.xlu0 %516 }
 0x13d   : > { %1498 = vrot.lane.b32.xlu0 %v3342_v2, %s3091_s26  ;;  %4888 = vst [vmem:[#allocation19_spill] sm:$0xff] %v3820_v10 }
 0x13e   : > { %1660 = vrot.lane.b32.xlu1 %v3340_v1, %s3093_s30  ;;  %v3724_v1 = vld [vmem:[#allocation2] sm:$0xff] }
 0x140   : > { %v3750_v49 = vpop.permute.xlu1 %460 }
 0x141   : > { %1522 = vrot.lane.b32.xlu0 %v3356_v5, %s3091_s26  ;;  %4885 = vst [vmem:[#allocation16_spill] sm:$0xff] %v3750_v49 }
 0x142   : > { %1664 = vrot.lane.b32.xlu1 %v3348_v3, %s3093_s30  ;;  %v3732_v3 = vld [vmem:[#allocation2 + $0x10] sm:$0x7] }
 0x145   : > { %1662 = vrot.lane.b32.xlu0 %v3342_v2, %s3093_s30 }
 0x146   : > { %1686 = vrot.lane.b32.xlu1 %v3356_v5, %s3093_s30  ;;  %v3742_v5 = vld [vmem:[#allocation3 + $0x8] sm:$0xff] }
 0x149   : > { %1684 = vrot.lane.b32.xlu0 %v3350_v4, %s3093_s30 }
 0x14a   : > { %1755 = vrot.lane.b32.xlu1 %v3724_v1, %s3094_s5 }
 0x14d   : > { %1688 = vrot.lane.b32.xlu0 %v3358_v7, %s3093_s30  ;;  %v3754_v7 = vld [vmem:[#allocation2 + $0xb] sm:$0xff] }
 0x14e   : > { %1759 = vrot.lane.b32.xlu1 %v3732_v3, %s3094_s5  ;;  %v3758_v27 = vsub.f32 %v3754_v7, %v3342_v2  ;;  %v3777_v2 = vld [vmem:[#allocation2 + $0x13] sm:$0x1]  ;;  %v3788_v39 = vsub.f32 %v3754_v7, %v1082_v54  ;;  %v1115_v54 = vmul.f32 %v3805_v11, %v3805_v11 }
 0x14f   : > { %v3781_v34 = vsub.f32 %v3777_v2, %v3597_v31  ;;  %v3798_v31 = vpop.permute.xlu1 %510  ;;  %v3811_v48 = vsub.f32 %v3777_v2, %v3674_v57  ;;  %v3836_v57 = vsub.f32 %v3792_v53, %v3690_v23  ;;  %v1117_v23 = vmul.f32 %v3818_v37, %v3818_v37 }
 0x150   : > { %v1434_v4 = vmul.f32 %v3758_v27, %v3758_v27  ;;  %4887 = vst [vmem:[#allocation18_spill] sm:$0xff] %v3798_v31  ;;  %v1092_v24 = vmul.f32 %v3788_v39, %v3788_v39 }
 0x151   : > { %1757 = vrot.lane.b32.xlu0 %v3738_v26, %s3094_s5  ;;  %v1009_v9 = vmul.f32 %v3781_v34, %v3781_v34  ;;  %v1093_v12 = vmul.f32 %v3811_v48, %v3811_v48  ;;  %v1120_v63 = vadd.f32 0.81, %v1117_v23  ;;  %v1214_v23 = vmul.f32 %v3872_v52, %v3872_v52 }
 0x152   : > { %1784 = vrot.lane.b32.xlu1 %v3742_v5, %s3094_s5  ;;  %v1437_v59 = vadd.f32 0.81, %v1434_v4  ;;  %v3842_v4 = vsub.f32 %v3754_v7, %v3698_v30  ;;  %v1095_v0 = vadd.f32 0.81, %v1092_v24  ;;  %v3858_v30 = vpop.permute.xlu0 %566  ;;  %v1118_v24 = vadd.f32 0.81, %v1115_v54 }
 0x153   : > { %v1012_v8 = vadd.f32 0.81, %v1009_v9  ;;  %v3846_v61 = vpop.permute.xlu1 %518  ;;  %v3854_v9 = vsub.f32 %v3760_v16, %v3708_v13  ;;  %4890 = vst [vmem:[#allocation21_spill] sm:$0xff] %v3858_v30  ;;  %v1186_v13 = vmul.f32 %v3836_v57, %v3836_v57  ;;  %v1096_v17 = vadd.f32 0.81, %v1093_v12 }
 0x154   : > { %4889 = vst [vmem:[#allocation20_spill] sm:$0xff] %v3846_v61  ;;  %2709 = vrsqrt.f32 %v1437_v59  ;;  %v3864_v59 = vsub.f32 %v3838_v32, %v3700_v21  ;;  %v3878_v21 = vsub.f32 %v3856_v45, %v3718_v58  ;;  %v1119_v12 = vadd.f32 0.81, %v1116_v35 }
 0x155   : > { %1782 = vrot.lane.b32.xlu0 %v3748_v28, %s3094_s5  ;;  %2711 = vrsqrt.f32 %v1451_v15  ;;  %v1187_v15 = vmul.f32 %v3842_v4, %v3842_v4  ;;  %v1213_v22 = vmul.f32 %v3854_v9, %v3854_v9 }
 0x156   : > { %1843 = vrot.lane.b32.xlu1 %v3724_v1, %s3095_s6  ;;  %2713 = vrsqrt.f32 %v1036_v25  ;;  %v2997_v25 = vld [vmem:[#allocation2 + $0x1] sm:$0xff]  ;;  %v1188_v58 = vmul.f32 %v3864_v59, %v3864_v59  ;;  %v1215_v35 = vmul.f32 %v3878_v21, %v3878_v21 }
 0x157   : > { %2715 = vrsqrt.f32 %v1012_v8  ;;  %v3883_v54 = vsub.f32 %v3792_v53, %v2997_v25  ;;  %v2998_v8 = vld [vmem:[#allocation3 + $0x9] sm:$0xff]  ;;  %v3892_v55 = vpop.permute.xlu1 %568  ;;  %v3898_v25 = vpop.permute.xlu0 %574  ;;  %v1190_v46 = vadd.f32 0.81, %v1187_v15  ;;  %v3910_v15 = vld [vmem:[#allocation2 + $0x11] sm:$0x3] }
 0x158   : > { %2717 = vrsqrt.f32 %v1095_v0  ;;  %v3888_v41 = vsub.f32 %v3824_v42, %v2998_v8  ;;  %4891 = vst [vmem:[#allocation22_spill] sm:$0xff] %v3892_v55  ;;  %v1189_v0 = vadd.f32 0.81, %v1186_v13  ;;  %4892 = vst [vmem:[#allocation23_spill] sm:$0xff] %v3898_v25  ;;  %v1216_v8 = vadd.f32 0.81, %v1213_v22 }
 0x159   : > { %1786 = vrot.lane.b32.xlu0 %v3775_v33, %s3094_s5  ;;  %2719 = vrsqrt.f32 %v1094_v20  ;;  %v1433_v20 = vmul.f32 %v3883_v54, %v3883_v54  ;;  %v1191_v13 = vadd.f32 0.81, %v1188_v58  ;;  %v1217_v25 = vadd.f32 0.81, %v1214_v23 }
 0x15a   : > { %1847 = vrot.lane.b32.xlu1 %v3732_v3, %s3095_s6  ;;  %2721 = vrsqrt.f32 %v1118_v24  ;;  %v1449_v24 = vmul.f32 %v3888_v41, %v3888_v41  ;;  %v1218_v58 = vadd.f32 0.81, %v1215_v35 }
 0x15b   : > { %2723 = vrsqrt.f32 %v1096_v17  ;;  %v3914_v17 = vsub.f32 %v3838_v32, %v3910_v15  ;;  %v3926_v61 = vpop.permute.xlu1 %576  ;;  %v1436_v31 = vadd.f32 0.81, %v1433_v20 }
 0x15c   : > { %2725 = vrsqrt.f32 %v1120_v63  ;;  %v3918_v63 = vld [vmem:[#allocation3 + $0x11] sm:$0x3]  ;;  %4893 = vst [vmem:[#allocation24_spill] sm:$0xff] %v3926_v61  ;;  %v1452_v50 = vadd.f32 0.81, %v1449_v24 }
 0x15d   : > { %1845 = vrot.lane.b32.xlu0 %v3738_v26, %s3095_s6  ;;  %2727 = vrsqrt.f32 %v1119_v12  ;;  %v3922_v22 = vsub.f32 %v3856_v45, %v3918_v63 }
 0x15e   : > { %1869 = vrot.lane.b32.xlu1 %v3742_v5, %s3095_s6  ;;  %v3916_v55 = vpop.eup %2709  ;;  %2729 = vrsqrt.f32 %v1189_v0  ;;  %v3930_v0 = vpop.permute.xlu0 %673 }
 0x15f   : > { %v3924_v12 = vpop.eup %2711  ;;  %2731 = vrsqrt.f32 %v1190_v46  ;;  %4894 = vst [vmem:[#allocation25_spill] sm:$0xff] %v3930_v0  ;;  %v1435_v46 = vmul.f32 %v3914_v17, %v3914_v17  ;;  %v1450_v61 = vmul.f32 %v3922_v22, %v3922_v22  ;;  %v3948_v10 = vpop.permute.xlu1 %675 }
 0x160   : > { %v2714_v30 = vpop.eup %2713  ;;  %2733 = vrsqrt.f32 %v1216_v8  ;;  %4896 = vst [vmem:[#allocation27_spill] sm:$0xff] %v3948_v10 }
 0x161   : > { %1867 = vrot.lane.b32.xlu0 %v3748_v28, %s3095_s6  ;;  %v2716_v23 = vpop.eup %2715  ;;  %2735 = vrsqrt.f32 %v1191_v13  ;;  %v1042_v20 = vmul.f32 %v2714_v30, %v3771_v60  ;;  %v1438_v60 = vadd.f32 0.81, %v1435_v46 }
 0x162   : > { %1927 = vrot.lane.b32.xlu1 %v3724_v1, %s3096_s7  ;;  %v2718_v35 = vpop.eup %2717  ;;  %2737 = vrsqrt.f32 %v1217_v25  ;;  %v3941_v24 = vpop.permute.xlu0 %757  ;;  %v1018_v0 = vmul.f32 %v2716_v23, %v3781_v34  ;;  %v3946_v25 = vsub.f32 %v3792_v53, %v3724_v1 }
 0x163   : > { %v2720_v49 = vpop.eup %2719  ;;  %2739 = vrsqrt.f32 %v1218_v58  ;;  %4895 = vst [vmem:[#allocation26_spill] sm:$0xff] %v3941_v24  ;;  %v1453_v58 = vadd.f32 0.81, %v1450_v61  ;;  %v3964_v56 = vpop.permute.xlu1 %759  ;;  %v1101_v61 = vmul.f32 %v2718_v35, %v3788_v39 }
 0x164   : > { %v2722_v8 = vpop.eup %2721  ;;  %2741 = vrsqrt.f32 %v1436_v31  ;;  %v3954_v31 = vsub.f32 %v3768_v43, %v3580_v51  ;;  %v2014_v46 = vmul.f32 %v3946_v25, %v3946_v25  ;;  %4898 = vst [vmem:[#allocation29_spill] sm:$0xff] %v3964_v56 }
 0x165   : > { %1871 = vrot.lane.b32.xlu0 %v3775_v33, %s3095_s6  ;;  %v2724_v13 = vpop.eup %2723  ;;  %2743 = vrsqrt.f32 %v1452_v50  ;;  %v1045_v50 = vsub.f32 %v1018_v0, %v1042_v20  ;;  %v1124_v20 = vmul.f32 %v2722_v8, %v3805_v11 }
 0x166   : > { %1931 = vrot.lane.b32.xlu1 %v3732_v3, %s3096_s7  ;;  %v2726_v30 = vpop.eup %2725  ;;  %v3958_v23 = vpop.permute.xlu0 %841  ;;  %v1102_v38 = vmul.f32 %v2724_v13, %v3811_v48  ;;  %2745 = vrsqrt.f32 %v1438_v60  ;;  %v953_v43 = vmul.f32 %v3954_v31, %v3954_v31  ;;  %v1100_v13 = vmul.f32 %v2720_v49, %v3796_v62 }
 0x167   : > { %v2728_v24 = vpop.eup %2727  ;;  %4897 = vst [vmem:[#allocation28_spill] sm:$0xff] %v3958_v23  ;;  %v1126_v10 = vmul.f32 %v2726_v30, %v3818_v37  ;;  %2747 = vrsqrt.f32 %v1453_v58  ;;  %v1048_v48 = vmul.f32 %v1045_v50, %v1045_v50  ;;  %v3978_v60 = vsub.f32 %v3792_v53, %v3720_v40 }
 0x168   : > { %v2730_v34 = vpop.eup %2729  ;;  %v1125_v0 = vmul.f32 %v2728_v24, %v3828_v14  ;;  %v2017_v14 = vadd.f32 0.81, %v2014_v46  ;;  %v3982_v24 = vpop.permute.xlu1 %843  ;;  %v956_v49 = vadd.f32 0.81, %v953_v43  ;;  %v1127_v56 = vsub.f32 %v1100_v13, %v1124_v20 }
 0x169   : > { %1929 = vrot.lane.b32.xlu0 %v3738_v26, %s3096_s7  ;;  %v2732_v44 = vpop.eup %2731  ;;  %v1129_v35 = vsub.f32 %v1102_v38, %v1126_v10  ;;  %4900 = vst [vmem:[#allocation31_spill] sm:$0xff] %v3982_v24  ;;  %v1195_v58 = vmul.f32 %v2730_v34, %v3836_v57  ;;  %v1051_v40 = vadd.f32 0.1, %v1048_v48  ;;  %v3995_v46 = vsub.f32 %v3754_v7, %v3730_v47 }
 0x16a   : > { %1953 = vrot.lane.b32.xlu1 %v3742_v5, %s3096_s7  ;;  %v2734_v51 = vpop.eup %2733  ;;  %v1128_v8 = vsub.f32 %v1101_v61, %v1125_v0  ;;  %v1274_v57 = vmul.f32 %v3978_v60, %v3978_v60  ;;  %v1443_v43 = vmul.f32 %v3916_v55, %v3758_v27  ;;  %v4018_v48 = vsub.f32 %v3754_v7, %v3738_v26 }
 0x16b   : > { %v2736_v37 = vpop.eup %2735  ;;  %v1222_v62 = vmul.f32 %v2734_v51, %v3854_v9  ;;  %v1132_v51 = vmul.f32 %v1129_v35, %v1129_v35  ;;  %2749 = vrsqrt.f32 %v2017_v14 }
 0x16c   : > { %v2738_v30 = vpop.eup %2737  ;;  %v1197_v9 = vmul.f32 %v2736_v37, %v3864_v59  ;;  %v1131_v59 = vmul.f32 %v1128_v8, %v1128_v8  ;;  %v1277_v20 = vadd.f32 0.81, %v1274_v57  ;;  %2751 = vrcp.f32 %v1051_v40 }
 0x16d   : > { %1951 = vrot.lane.b32.xlu0 %v3748_v28, %s3096_s7  ;;  %v2740_v39 = vpop.eup %2739  ;;  %v1223_v38 = vmul.f32 %v2738_v30, %v3872_v52  ;;  %v4004_v52 = vsub.f32 %v3838_v32, %v3734_v36  ;;  %v1130_v36 = vmul.f32 %v1127_v56, %v1127_v56  ;;  %v1135_v55 = vadd.f32 0.1, %v1132_v51 }
 0x16e   : > { %2157 = vrot.lane.b32.xlu1 %v3724_v1, %s3092_s29  ;;  %v2742_v11 = vpop.eup %2741  ;;  %v1224_v10 = vmul.f32 %v2740_v39, %v3878_v21  ;;  %v1225_v21 = vsub.f32 %v1195_v58, %v1222_v62  ;;  %2753 = vrsqrt.f32 %v956_v49  ;;  %v1134_v13 = vadd.f32 0.1, %v1131_v59 }
 0x16f   : > { %v2744_v50 = vpop.eup %2743  ;;  %v1442_v47 = vmul.f32 %v2742_v11, %v3883_v54  ;;  %v1276_v56 = vmul.f32 %v4004_v52, %v4004_v52  ;;  %v1133_v35 = vadd.f32 0.1, %v1130_v36  ;;  %2755 = vrsqrt.f32 %v1277_v20 }
 0x170   : > { %v1458_v61 = vmul.f32 %v2744_v50, %v3888_v41  ;;  %v2746_v0 = vpop.eup %2745  ;;  %v1228_v30 = vmul.f32 %v1225_v21, %v1225_v21  ;;  %v4038_v50 = vsub.f32 %v3824_v42, %v3742_v5  ;;  %2757 = vrcp.f32 %v1135_v55 }
 0x171   : > { %1955 = vrot.lane.b32.xlu0 %v3775_v33, %s3096_s7  ;;  %v2748_v54 = vpop.eup %2747  ;;  %v1444_v14 = vmul.f32 %v2746_v0, %v3914_v17  ;;  %v1279_v49 = vadd.f32 0.81, %v1276_v56  ;;  %v4042_v40 = vsub.f32 %v3760_v16, %v3748_v28  ;;  %v4050_v17 = vsub.f32 %v3777_v2, %v3570_v19 }
 0x172   : > { %2161 = vrot.lane.b32.xlu1 %v3732_v3, %s3092_s29  ;;  %v1461_v39 = vsub.f32 %v1443_v43, %v1458_v61  ;;  %v1459_v62 = vmul.f32 %v2748_v54, %v3922_v22  ;;  %2759 = vrcp.f32 %v1134_v13  ;;  %v1231_v22 = vadd.f32 0.1, %v1228_v30 }
 0x173   : > { %2761 = vrcp.f32 %v1133_v35  ;;  %v2015_v57 = vmul.f32 %v4018_v48, %v4018_v48  ;;  %v2030_v19 = vmul.f32 %v4038_v50, %v4038_v50  ;;  %v2029_v2 = vmul.f32 %v4042_v40, %v4042_v40 }
 0x174   : > { %v929_v61 = vmul.f32 %v4050_v17, %v4050_v17 }
 0x175   : > { %2159 = vrot.lane.b32.xlu0 %v3738_v26, %s3092_s29  ;;  %v4066_v43 = vpop.eup %2749  ;;  %v2032_v20 = vadd.f32 0.81, %v2029_v2 }
 0x176   : > { %2183 = vrot.lane.b32.xlu1 %v3742_v5, %s3092_s29  ;;  %v2752_v36 = vpop.eup %2751 }
 0x177   : > { %v3980_v23 = vpop.permute.xlu0 %987  ;;  %v1061_v30 = vrot.slane %v2752_v36, 1  ;;  %v4116_v36 = vld [vmem:[#allocation3 + $0x13] sm:$0x7] }
 0x178   : > { %4899 = vst [vmem:[#allocation30_spill] sm:$0xff] %v3980_v23  ;;  %v1196_v23 = vmul.f32 %v2732_v44, %v3842_v4  ;;  %v1457_v4 = vmul.f32 %v3924_v12, %v3764_v29  ;;  %v1275_v29 = vmul.f32 %v3995_v46, %v3995_v46  ;;  %v1227_v12 = vsub.f32 %v1197_v9, %v1224_v10 }
 0x179   : > { %2181 = vrot.lane.b32.xlu0 %v3748_v28, %s3092_s29  ;;  %v1464_v10 = vmul.f32 %v1461_v39, %v1461_v39 }
 0x17a   : > { %2077 = vrot.lane.b32.xlu1 %v3724_v1, %s3091_s26  ;;  %v1226_v37 = vsub.f32 %v1196_v23, %v1223_v38  ;;  %v1460_v23 = vsub.f32 %v1442_v47, %v1457_v4  ;;  %v1278_v8 = vadd.f32 0.81, %v1275_v29  ;;  %v1230_v58 = vmul.f32 %v1227_v12, %v1227_v12  ;;  %v2754_v12 = vpop.eup %2753 }
 0x17b   : > { %v4000_v34 = vpop.permute.xlu0 %665  ;;  %v1462_v47 = vsub.f32 %v1444_v14, %v1459_v62  ;;  %v1467_v0 = vadd.f32 0.1, %v1464_v10  ;;  %v2756_v56 = vpop.eup %2755  ;;  %v4088_v62 = vld [vmem:[#allocation2 + $0x13] sm:$0x7]  ;;  %v4907_v10 = vrot.slane %v3648_v18, 1 }
 0x17c   : > { %v4006_v44 = vpop.permute.xlu1 %989  ;;  %v1229_v11 = vmul.f32 %v1226_v37, %v1226_v37  ;;  %2763 = vrsqrt.f32 %v1278_v8  ;;  %v1233_v4 = vadd.f32 0.1, %v1230_v58  ;;  %v2018_v37 = vadd.f32 0.81, %v2015_v57 }
 0x17d   : > { %4901 = vst [vmem:[#allocation32_spill] sm:$0xff] %v4006_v44  ;;  %2185 = vrot.lane.b32.xlu0 %v3775_v33, %s3092_s29  ;;  %2765 = vrsqrt.f32 %v1279_v49  ;;  %v1465_v29 = vmul.f32 %v1462_v47, %v1462_v47 }
 0x17e   : > { %2101 = vrot.lane.b32.xlu1 %v3748_v28, %s3091_s26  ;;  %v1232_v9 = vadd.f32 0.1, %v1229_v11  ;;  %2767 = vrcp.f32 %v1231_v22 }
 0x17f   : > { %v4028_v27 = vpop.permute.xlu0 %749  ;;  %v1468_v35 = vadd.f32 0.1, %v1465_v29  ;;  %v4121_v29 = vmul.f32 %v2756_v56, %v3978_v60 }
 0x180   : > { %v4026_v41 = vpop.permute.xlu1 %667  ;;  %4902 = vst [vmem:[#allocation33_spill] sm:$0xff] %v4028_v27  ;;  %2769 = vrcp.f32 %v1232_v9  ;;  %v1062_v9 = vsel %vm659_vm1, %v4907_v10, %v1061_v30 }
 0x181   : > { %2079 = vrot.lane.b32.xlu0 %v3738_v26, %s3091_s26  ;;  %2771 = vrcp.f32 %v1233_v4 }
 0x182   : > { %2241 = vrot.lane.b32.xlu1 %v3724_v1, %s3093_s30  ;;  %v1463_v1 = vmul.f32 %v1460_v23, %v1460_v23  ;;  %v932_v23 = vadd.f32 0.81, %v929_v61 }
 0x183   : > { %v4054_v51 = vpop.permute.xlu0 %833 }
 0x184   : > { %v4044_v38 = vpop.permute.xlu1 %751  ;;  %4904 = vst [vmem:[#allocation35_spill] sm:$0xff] %v4054_v51  ;;  %v1466_v21 = vadd.f32 0.1, %v1463_v1 }
 0x185   : > { %4903 = vst [vmem:[#allocation34_spill] sm:$0xff] %v4044_v38  ;;  %2103 = vrot.lane.b32.xlu0 %v3742_v5, %s3091_s26 }
 0x186   : > { %2245 = vrot.lane.b32.xlu1 %v3732_v3, %s3093_s30  ;;  %2773 = vrcp.f32 %v1466_v21  ;;  %v4111_v21 = vmul.f32 %v2754_v12, %v3954_v31  ;;  %v4130_v12 = vsub.f32 %v4116_v36, %v3775_v33 }
 0x187   : > { %2775 = vrcp.f32 %v1467_v0 }
 0x188   : > { %v4062_v59 = vpop.permute.xlu1 %835  ;;  %2777 = vrsqrt.f32 %v2018_v37 }
 0x189   : > { %4905 = vst [vmem:[#allocation36_spill] sm:$0xff] %v4062_v59  ;;  %2243 = vrot.lane.b32.xlu0 %v3738_v26, %s3093_s30  ;;  %v2033_v26 = vadd.f32 0.81, %v2030_v19 }
 0x18a   : > { %2267 = vrot.lane.b32.xlu1 %v3742_v5, %s3093_s30  ;;  %v2758_v5 = vpop.eup %2757 }
 0x18b   : > { %v4072_v54 = vpop.permute.xlu0 %1063  ;;  %v4081_v11 = vpop.eup %2759  ;;  %2779 = vrsqrt.f32 %v2033_v26  ;;  %v1145_v19 = vrot.slane %v2758_v5, 1 }
 0x18c   : > { %4906 = vst [vmem:[#allocation37_spill] sm:$0xff] %v4072_v54  ;;  %v1289_v55 = vpop.permute.xlu1 %1288  ;;  %v4090_v8 = vpop.eup %2761  ;;  %2781 = vrsqrt.f32 %v2032_v20  ;;  %v4911_v54 = vld [vmem:[#allocation19_spill] sm:$0xff] }
 0x18d   : > { %2265 = vrot.lane.b32.xlu0 %v3748_v28, %s3093_s30  ;;  %v4077_v13 = vsub.f32 %v3824_v42, %v1289_v55  ;;  %v2764_v49 = vpop.eup %2763  ;;  %2783 = vrsqrt.f32 %v932_v23  ;;  %v1142_v20 = vrot.slane %v4090_v8, 1 }
 0x18e   : > { %1500 = vrot.lane.b32.xlu1 %v3910_v15, %s3091_s26  ;;  %v4096_v15 = vsub.f32 %v4088_v62, %v3732_v3  ;;  %v2766_v57 = vpop.eup %2765  ;;  %v1143_v3 = vrot.slane %v4081_v11, 1  ;;  %2785 = vrcp.f32 %v1468_v35  ;;  %v4133_v23 = vmul.f32 %v2764_v49, %v3995_v46  ;;  %v4908_v35 = vld [vmem:[#allocation7_spill] sm:$0xff] }
 0x18f   : > { %v1287_v39 = vpop.permute.xlu0 %1286  ;;  %v1299_v28 = vmul.f32 %v4077_v13, %v4077_v13  ;;  %v4108_v2 = vpop.eup %2767  ;;  %v4136_v60 = vmul.f32 %v2766_v57, %v4004_v52 }
 0x190   : > { %v4086_v14 = vsub.f32 %v3760_v16, %v1287_v39  ;;  %v1347_v58 = vpop.permute.xlu1 %1346  ;;  %v4118_v37 = vpop.eup %2769  ;;  %v2016_v31 = vmul.f32 %v4096_v15, %v4096_v15  ;;  %v1146_v46 = vsel %vm659_vm1, %v1143_v3, %v1145_v19  ;;  %v1241_v52 = vrot.slane %v4108_v2, 2 }
 0x191   : > { %2269 = vrot.lane.b32.xlu0 %v3775_v33, %s3093_s30  ;;  %v1302_v1 = vadd.f32 0.81, %v1299_v28  ;;  %v4104_v47 = vsub.f32 %v3792_v53, %v1347_v58  ;;  %v2772_v55 = vpop.eup %2771  ;;  %v464_v28 = vadd.f32 %v4908_v35, %v3746_v6  ;;  %v2031_v19 = vmul.f32 %v4130_v12, %v4130_v12 }
 0x192   : > { %v1298_v22 = vmul.f32 %v4086_v14, %v4086_v14  ;;  %1065 = vrot.lane.b32.xlu1 %v1062_v9, %s3096_s7  ;;  %v4140_v56 = vpop.eup %2773  ;;  %v1144_v9 = vsel %vm659_vm1, %v1142_v20, %v1143_v3  ;;  %v1244_v57 = vrot.slane %v2772_v55, 2 }
 0x193   : > { %v1291_v4 = vpop.permute.xlu0 %1290  ;;  %2787 = vrsqrt.f32 %v1302_v1  ;;  %v1358_v30 = vmul.f32 %v4104_v47, %v4104_v47  ;;  %v4151_v39 = vpop.eup %2775  ;;  %v1242_v1 = vrot.slane %v4118_v37, 2  ;;  %v2034_v51 = vadd.f32 0.81, %v2031_v19 }
 0x194   : > { %v1301_v61 = vadd.f32 0.81, %v1298_v22  ;;  %v4114_v0 = vsub.f32 %v3856_v45, %v1291_v4  ;;  %v1351_v26 = vpop.permute.xlu1 %1350  ;;  %v4159_v22 = vpop.eup %2777  ;;  %v2019_v4 = vadd.f32 0.81, %v2016_v31  ;;  %v1475_v31 = vrot.slane %v4140_v56, 2 }
 0x195   : > { %1524 = vrot.lane.b32.xlu0 %v3918_v63, %s3091_s26  ;;  %v4145_v5 = vsub.f32 %v3838_v32, %v1351_v26  ;;  %v4166_v6 = vpop.eup %2779  ;;  %v1476_v55 = vrot.slane %v4151_v39, 2  ;;  %v1245_v59 = vsel %vm1240_vm2, %v1242_v1, %v1244_v57 }
 0x196   : > { %2789 = vrsqrt.f32 %v1301_v61  ;;  %v1300_v63 = vmul.f32 %v4114_v0, %v4114_v0  ;;  %1073 = vrot.lane.b32.xlu1 %v3648_v18, %s3091_s26  ;;  %v4909_v18 = vld [vmem:[#allocation15_spill] sm:$0xff]  ;;  %v4910_v61 = vld [vmem:[#allocation17_spill] sm:$0xff]  ;;  %v2782_v35 = vpop.eup %2781 }
 0x197   : > { %v1349_v33 = vpop.permute.xlu0 %1348  ;;  %v514_v26 = vadd.f32 %v4910_v61, %v464_v28  ;;  %v1360_v3 = vmul.f32 %v4145_v5, %v4145_v5  ;;  %v4179_v28 = vpop.eup %2783 }
 0x198   : > { %v1303_v58 = vadd.f32 0.81, %v1300_v63  ;;  %v4156_v49 = vsub.f32 %v3754_v7, %v1349_v33  ;;  %v1373_v10 = vpop.permute.xlu1 %1372  ;;  %v2786_v44 = vpop.eup %2785 }
 0x199   : > { %1071 = vrot.lane.b32.xlu0 %v4909_v18, %s3091_s26  ;;  %v4172_v33 = vsub.f32 %v3824_v42, %v1373_v10  ;;  %v1361_v18 = vadd.f32 0.81, %v1358_v30  ;;  %v1243_v30 = vsel %vm1240_vm2, %v1241_v52, %v1242_v1  ;;  %v4188_v24 = vadd.f32 %v4911_v54, %v514_v26 }
 0x19a   : > { %2791 = vrsqrt.f32 %v1303_v58  ;;  %v1359_v63 = vmul.f32 %v4156_v49, %v4156_v49  ;;  %1149 = vrot.lane.b32.xlu1 %v1146_v46, %s3095_s6  ;;  %v1363_v54 = vadd.f32 0.81, %v1360_v3  ;;  %v4201_v1 = vsel %vm1240_vm2, %v1475_v31, %v1476_v55 }
 0x19b   : > { %v1371_v20 = vpop.permute.xlu0 %1370  ;;  %v1383_v61 = vmul.f32 %v4172_v33, %v4172_v33  ;;  %2793 = vrsqrt.f32 %v2019_v4 }
 0x19c   : > { %v1362_v58 = vadd.f32 0.81, %v1359_v63  ;;  %v4184_v10 = vsub.f32 %v3760_v16, %v1371_v20  ;;  %v1577_v46 = vpop.permute.xlu1 %1576 }
 0x19d   : > { %1147 = vrot.lane.b32.xlu0 %v1144_v9, %s3095_s6  ;;  %v2788_v63 = vpop.eup %2787  ;;  %v1386_v38 = vadd.f32 0.81, %v1383_v61  ;;  %v4195_v27 = vsub.f32 %v3792_v53, %v1577_v46 }
 0x19e   : > { %2795 = vrsqrt.f32 %v1362_v58  ;;  %v1382_v20 = vmul.f32 %v4184_v10, %v4184_v10  ;;  %v1308_v52 = vmul.f32 %v2788_v63, %v4077_v13  ;;  %1157 = vrot.lane.b32.xlu1 %v4081_v11, %s3091_s26  ;;  %v1478_v11 = vrot.slane %v2786_v44, 2 }
 0x19f   : > { %2797 = vrsqrt.f32 %v1361_v18  ;;  %v1375_v9 = vpop.permute.xlu0 %1374  ;;  %v1588_v19 = vmul.f32 %v4195_v27, %v4195_v27  ;;  %v2038_v44 = vmul.f32 %v2782_v35, %v4042_v40 }
 0x1a0   : > { %v2790_v57 = vpop.eup %2789  ;;  %2799 = vrsqrt.f32 %v1386_v38  ;;  %v1385_v4 = vadd.f32 0.81, %v1382_v20  ;;  %v4206_v26 = vsub.f32 %v3856_v45, %v1375_v9  ;;  %v1311_v13 = vsub.f32 %v4133_v23, %v1308_v52  ;;  %v1581_v3 = vpop.permute.xlu1 %1580 }
 0x1a1   : > { %v1307_v18 = vmul.f32 %v2790_v57, %v4086_v14  ;;  %1155 = vrot.lane.b32.xlu0 %v4090_v8, %s3091_s26  ;;  %2801 = vrsqrt.f32 %v2034_v51  ;;  %v1591_v31 = vadd.f32 0.81, %v1588_v19  ;;  %v4215_v58 = vsub.f32 %v3838_v32, %v1581_v3 }
 0x1a2   : > { %2803 = vrsqrt.f32 %v1385_v4  ;;  %v1384_v38 = vmul.f32 %v4206_v26, %v4206_v26  ;;  %v1314_v61 = vmul.f32 %v1311_v13, %v1311_v13  ;;  %1248 = vrot.lane.b32.xlu1 %v1245_v59, %s3097_s8  ;;  %v2023_v23 = vmul.f32 %v4066_v43, %v3946_v25 }
 0x1a3   : > { %v1310_v46 = vsub.f32 %v4121_v29, %v1307_v18  ;;  %v1579_v14 = vpop.permute.xlu0 %1578  ;;  %2805 = vrsqrt.f32 %v1363_v54  ;;  %v1590_v63 = vmul.f32 %v4215_v58, %v4215_v58  ;;  %v4235_v43 = vsel %vm1240_vm2, %v1476_v55, %v1478_v11 }
 0x1a4   : > { %v2792_v51 = vpop.eup %2791  ;;  %v1387_v8 = vadd.f32 0.81, %v1384_v38  ;;  %v4225_v20 = vsub.f32 %v3754_v7, %v1579_v14  ;;  %v1317_v52 = vadd.f32 0.1, %v1314_v61  ;;  %2807 = vrsqrt.f32 %v1591_v31  ;;  %v1603_v59 = vpop.permute.xlu1 %1602 }
 0x1a5   : > { %v1313_v9 = vmul.f32 %v1310_v46, %v1310_v46  ;;  %v1309_v29 = vmul.f32 %v2792_v51, %v4114_v0  ;;  %1246 = vrot.lane.b32.xlu0 %v1243_v30, %s3097_s8  ;;  %v4232_v40 = vsub.f32 %v3824_v42, %v1603_v59  ;;  %v4237_v35 = vpop.eup %2793  ;;  %v1593_v0 = vadd.f32 0.81, %v1590_v63 }
 0x1a6   : > { %2809 = vrsqrt.f32 %v1387_v8  ;;  %v1589_v25 = vmul.f32 %v4225_v20, %v4225_v20  ;;  %1256 = vrot.lane.b32.xlu1 %v4118_v37, %s3091_s26  ;;  %v2041_v4 = vsub.f32 %v2023_v23, %v2038_v44  ;;  %v4252_v37 = vmul.f32 %v4159_v22, %v4018_v48 }
 0x1a7   : > { %v1316_v54 = vadd.f32 0.1, %v1313_v9  ;;  %v1312_v57 = vsub.f32 %v4136_v60, %v1309_v29  ;;  %v1601_v30 = vpop.permute.xlu0 %1600  ;;  %2811 = vrcp.f32 %v1317_v52  ;;  %v1613_v18 = vmul.f32 %v4232_v40, %v4232_v40 }
 0x1a8   : > { %v2796_v19 = vpop.eup %2795  ;;  %v1592_v13 = vadd.f32 0.81, %v1589_v25  ;;  %v4245_v55 = vsub.f32 %v3760_v16, %v1601_v30  ;;  %v1497_v31 = vpop.permute.xlu1 %1496  ;;  %v2044_v51 = vmul.f32 %v2041_v4, %v2041_v4 }
 0x1a9   : > { %v2798_v3 = vpop.eup %2797  ;;  %2813 = vrcp.f32 %v1316_v54  ;;  %v1315_v11 = vmul.f32 %v1312_v57, %v1312_v57  ;;  %v1368_v60 = vmul.f32 %v2796_v19, %v4156_v49  ;;  %1254 = vrot.lane.b32.xlu0 %v4108_v2, %s3091_s26  ;;  %v1616_v61 = vadd.f32 0.81, %v1613_v18 }
 0x1aa   : > { %v2800_v38 = vpop.eup %2799  ;;  %2815 = vrsqrt.f32 %v1592_v13  ;;  %v1612_v46 = vmul.f32 %v4245_v55, %v4245_v55  ;;  %v4257_v14 = vsub.f32 %v3792_v53, %v1497_v31  ;;  %v1367_v52 = vmul.f32 %v2798_v3, %v4104_v47 }
 0x1ab   : > { %v4259_v23 = vpop.eup %2801  ;;  %v1318_v49 = vadd.f32 0.1, %v1315_v11  ;;  %v1392_v44 = vmul.f32 %v2800_v38, %v4172_v33  ;;  %2817 = vrsqrt.f32 %v1593_v0  ;;  %v1605_v2 = vpop.permute.xlu0 %1604  ;;  %v4276_v47 = vmul.f32 %v4166_v6, %v4038_v50 }
 0x1ac   : > { %v2804_v8 = vpop.eup %2803  ;;  %2819 = vrsqrt.f32 %v1616_v61  ;;  %v1615_v48 = vadd.f32 0.81, %v1612_v46  ;;  %v1508_v22 = vmul.f32 %v4257_v14, %v4257_v14  ;;  %v4265_v63 = vsub.f32 %v3856_v45, %v1605_v2  ;;  %v1521_v59 = vpop.permute.xlu1 %1520 }
 0x1ad   : > { %2821 = vrcp.f32 %v1318_v49  ;;  %v1395_v9 = vsub.f32 %v1368_v60, %v1392_v44  ;;  %v1391_v29 = vmul.f32 %v2804_v8, %v4184_v10  ;;  %v2806_v33 = vpop.eup %2805  ;;  %v4272_v57 = vsub.f32 %v3760_v16, %v1521_v59 }
 0x1ae   : > { %2823 = vrsqrt.f32 %v1615_v48  ;;  %v1511_v25 = vadd.f32 0.81, %v1508_v22  ;;  %v1614_v54 = vmul.f32 %v4265_v63, %v4265_v63  ;;  %v2808_v0 = vpop.eup %2807  ;;  %v2047_v13 = vadd.f32 0.1, %v2044_v51 }
 0x1af   : > { %v1398_v30 = vmul.f32 %v1395_v9, %v1395_v9  ;;  %v1394_v4 = vsub.f32 %v1367_v52, %v1391_v29  ;;  %v1499_v19 = vpop.permute.xlu0 %1498  ;;  %v1532_v3 = vmul.f32 %v4272_v57, %v4272_v57  ;;  %v1369_v60 = vmul.f32 %v2806_v33, %v4145_v5 }
 0x1b0   : > { %v2810_v10 = vpop.eup %2809  ;;  %2825 = vrsqrt.f32 %v1511_v25  ;;  %v1617_v18 = vadd.f32 0.81, %v1614_v54  ;;  %v4281_v11 = vsub.f32 %v3754_v7, %v1499_v19  ;;  %v1661_v46 = vpop.permute.xlu1 %1660  ;;  %v1597_v5 = vmul.f32 %v2808_v0, %v4195_v27 }
 0x1b1   : > { %v1401_v31 = vadd.f32 0.1, %v1398_v30  ;;  %v1397_v38 = vmul.f32 %v1394_v4, %v1394_v4  ;;  %v1393_v61 = vmul.f32 %v2810_v10, %v4206_v26  ;;  %v4285_v49 = vpop.eup %2811  ;;  %v1535_v50 = vadd.f32 0.81, %v1532_v3 }
 0x1b2   : > { %2827 = vrsqrt.f32 %v1617_v18  ;;  %v1509_v6 = vmul.f32 %v4281_v11, %v4281_v11  ;;  %v4290_v44 = vsub.f32 %v3792_v53, %v1661_v46  ;;  %v1326_v18 = vrot.slane %v4285_v49, 2 }
 0x1b3   : > { %v4292_v2 = vpop.eup %2813  ;;  %v1400_v51 = vadd.f32 0.1, %v1397_v38  ;;  %v1396_v8 = vsub.f32 %v1369_v60, %v1393_v61  ;;  %v1523_v48 = vpop.permute.xlu0 %1522  ;;  %2829 = vrcp.f32 %v2047_v13 }
 0x1b4   : > { %v2816_v26 = vpop.eup %2815  ;;  %2831 = vrsqrt.f32 %v1535_v50  ;;  %v1512_v22 = vadd.f32 0.81, %v1509_v6  ;;  %v1672_v52 = vmul.f32 %v4290_v44, %v4290_v44  ;;  %v4298_v9 = vsub.f32 %v3824_v42, %v1523_v48  ;;  %v1665_v25 = vpop.permute.xlu1 %1664 }
 0x1b5   : > { %v2818_v29 = vpop.eup %2817  ;;  %2833 = vrcp.f32 %v1401_v31  ;;  %v1399_v59 = vmul.f32 %v1396_v8, %v1396_v8  ;;  %v1598_v33 = vmul.f32 %v2816_v26, %v4225_v20  ;;  %v1325_v27 = vrot.slane %v4292_v2, 2 }
 0x1b6   : > { %v2820_v54 = vpop.eup %2819  ;;  %2835 = vrcp.f32 %v1400_v51  ;;  %v1675_v0 = vadd.f32 0.81, %v1672_v52  ;;  %v1533_v30 = vmul.f32 %v4298_v9, %v4298_v9  ;;  %v4305_v4 = vsub.f32 %v3838_v32, %v1665_v25 }
 0x1b7   : > { %v2822_v19 = vpop.eup %2821  ;;  %v1402_v13 = vadd.f32 0.1, %v1399_v59  ;;  %v1622_v10 = vmul.f32 %v2820_v54, %v4232_v40  ;;  %2837 = vrsqrt.f32 %v1512_v22  ;;  %v1663_v20 = vpop.permute.xlu0 %1662  ;;  %v1599_v60 = vmul.f32 %v2818_v29, %v4215_v58 }
 0x1b8   : > { %v2824_v3 = vpop.eup %2823  ;;  %v1536_v31 = vadd.f32 0.81, %v1533_v30  ;;  %v1674_v38 = vmul.f32 %v4305_v4, %v4305_v4  ;;  %v4313_v61 = vsub.f32 %v3754_v7, %v1663_v20  ;;  %2839 = vrsqrt.f32 %v1675_v0  ;;  %v1687_v50 = vpop.permute.xlu1 %1686 }
 0x1b9   : > { %v1625_v32 = vsub.f32 %v1598_v33, %v1622_v10  ;;  %v1621_v46 = vmul.f32 %v2824_v3, %v4245_v55  ;;  %v1327_v40 = vsel %vm1240_vm2, %v1325_v27, %v1326_v18  ;;  %v4321_v8 = vsub.f32 %v3824_v42, %v1687_v50 }
 0x1ba   : > { %v2826_v6 = vpop.eup %2825  ;;  %2841 = vrsqrt.f32 %v1536_v31  ;;  %v1677_v51 = vadd.f32 0.81, %v1674_v38  ;;  %1330 = vrot.lane.b32.xlu0 %v1327_v40, %s3093_s30  ;;  %v1673_v58 = vmul.f32 %v4313_v61, %v4313_v61  ;;  %v1328_v26 = vrot.slane %v2822_v19, 2 }
 0x1bb   : > { %2843 = vrcp.f32 %v1402_v13  ;;  %v1628_v7 = vmul.f32 %v1625_v32, %v1625_v32  ;;  %v1624_v48 = vsub.f32 %v1597_v5, %v1621_v46  ;;  %v1685_v55 = vpop.permute.xlu0 %1684  ;;  %v1517_v52 = vmul.f32 %v2826_v6, %v4257_v14  ;;  %v3001_v14 = vld [vmem:[#allocation2 + $0x10] sm:$0x7] }
 0x1bc   : > { %v2828_v22 = vpop.eup %2827  ;;  %v1676_v29 = vadd.f32 0.81, %v1673_v58  ;;  %v1697_v59 = vmul.f32 %v4321_v8, %v4321_v8  ;;  %v4327_v33 = vsub.f32 %v3760_v16, %v1685_v55  ;;  %2845 = vrsqrt.f32 %v1677_v51  ;;  %v1756_v54 = vpop.permute.xlu1 %1755  ;;  %v3002_v51 = vld [vmem:[#allocation3 + $0x10] sm:$0x7] }
 0x1bd   : > { %v4329_v25 = vpop.eup %2829  ;;  %v1627_v27 = vmul.f32 %v1624_v48, %v1624_v48  ;;  %v1623_v42 = vmul.f32 %v2828_v22, %v4265_v63  ;;  %v1329_v5 = vsel %vm1240_vm2, %v1326_v18, %v1328_v26  ;;  %v4338_v19 = vsub.f32 %v3792_v53, %v1756_v54  ;;  %v4378_v54 = vld [vmem:[#allocation3 + $0xb] sm:$0xff] }
 0x1be   : > { %v2832_v0 = vpop.eup %2831  ;;  %2847 = vrsqrt.f32 %v1676_v29  ;;  %v1700_v30 = vadd.f32 0.81, %v1697_v59  ;;  %2081 = vrot.lane.b32.xlu0 %v3001_v14, %s3091_s26  ;;  %1332 = vrot.lane.b32.xlu1 %v1329_v5, %s3093_s30  ;;  %v1696_v16 = vmul.f32 %v4327_v33, %v4327_v33  ;;  %v1631_v63 = vadd.f32 0.1, %v1628_v7 }
 0x1bf   : > { %v4340_v13 = vpop.eup %2833  ;;  %v1630_v10 = vadd.f32 0.1, %v1627_v27  ;;  %v1626_v18 = vsub.f32 %v1599_v60, %v1623_v42  ;;  %v1541_v20 = vmul.f32 %v2832_v0, %v4272_v57  ;;  %v1689_v3 = vpop.permute.xlu0 %1688  ;;  %v1767_v32 = vmul.f32 %v4338_v19, %v4338_v19 }
 0x1c0   : > { %v4343_v31 = vpop.eup %2835  ;;  %2849 = vrsqrt.f32 %v1700_v30  ;;  %v1699_v38 = vadd.f32 0.81, %v1696_v16  ;;  %v4348_v46 = vsub.f32 %v3856_v45, %v1689_v3  ;;  %v1760_v6 = vpop.permute.xlu1 %1759  ;;  %v4352_v60 = vsub.f32 %v4252_v37, %v4276_v47 }
 0x1c1   : > { %v2838_v53 = vpop.eup %2837  ;;  %2851 = vrcp.f32 %v1630_v10  ;;  %v1629_v40 = vmul.f32 %v1626_v18, %v1626_v18  ;;  %v1544_v50 = vsub.f32 %v1517_v52, %v1541_v20  ;;  %v1770_v57 = vadd.f32 0.81, %v1767_v32 }
 0x1c2   : > { %2853 = vrsqrt.f32 %v1699_v38  ;;  %1338 = vrot.lane.b32.xlu0 %v4292_v2, %s3091_s26  ;;  %2105 = vrot.lane.b32.xlu1 %v3002_v51, %s3091_s26  ;;  %v1698_v45 = vmul.f32 %v4348_v46, %v4348_v46  ;;  %v4361_v58 = vmul.f32 %v4237_v35, %v4096_v15  ;;  %v2840_v7 = vpop.eup %2839  ;;  %v4364_v37 = vsub.f32 %v4088_v62, %v1760_v6  ;;  %v4370_v35 = vld [vmem:[#allocation2 + $0xb] sm:$0xff]  ;;  %v4404_v51 = vld [vmem:[#allocation2 + $0x3] sm:$0xff] }
 0x1c3   : > { %2855 = vrcp.f32 %v1631_v63  ;;  %v1547_v48 = vmul.f32 %v1544_v50, %v1544_v50  ;;  %v1409_v47 = vrot.slane %v4343_v31, 2  ;;  %v1758_v26 = vpop.permute.xlu0 %1757  ;;  %v1632_v55 = vadd.f32 0.1, %v1629_v40 }
 0x1c4   : > { %v2842_v2 = vpop.eup %2841  ;;  %v1518_v22 = vmul.f32 %v2838_v53, %v4281_v11  ;;  %v1701_v52 = vadd.f32 0.81, %v1698_v45  ;;  %v1410_v29 = vrot.slane %v4340_v13, 2  ;;  %2857 = vrsqrt.f32 %v1770_v57  ;;  %v1785_v5 = vpop.permute.xlu1 %1784 }
 0x1c5   : > { %v2844_v59 = vpop.eup %2843  ;;  %v1550_v27 = vadd.f32 0.1, %v1547_v48  ;;  %v1542_v15 = vmul.f32 %v2842_v2, %v4298_v9  ;;  %v4373_v42 = vsub.f32 %v4370_v35, %v1758_v26  ;;  %v4381_v0 = vsub.f32 %v4378_v54, %v1785_v5 }
 0x1c6   : > { %2859 = vrsqrt.f32 %v1701_v52  ;;  %1340 = vrot.lane.b32.xlu1 %v4285_v49, %s3091_s26  ;;  %v1411_v11 = vsel %vm1240_vm2, %v1409_v47, %v1410_v29  ;;  %v4385_v9 = vmul.f32 %v4259_v23, %v4130_v12  ;;  %v2846_v30 = vpop.eup %2845  ;;  %v1681_v14 = vmul.f32 %v2840_v7, %v4290_v44  ;;  %v4395_v23 = vld [vmem:[#allocation3 + $0x3] sm:$0xff] }
 0x1c7   : > { %v1545_v16 = vsub.f32 %v1518_v22, %v1542_v15  ;;  %v1769_v63 = vmul.f32 %v4364_v37, %v4364_v37  ;;  %1414 = vrot.lane.b32.xlu0 %v1411_v11, %s3092_s29  ;;  %v1768_v49 = vmul.f32 %v4373_v42, %v4373_v42  ;;  %v1783_v10 = vpop.permute.xlu0 %1782  ;;  %2861 = vrcp.f32 %v1632_v55 }
 0x1c8   : > { %v2848_v18 = vpop.eup %2847  ;;  %v1795_v20 = vmul.f32 %v4381_v0, %v4381_v0  ;;  %v1412_v12 = vrot.slane %v2844_v59, 2  ;;  %v4398_v44 = vsub.f32 %v4395_v23, %v1783_v10  ;;  %2863 = vrcp.f32 %v1550_v27  ;;  %v1844_v53 = vpop.permute.xlu1 %1843 }
 0x1c9   : > { %v1548_v3 = vmul.f32 %v1545_v16, %v1545_v16  ;;  %v1682_v38 = vmul.f32 %v2848_v18, %v4313_v61  ;;  %v1771_v32 = vadd.f32 0.81, %v1768_v49  ;;  %v4407_v45 = vsub.f32 %v4404_v51, %v1844_v53 }
 0x1ca   : > { %v2850_v40 = vpop.eup %2849  ;;  %v1798_v50 = vadd.f32 0.81, %v1795_v20  ;;  %v1413_v6 = vsel %vm1240_vm2, %v1410_v29, %v1412_v12  ;;  %v1794_v57 = vmul.f32 %v4398_v44, %v4398_v44  ;;  %v1772_v61 = vadd.f32 0.81, %v1769_v63 }
 0x1cb   : > { %v4409_v7 = vpop.eup %2851  ;;  %v1551_v48 = vadd.f32 0.1, %v1548_v3  ;;  %v1706_v47 = vmul.f32 %v2850_v40, %v4321_v8  ;;  %2865 = vrsqrt.f32 %v1771_v32  ;;  %1422 = vrot.lane.b32.xlu0 %v4343_v31, %s3091_s26  ;;  %1416 = vrot.lane.b32.xlu1 %v1413_v6, %s3092_s29  ;;  %v1787_v26 = vpop.permute.xlu0 %1786  ;;  %v1855_v22 = vmul.f32 %v4407_v45, %v4407_v45 }
 0x1cc   : > { %v2854_v2 = vpop.eup %2853  ;;  %2867 = vrsqrt.f32 %v1798_v50  ;;  %v1797_v55 = vadd.f32 0.81, %v1794_v57  ;;  %v4418_v52 = vsub.f32 %v4116_v36, %v1787_v26  ;;  %v1683_v8 = vmul.f32 %v2846_v30, %v4305_v4  ;;  %v1848_v27 = vpop.permute.xlu1 %1847 }
 0x1cd   : > { %v4420_v29 = vpop.eup %2855  ;;  %2869 = vrcp.f32 %v1551_v48  ;;  %v1709_v59 = vsub.f32 %v1682_v38, %v1706_v47  ;;  %v1705_v31 = vmul.f32 %v2854_v2, %v4327_v33  ;;  %v1858_v15 = vadd.f32 0.81, %v1855_v22 }
 0x1ce   : > { %2871 = vrsqrt.f32 %v1797_v55  ;;  %v1796_v5 = vmul.f32 %v4418_v52, %v4418_v52  ;;  %v4427_v11 = vsub.f32 %v4088_v62, %v1848_v27  ;;  %v2858_v16 = vpop.eup %2857  ;;  %v1639_v33 = vrot.slane %v4409_v7, 2 }
 0x1cf   : > { %v1712_v63 = vmul.f32 %v1709_v59, %v1709_v59  ;;  %v1708_v49 = vsub.f32 %v1681_v14, %v1705_v31  ;;  %2873 = vrsqrt.f32 %v1772_v61  ;;  %1480 = vrot.lane.b32.xlu0 %v4201_v1, %s3091_s26  ;;  %1424 = vrot.lane.b32.xlu1 %v4340_v13, %s3091_s26  ;;  %v1846_v4 = vpop.permute.xlu0 %1845  ;;  %v1640_v20 = vrot.slane %v4420_v29, 2 }
 0x1d0   : > { %v2860_v30 = vpop.eup %2859  ;;  %2875 = vrsqrt.f32 %v1858_v15  ;;  %v1799_v10 = vadd.f32 0.81, %v1796_v5  ;;  %v4435_v18 = vsub.f32 %v4370_v35, %v1846_v4  ;;  %v1857_v1 = vmul.f32 %v4427_v11, %v4427_v11  ;;  %v1870_v38 = vpop.permute.xlu1 %1869 }
 0x1d1   : > { %v1715_v12 = vadd.f32 0.1, %v1712_v63  ;;  %v1711_v14 = vmul.f32 %v1708_v49, %v1708_v49  ;;  %v1707_v3 = vmul.f32 %v2860_v30, %v4348_v46  ;;  %v4441_v13 = vpop.eup %2861  ;;  %v4446_v53 = vsub.f32 %v4378_v54, %v1870_v38 }
 0x1d2   : > { %2877 = vrsqrt.f32 %v1799_v10  ;;  %v1856_v32 = vmul.f32 %v4435_v18, %v4435_v18  ;;  %v4450_v40 = vsub.f32 %v4361_v58, %v4385_v9  ;;  %v2864_v50 = vpop.eup %2863  ;;  %v1776_v46 = vmul.f32 %v2858_v16, %v4338_v19 }
 0x1d3   : > { %v1714_v6 = vadd.f32 0.1, %v1711_v14  ;;  %v1710_v57 = vsub.f32 %v1683_v8, %v1707_v3  ;;  %1488 = vrot.lane.b32.xlu0 %v4140_v56, %s3091_s26  ;;  %1482 = vrot.lane.b32.xlu1 %v4235_v43, %s3091_s26  ;;  %v1868_v48 = vpop.permute.xlu0 %1867  ;;  %v1641_v47 = vsel %vm1240_vm2, %v1639_v33, %v1640_v20  ;;  %2879 = vrcp.f32 %v1715_v12 }
 0x1d4   : > { %v1859_v61 = vadd.f32 0.81, %v1856_v32  ;;  %v1880_v58 = vmul.f32 %v4446_v53, %v4446_v53  ;;  %v4463_v9 = vsub.f32 %v4395_v23, %v1868_v48  ;;  %v1860_v56 = vadd.f32 0.81, %v1857_v1  ;;  %v1928_v2 = vpop.permute.xlu1 %1927 }
 0x1d5   : > { %v2866_v19 = vpop.eup %2865  ;;  %2881 = vrcp.f32 %v1714_v6  ;;  %v1713_v26 = vmul.f32 %v1710_v57, %v1710_v57  ;;  %v1642_v43 = vrot.slane %v4441_v13, 2  ;;  %v4476_v5 = vsub.f32 %v4404_v51, %v1928_v2 }
 0x1d6   : > { %v2868_v55 = vpop.eup %2867  ;;  %v1777_v22 = vmul.f32 %v2866_v19, %v4373_v42  ;;  %2883 = vrsqrt.f32 %v1859_v61  ;;  %v1883_v8 = vadd.f32 0.81, %v1880_v58  ;;  %v1879_v59 = vmul.f32 %v4463_v9, %v4463_v9 }
 0x1d7   : > { %v4469_v31 = vpop.eup %2869  ;;  %v1716_v27 = vadd.f32 0.1, %v1713_v26  ;;  %v1804_v15 = vmul.f32 %v2868_v55, %v4381_v0  ;;  %1568 = vrot.lane.b32.xlu0 %v2864_v50, %s3091_s26  ;;  %1490 = vrot.lane.b32.xlu1 %v4151_v39, %s3091_s26  ;;  %v1872_v16 = vpop.permute.xlu0 %1871  ;;  %v1559_v42 = vrot.slane %v2864_v50, 2  ;;  %v1939_v39 = vmul.f32 %v4476_v5, %v4476_v5 }
 0x1d8   : > { %v2872_v63 = vpop.eup %2871  ;;  %2885 = vrsqrt.f32 %v1883_v8  ;;  %v1882_v49 = vadd.f32 0.81, %v1879_v59  ;;  %v4479_v4 = vsub.f32 %v4116_v36, %v1872_v16  ;;  %v1560_v33 = vrot.slane %v4469_v31, 2  ;;  %v1932_v12 = vpop.permute.xlu1 %1931 }
 0x1d9   : > { %v2874_v30 = vpop.eup %2873  ;;  %2887 = vrcp.f32 %v1716_v27  ;;  %v1807_v0 = vsub.f32 %v1777_v22, %v1804_v15  ;;  %v1803_v10 = vmul.f32 %v2872_v63, %v4398_v44  ;;  %v4488_v1 = vsub.f32 %v4088_v62, %v1932_v12 }
 0x1da   : > { %v2876_v14 = vpop.eup %2875  ;;  %2889 = vrsqrt.f32 %v1882_v49  ;;  %v1881_v3 = vmul.f32 %v4479_v4, %v4479_v4  ;;  %v4493_v38 = vsel %vm1240_vm2, %v1559_v42, %v1560_v33  ;;  %v1942_v44 = vadd.f32 0.81, %v1939_v39 }
 0x1db   : > { %v1810_v13 = vmul.f32 %v1807_v0, %v1807_v0  ;;  %v1806_v32 = vsub.f32 %v1776_v46, %v1803_v10  ;;  %2891 = vrsqrt.f32 %v1860_v56  ;;  %1644 = vrot.lane.b32.xlu0 %v1641_v47, %s3096_s7  ;;  %1570 = vrot.lane.b32.xlu1 %v4469_v31, %s3091_s26  ;;  %v1930_v50 = vpop.permute.xlu0 %1929  ;;  %v1778_v57 = vmul.f32 %v2874_v30, %v4364_v37 }
 0x1dc   : > { %v2878_v6 = vpop.eup %2877  ;;  %v1884_v48 = vadd.f32 0.81, %v1881_v3  ;;  %v1941_v61 = vmul.f32 %v4488_v1, %v4488_v1  ;;  %v4502_v58 = vsub.f32 %v4370_v35, %v1930_v50  ;;  %2893 = vrsqrt.f32 %v1942_v44  ;;  %v1954_v47 = vpop.permute.xlu1 %1953 }
 0x1dd   : > { %v1813_v19 = vadd.f32 0.1, %v1810_v13  ;;  %v1809_v46 = vmul.f32 %v1806_v32, %v1806_v32  ;;  %v1805_v26 = vmul.f32 %v2878_v6, %v4418_v52  ;;  %v4505_v56 = vpop.eup %2879  ;;  %v4510_v37 = vsub.f32 %v4378_v54, %v1954_v47 }
 0x1de   : > { %2895 = vrsqrt.f32 %v1884_v48  ;;  %v1940_v2 = vmul.f32 %v4502_v58, %v4502_v58  ;;  %v1643_v55 = vsel %vm1240_vm2, %v1640_v20, %v1642_v43  ;;  %v1864_v52 = vmul.f32 %v2876_v14, %v4407_v45 }
 0x1df   : > { %v4515_v22 = vpop.eup %2881  ;;  %v1812_v8 = vadd.f32 0.1, %v1809_v46  ;;  %v1808_v59 = vsub.f32 %v1778_v57, %v1805_v26  ;;  %v1944_v27 = vadd.f32 0.81, %v1941_v61  ;;  %1652 = vrot.lane.b32.xlu0 %v4409_v7, %s3091_s26  ;;  %1646 = vrot.lane.b32.xlu1 %v1643_v55, %s3096_s7  ;;  %v1952_v15 = vpop.permute.xlu0 %1951  ;;  %2897 = vrcp.f32 %v1813_v19 }
 0x1e0   : > { %v2884_v16 = vpop.eup %2883  ;;  %v1943_v42 = vadd.f32 0.81, %v1940_v2  ;;  %v1964_v63 = vmul.f32 %v4510_v37, %v4510_v37  ;;  %v4524_v20 = vsub.f32 %v4395_v23, %v1952_v15  ;;  %v2158_v49 = vpop.permute.xlu1 %2157  ;;  %v1723_v30 = vrot.slane %v4515_v22, 2 }
 0x1e1   : > { %2899 = vrcp.f32 %v1812_v8  ;;  %v1811_v43 = vmul.f32 %v1808_v59, %v1808_v59  ;;  %v1865_v45 = vmul.f32 %v2884_v16, %v4435_v18  ;;  %v4531_v39 = vsub.f32 %v4404_v51, %v2158_v49 }
 0x1e2   : > { %v2886_v7 = vpop.eup %2885  ;;  %2901 = vrsqrt.f32 %v1943_v42  ;;  %v1967_v0 = vadd.f32 0.81, %v1964_v63  ;;  %v1963_v10 = vmul.f32 %v4524_v20, %v4524_v20  ;;  %v1724_v18 = vrot.slane %v4505_v56, 2 }
 0x1e3   : > { %v2888_v12 = vpop.eup %2887  ;;  %v1814_v14 = vadd.f32 0.1, %v1811_v43  ;;  %v1889_v3 = vmul.f32 %v2886_v7, %v4446_v53  ;;  %2903 = vrsqrt.f32 %v1944_v27  ;;  %1654 = vrot.lane.b32.xlu1 %v4420_v29, %s3091_s26  ;;  %v1956_v13 = vpop.permute.xlu0 %1955  ;;  %v2169_v50 = vmul.f32 %v4531_v39, %v4531_v39 }
 0x1e4   : > { %v2890_v32 = vpop.eup %2889  ;;  %2905 = vrsqrt.f32 %v1967_v0  ;;  %v1966_v44 = vadd.f32 0.81, %v1963_v10  ;;  %v4540_v6 = vsub.f32 %v4116_v36, %v1956_v13  ;;  %v1725_v61 = vsel %vm1240_vm2, %v1723_v30, %v1724_v18  ;;  %v2162_v29 = vpop.permute.xlu1 %2161 }
 0x1e5   : > { %v2892_v57 = vpop.eup %2891  ;;  %2907 = vrcp.f32 %v1814_v14  ;;  %v1892_v48 = vsub.f32 %v1865_v45, %v1889_v3  ;;  %v1888_v53 = vmul.f32 %v2890_v32, %v4463_v9  ;;  %1728 = vrot.lane.b32.xlu0 %v1725_v61, %s3095_s6  ;;  %v4548_v46 = vsub.f32 %v4088_v62, %v2162_v29 }
 0x1e6   : > { %2909 = vrsqrt.f32 %v1966_v44  ;;  %v1965_v19 = vmul.f32 %v4540_v6, %v4540_v6  ;;  %v4552_v36 = vmul.f32 %v4352_v60, %v4352_v60  ;;  %v2894_v26 = vpop.eup %2893  ;;  %v2172_v2 = vadd.f32 0.81, %v2169_v50 }
 0x1e7   : > { %v1895_v47 = vmul.f32 %v1892_v48, %v1892_v48  ;;  %v1891_v9 = vsub.f32 %v1864_v52, %v1888_v53  ;;  %v1726_v55 = vrot.slane %v2888_v12, 2  ;;  %v2160_v8 = vpop.permute.xlu0 %2159  ;;  %v1866_v27 = vmul.f32 %v2892_v57, %v4427_v11 }
 0x1e8   : > { %v2896_v59 = vpop.eup %2895  ;;  %v1968_v15 = vadd.f32 0.81, %v1965_v19  ;;  %v2171_v16 = vmul.f32 %v4548_v46, %v4548_v46  ;;  %v4559_v62 = vmul.f32 %v4450_v40, %v4450_v40  ;;  %v2184_v43 = vpop.permute.xlu1 %2183  ;;  %v1948_v49 = vmul.f32 %v2894_v26, %v4476_v5 }
 0x1e9   : > { %v1898_v42 = vadd.f32 0.1, %v1895_v47  ;;  %v1894_v60 = vmul.f32 %v1891_v9, %v1891_v9  ;;  %v1890_v63 = vmul.f32 %v2896_v59, %v4479_v4  ;;  %v1727_v52 = vsel %vm1240_vm2, %v1724_v18, %v1726_v55  ;;  %v4563_v45 = vpop.eup %2897  ;;  %1736 = vrot.lane.b32.xlu0 %v4515_v22, %s3091_s26  ;;  %v4597_v55 = vld [vmem:[#allocation3 + $0x13] sm:$0x7] }
 0x1ea   : > { %2911 = vrsqrt.f32 %v1968_v15  ;;  %1730 = vrot.lane.b32.xlu1 %v1727_v52, %s3095_s6  ;;  %v4570_v11 = vsub.f32 %v4370_v35, %v2160_v8  ;;  %v4573_v40 = vsub.f32 %v4378_v54, %v2184_v43  ;;  %v2174_v0 = vadd.f32 0.81, %v2171_v16 }
 0x1eb   : > { %v4575_v4 = vpop.eup %2899  ;;  %v1897_v30 = vadd.f32 0.1, %v1894_v60  ;;  %v1893_v7 = vsub.f32 %v1866_v27, %v1890_v63  ;;  %2913 = vrsqrt.f32 %v2172_v2  ;;  %v2182_v10 = vpop.permute.xlu0 %2181 }
 0x1ec   : > { %v2902_v5 = vpop.eup %2901  ;;  %2915 = vrcp.f32 %v1898_v42  ;;  %v2170_v22 = vmul.f32 %v4570_v11, %v4570_v11  ;;  %v2194_v12 = vmul.f32 %v4573_v40, %v4573_v40  ;;  %v4582_v14 = vsub.f32 %v4395_v23, %v2182_v10  ;;  %v2078_v32 = vpop.permute.xlu1 %2077 }
 0x1ed   : > { %v2904_v3 = vpop.eup %2903  ;;  %2917 = vrcp.f32 %v1897_v30  ;;  %v1896_v18 = vmul.f32 %v1893_v7, %v1893_v7  ;;  %v1949_v13 = vmul.f32 %v2902_v5, %v4502_v58  ;;  %v1822_v44 = vrot.slane %v4575_v4, 3 }
 0x1ee   : > { %v2906_v50 = vpop.eup %2905  ;;  %v2173_v57 = vadd.f32 0.81, %v2170_v22  ;;  %v2197_v48 = vadd.f32 0.81, %v2194_v12  ;;  %1738 = vrot.lane.b32.xlu1 %v4505_v56, %s3091_s26  ;;  %v2193_v53 = vmul.f32 %v4582_v14, %v4582_v14  ;;  %v4591_v61 = vsub.f32 %v4404_v51, %v2078_v32 }
 0x1ef   : > { %v2908_v29 = vpop.eup %2907  ;;  %v1899_v19 = vadd.f32 0.1, %v1896_v18  ;;  %v1973_v26 = vmul.f32 %v2906_v50, %v4510_v37  ;;  %2919 = vrsqrt.f32 %v2174_v0  ;;  %v1823_v58 = vrot.slane %v4563_v45, 3  ;;  %v2186_v47 = vpop.permute.xlu0 %2185 }
 0x1f0   : > { %v2910_v9 = vpop.eup %2909  ;;  %2921 = vrsqrt.f32 %v2173_v57  ;;  %v2196_v2 = vadd.f32 0.81, %v2193_v53  ;;  %v2089_v56 = vmul.f32 %v4591_v61, %v4591_v61  ;;  %v4600_v8 = vsub.f32 %v4597_v55, %v2186_v47  ;;  %v2102_v15 = vpop.permute.xlu1 %2101 }
 0x1f1   : > { %2923 = vrcp.f32 %v1899_v19  ;;  %v1976_v59 = vsub.f32 %v1949_v13, %v1973_v26  ;;  %v1972_v27 = vmul.f32 %v2910_v9, %v4524_v20  ;;  %v1824_v37 = vsel %vm1821_vm3, %v1822_v44, %v1823_v58  ;;  %v4913_v19 = vld [vmem:[#allocation8_spill] sm:$0xff] }
 0x1f2   : > { %2925 = vrsqrt.f32 %v2197_v48  ;;  %v2092_v16 = vadd.f32 0.81, %v2089_v56  ;;  %1827 = vrot.lane.b32.xlu0 %v1824_v37, %s3097_s8  ;;  %v2195_v42 = vmul.f32 %v4600_v8, %v4600_v8  ;;  %v4608_v60 = vsub.f32 %v4395_v23, %v2102_v15 }
 0x1f3   : > { %v1950_v63 = vmul.f32 %v2904_v3, %v4488_v1  ;;  %v1979_v52 = vmul.f32 %v1976_v59, %v1976_v59  ;;  %v1975_v43 = vsub.f32 %v1948_v49, %v1972_v27  ;;  %2927 = vrsqrt.f32 %v2196_v2  ;;  %v2080_v30 = vpop.permute.xlu0 %2079 }
 0x1f4   : > { %v2912_v20 = vpop.eup %2911  ;;  %2929 = vrsqrt.f32 %v2092_v16  ;;  %v2198_v7 = vadd.f32 0.81, %v2195_v42  ;;  %v2113_v0 = vmul.f32 %v4608_v60, %v4608_v60  ;;  %v1825_v10 = vrot.slane %v2908_v29, 3  ;;  %v2242_v1 = vpop.permute.xlu1 %2241  ;;  %v4912_v29 = vld [vmem:[#allocation16_spill] sm:$0xff]  ;;  %v4914_v16 = vld [vmem:[#allocation18_spill] sm:$0xff] }
 0x1f5   : > { %v2914_v5 = vpop.eup %2913  ;;  %v1982_v22 = vadd.f32 0.1, %v1979_v52  ;;  %v1978_v12 = vmul.f32 %v1975_v43, %v1975_v43  ;;  %v1974_v18 = vmul.f32 %v2912_v20, %v4540_v6  ;;  %v4615_v13 = vsub.f32 %v4370_v35, %v2080_v30 }
 0x1f6   : > { %v4617_v3 = vpop.eup %2915  ;;  %2931 = vrsqrt.f32 %v2198_v7  ;;  %v2116_v49 = vadd.f32 0.81, %v2113_v0  ;;  %1835 = vrot.lane.b32.xlu0 %v4575_v4, %s3091_s26  ;;  %v1826_v32 = vsel %vm1821_vm3, %v1823_v58, %v1825_v10  ;;  %v2048_v44 = vadd.f32 0.1, %v4552_v36 }
 0x1f7   : > { %v2918_v50 = vpop.eup %2917  ;;  %2933 = vrcp.f32 %v1982_v22  ;;  %v1981_v57 = vadd.f32 0.1, %v1978_v12  ;;  %v1977_v48 = vsub.f32 %v1950_v63, %v1974_v18  ;;  %1829 = vrot.lane.b32.xlu1 %v1826_v32, %s3097_s8  ;;  %v2104_v6 = vpop.permute.xlu0 %2103  ;;  %v2049_v53 = vadd.f32 0.1, %v4559_v62 }
 0x1f8   : > { %v465_v26 = vadd.f32 %v4913_v19, %v4912_v29  ;;  %2935 = vrsqrt.f32 %v2116_v49  ;;  %v2090_v4 = vmul.f32 %v4615_v13, %v4615_v13  ;;  %v4630_v58 = vsub.f32 %v4378_v54, %v2104_v6  ;;  %v2246_v9 = vpop.permute.xlu1 %2245 }
 0x1f9   : > { %v2920_v36 = vpop.eup %2919  ;;  %2937 = vrcp.f32 %v1981_v57  ;;  %v1980_v47 = vmul.f32 %v1977_v48, %v1977_v48  ;;  %v1906_v2 = vrot.slane %v2918_v50, 3  ;;  %v1907_v56 = vrot.slane %v4617_v3, 3  ;;  %v4915_v57 = vld [vmem:[#allocation21_spill] sm:$0xff] }
 0x1fa   : > { %v2922_v59 = vpop.eup %2921  ;;  %v2093_v27 = vadd.f32 0.81, %v2090_v4  ;;  %v4634_v62 = vsub.f32 %v4404_v51, %v2242_v1  ;;  %v2114_v37 = vmul.f32 %v4630_v58, %v4630_v58  ;;  %2939 = vrcp.f32 %v2048_v44  ;;  %v4642_v51 = vld [vmem:[#allocation2 + $0x13] sm:$0x7] }
 0x1fb   : > { %v2924_v15 = vpop.eup %2923  ;;  %v515_v42 = vadd.f32 %v4914_v16, %v465_v26  ;;  %v1983_v63 = vadd.f32 0.1, %v1980_v47  ;;  %1837 = vrot.lane.b32.xlu1 %v4563_v45, %s3091_s26  ;;  %v1908_v52 = vsel %vm1821_vm3, %v1906_v2, %v1907_v56  ;;  %v2244_v43 = vpop.permute.xlu0 %2243  ;;  %2941 = vrcp.f32 %v2049_v53  ;;  %v4917_v16 = vld [vmem:[#allocation23_spill] sm:$0xff] }
 0x1fc   : > { %v2926_v30 = vpop.eup %2925  ;;  %2943 = vrsqrt.f32 %v2093_v27  ;;  %v2117_v20 = vadd.f32 0.81, %v2114_v37  ;;  %v4645_v7 = vsub.f32 %v4642_v51, %v2246_v9  ;;  %1911 = vrot.lane.b32.xlu0 %v1908_v52, %s3093_s30  ;;  %v4649_v0 = vsub.f32 %v4370_v35, %v2244_v43  ;;  %v2268_v12 = vpop.permute.xlu1 %2267 }
 0x1fd   : > { %v2928_v10 = vpop.eup %2927  ;;  %2945 = vrcp.f32 %v1983_v63  ;;  %v2179_v45 = vmul.f32 %v2922_v59, %v4570_v11  ;;  %v2203_v22 = vmul.f32 %v2926_v30, %v4573_v40  ;;  %v1909_v18 = vrot.slane %v2924_v15, 3 }
 0x1fe   : > { %v2930_v1 = vpop.eup %2929  ;;  %v2178_v49 = vmul.f32 %v2914_v5, %v4531_v39  ;;  %v2202_v32 = vmul.f32 %v2928_v10, %v4582_v14  ;;  %v2253_v44 = vmul.f32 %v4634_v62, %v4634_v62  ;;  %v2254_v35 = vmul.f32 %v4649_v0, %v4649_v0 }
 0x1ff   : > { %v572_v48 = vadd.f32 %v4915_v57, %v4188_v24  ;;  %v2180_v11 = vmul.f32 %v2920_v36, %v4548_v46  ;;  %2947 = vrsqrt.f32 %v2117_v20  ;;  %v4663_v40 = vsub.f32 %v4378_v54, %v2268_v12  ;;  %v2266_v6 = vpop.permute.xlu0 %2265  ;;  %v4916_v36 = vld [vmem:[#allocation20_spill] sm:$0xff] }
 0x200   : > { %v2932_v53 = vpop.eup %2931  ;;  %v2205_v39 = vsub.f32 %v2178_v49, %v2202_v32  ;;  %v2255_v14 = vmul.f32 %v4645_v7, %v4645_v7  ;;  %v2257_v5 = vadd.f32 0.81, %v2254_v35  ;;  %1919 = vrot.lane.b32.xlu0 %v2918_v50, %s3091_s26  ;;  %v1910_v29 = vsel %vm1821_vm3, %v1907_v56, %v1909_v18  ;;  %v1501_v57 = vpop.permute.xlu1 %1500 }
 0x201   : > { %v4669_v19 = vpop.eup %2933  ;;  %v2206_v24 = vsub.f32 %v2179_v45, %v2203_v22  ;;  %v2204_v46 = vmul.f32 %v2932_v53, %v4600_v8  ;;  %v2278_v54 = vmul.f32 %v4663_v40, %v4663_v40  ;;  %1913 = vrot.lane.b32.xlu1 %v1910_v29, %s3093_s30  ;;  %v4676_v26 = vsub.f32 %v4395_v23, %v2266_v6  ;;  %v4918_v23 = vld [vmem:[#allocation22_spill] sm:$0xff]  ;;  %s3015_s30 = sshll.u32 %s3099_s18, 4  ;;  %s3016_s30 = int_to_ptr.vmem [resolvable:$false] %s3015_s30 }
 0x202   : > { %v2936_v4 = vpop.eup %2935  ;;  %v523_v47 = vadd.f32 %v4916_v36, %v515_v42  ;;  %v2208_v9 = vmul.f32 %v2205_v39, %v2205_v39  ;;  %v2098_v50 = vmul.f32 %v2930_v1, %v4591_v61  ;;  %v2256_v2 = vadd.f32 0.81, %v2253_v44  ;;  %s3017_s5 = scalar_lea.vmem %s3016_s30, 512  ;;  %p3018_p1 = scmp.lt.s32.totalorder %s4810_s13, %s3016_s30 }
 0x203   : > { %v2938_v56 = vpop.eup %2937  ;;  %v2207_v59 = vsub.f32 %v2180_v11, %v2204_v46  ;;  %v2122_v27 = vmul.f32 %v2936_v4, %v4608_v60  ;;  %2949 = vrsqrt.f32 %v2257_v5  ;;  %v2281_v8 = vadd.f32 0.81, %v2278_v54  ;;  %v2270_v37 = vpop.permute.xlu0 %2269  ;;  %v4919_v54 = vld [vmem:[#allocation24_spill] sm:$0xff] }
 0x204   : > { %v4681_v15 = vpop.eup %2939  ;;  %v580_v63 = vadd.f32 %v4917_v16, %v572_v48  ;;  %v573_v52 = vadd.f32 %v4918_v23, %v523_v47  ;;  %v2277_v42 = vmul.f32 %v4676_v26, %v4676_v26  ;;  %v4688_v43 = vsub.f32 %v4597_v55, %v2270_v37  ;;  %v4920_v47 = vld [vmem:[#allocation25_spill] sm:$0xff]  ;;  %v3009_v23 = vld [vmem:[#allocation2 + $0x13] sm:$0x3] }
 0x205   : > { %v4690_v61 = vpop.eup %2941  ;;  %v2209_v30 = vmul.f32 %v2206_v24, %v2206_v24  ;;  %v2125_v20 = vsub.f32 %v2098_v50, %v2122_v27  ;;  %v2258_v60 = vadd.f32 0.81, %v2255_v14  ;;  %1921 = vrot.lane.b32.xlu1 %v4617_v3, %s3091_s26  ;;  %v1990_v10 = vrot.slane %v2938_v56, 3  ;;  %v4921_v16 = vld [vmem:[#allocation33_spill] sm:$0xff] }
 0x206   : > { %v2944_v45 = vpop.eup %2943  ;;  %2951 = vrsqrt.f32 %v2256_v2  ;;  %v2280_v22 = vadd.f32 0.81, %v2277_v42  ;;  %v2279_v12 = vmul.f32 %v4688_v43, %v4688_v43  ;;  %v1991_v18 = vrot.slane %v4669_v19, 3 }
 0x207   : > { %v2946_v1 = vpop.eup %2945  ;;  %v2211_v49 = vadd.f32 0.1, %v2208_v9  ;;  %v2210_v32 = vmul.f32 %v2207_v59, %v2207_v59  ;;  %v2128_v44 = vmul.f32 %v2125_v20, %v2125_v20  ;;  %2953 = vrsqrt.f32 %v2281_v8  ;;  %v3010_v20 = vld [vmem:[#allocation3 + $0x13] sm:$0x3] }
 0x208   : > { %v671_v35 = vadd.f32 %v4000_v34, %v580_v63  ;;  %2955 = vrsqrt.f32 %v2280_v22  ;;  %v2282_v48 = vadd.f32 0.81, %v2279_v12  ;;  %v1992_v3 = vsel %vm1821_vm3, %v1990_v10, %v1991_v18  ;;  %v1525_v34 = vpop.permute.xlu0 %1524  ;;  %v4922_v10 = vld [vmem:[#allocation27_spill] sm:$0xff] }
 0x209   : > { %v2948_v11 = vpop.eup %2947  ;;  %v2212_v6 = vadd.f32 0.1, %v2209_v30  ;;  %2957 = vrsqrt.f32 %v2258_v60  ;;  %1995 = vrot.lane.b32.xlu0 %v1992_v3, %s3092_s29  ;;  %v2056_v53 = vrot.slane %v4329_v25, 3  ;;  %v2057_v39 = vrot.slane %v4681_v15, 3 }
 0x20a   : > { %v2131_v14 = vadd.f32 0.1, %v2128_v44  ;;  %v2099_v5 = vmul.f32 %v2944_v45, %v4615_v13  ;;  %v2123_v29 = vmul.f32 %v2948_v11, %v4630_v58  ;;  %v1993_v24 = vrot.slane %v2946_v1, 3 }
 0x20b   : > { %v938_v46 = vmul.f32 %v4179_v28, %v4050_v17  ;;  %v581_v4 = vadd.f32 %v4919_v54, %v573_v52  ;;  %2959 = vrcp.f32 %v2211_v49  ;;  %v2213_v36 = vadd.f32 0.1, %v2210_v32  ;;  %v4713_v28 = vpop.permute.xlu1 %1065  ;;  %v4923_v49 = vld [vmem:[#allocation26_spill] sm:$0xff] }
 0x20c   : > { %v679_v9 = vadd.f32 %v4920_v47, %v671_v35  ;;  %v2126_v50 = vsub.f32 %v2099_v5, %v2123_v29  ;;  %2961 = vrsqrt.f32 %v2282_v48  ;;  %v1994_v2 = vsel %vm1821_vm3, %v1991_v18, %v1993_v24  ;;  %v4925_v24 = vld [vmem:[#allocation35_spill] sm:$0xff] }
 0x20d   : > { %v2950_v59 = vpop.eup %2949  ;;  %v965_v13 = vsub.f32 %v938_v46, %v4111_v21  ;;  %v672_v58 = vadd.f32 %v4026_v41, %v581_v4  ;;  %2963 = vrcp.f32 %v2212_v6  ;;  %2003 = vrot.lane.b32.xlu0 %v2938_v56, %s3091_s26  ;;  %1997 = vrot.lane.b32.xlu1 %v1994_v2, %s3092_s29  ;;  %v2058_v27 = vsel %vm1821_vm3, %v2056_v53, %v2057_v39  ;;  %v4721_v56 = vpop.permute.xlu0 %1071  ;;  %s3011_s29 = scalar_lea.vmem %s4810_s13, 256 }
 0x20e   : > { %2965 = vrcp.f32 %v2131_v14  ;;  %v2129_v17 = vmul.f32 %v2126_v50, %v2126_v50  ;;  %v2059_v8 = vrot.slane %v4690_v61, 3  ;;  %v755_v63 = vadd.f32 %v4921_v16, %v679_v9  ;;  %p3012_p12 = scmp.ne.s32.totalorder %s4810_s13, %s3011_s29  ;;  %p3019_p2 = scmp.lt.s32.totalorder %s3017_s5, %s3011_s29 }
 0x20f   : > { %2967 = vrcp.f32 %v2213_v36  ;;  %v2263_v41 = vmul.f32 %v2950_v59, %v4649_v0  ;;  %v4719_v52 = vsub.f32 %v3009_v23, %v1501_v57  ;;  %v968_v30 = vmul.f32 %v965_v13, %v965_v13 }
 0x210   : > { %v2952_v37 = vpop.eup %2951  ;;  %v2132_v21 = vadd.f32 0.1, %v2129_v17  ;;  %v4723_v60 = vsub.f32 %v3010_v20, %v1525_v34  ;;  %v680_v45 = vadd.f32 %v4922_v10, %v672_v58  ;;  %v2060_v22 = vsel %vm1821_vm3, %v2057_v39, %v2059_v8  ;;  %v4927_v17 = vld [vmem:[#allocation28_spill] sm:$0xff]  ;;  %p3013_p13 = pnand %p3012_p12, %p3167_p4  ;;  %p3020_p3 = por %p3019_p2, %p3018_p1 }
 0x211   : > { %v2954_v42 = vpop.eup %2953  ;;  %2061 = vrot.lane.b32.xlu0 %v2058_v27, %s3091_s26  ;;  %2005 = vrot.lane.b32.xlu1 %v4669_v19, %s3091_s26  ;;  %v2262_v18 = vmul.f32 %v2952_v37, %v4634_v62  ;;  %v763_v32 = vadd.f32 %v4923_v49, %v755_v63  ;;  %v1510_v35 = vmul.f32 %v4719_v52, %v4719_v52  ;;  %v4736_v19 = vpop.permute.xlu1 %1073  ;;  %v971_v48 = vadd.f32 0.1, %v968_v30  ;;  %v4929_v30 = vld [vmem:[#allocation10_spill] sm:$0xff] }
 0x212   : > { %v2956_v61 = vpop.eup %2955  ;;  %2969 = vrcp.f32 %v2132_v21  ;;  %v2287_v0 = vmul.f32 %v2954_v42, %v4663_v40  ;;  %v1534_v40 = vmul.f32 %v4723_v60, %v4723_v60  ;;  %v4744_v53 = vpop.permute.xlu0 %1147  ;;  %p3014_p0 = pneg %p3013_p13 }
 0x213   : > { %v2958_v12 = vpop.eup %2957  ;;  %v2286_v1 = vmul.f32 %v2956_v61, %v4676_v26  ;;  %v4924_v26 = vld [vmem:[#allocation34_spill] sm:$0xff]  ;;  %v839_v46 = vadd.f32 %v4925_v24, %v763_v32  ;;  %v1513_v4 = vadd.f32 0.81, %v1510_v35  ;;  %2971 = vrcp.f32 %v971_v48  ;;  %v4932_v35 = vld [vmem:[#allocation9_spill] sm:$0xff] }
 0x214   : > { %v2290_v44 = vsub.f32 %v2263_v41, %v2287_v0  ;;  %v756_v11 = vadd.f32 %v4924_v26, %v680_v45  ;;  %v2264_v14 = vmul.f32 %v2958_v12, %v4645_v7  ;;  %v1537_v50 = vadd.f32 0.81, %v1534_v40  ;;  %v4926_v7 = vld [vmem:[#allocation29_spill] sm:$0xff]  ;;  %v4928_v41 = vld [vmem:[#allocation36_spill] sm:$0xff]  ;;  %v4930_v45 = vld [vmem:[#allocation31_spill] sm:$0xff]  ;;  %p3021_p5 = pnand %p3020_p3, %p3014_p0 }
 0x215   : > { %v2960_v57 = vpop.eup %2959  ;;  %v2289_v3 = vsub.f32 %v2262_v18, %v2286_v1  ;;  %2069 = vrot.lane.b32.xlu0 %v4329_v25, %s3091_s26  ;;  %2063 = vrot.lane.b32.xlu1 %v2060_v22, %s3091_s26  ;;  %v847_v27 = vadd.f32 %v4927_v17, %v839_v46  ;;  %v4931_v1 = vld [vmem:[#allocation12_spill] sm:$0xff] }
 0x216   : > { %v2962_v62 = vpop.eup %2961  ;;  %v2293_v6 = vmul.f32 %v2290_v44, %v2290_v44  ;;  %v2220_v25 = vrot.slane %v2960_v57, 3  ;;  %v764_v2 = vadd.f32 %v4926_v7, %v756_v11  ;;  %v1156_v8 = vpop.permute.xlu0 %1155 }
 0x217   : > { %v2964_v39 = vpop.eup %2963  ;;  %v2292_v5 = vmul.f32 %v2289_v3, %v2289_v3  ;;  %v2288_v29 = vmul.f32 %v2962_v62, %v4688_v43  ;;  %v4753_v43 = vpop.permute.xlu1 %1149  ;;  %v905_v20 = vadd.f32 %v4929_v30, %v847_v27 }
 0x218   : > { %v2966_v34 = vpop.eup %2965  ;;  %v2296_v54 = vadd.f32 0.1, %v2293_v6  ;;  %v2221_v59 = vrot.slane %v2964_v39, 3  ;;  %v840_v23 = vadd.f32 %v4928_v41, %v764_v2 }
 0x219   : > { %v2968_v36 = vpop.eup %2967  ;;  %v2295_v47 = vadd.f32 0.1, %v2292_v5  ;;  %v2291_v9 = vsub.f32 %v2264_v14, %v2288_v29  ;;  %2149 = vrot.lane.b32.xlu0 %v2966_v34, %s3091_s26  ;;  %2071 = vrot.lane.b32.xlu1 %v4681_v15, %s3091_s26  ;;  %v2140_v15 = vrot.slane %v2966_v34, 3  ;;  %v913_v49 = vadd.f32 %v4931_v1, %v905_v20  ;;  %v4934_v34 = vld [vmem:[#allocation11_spill] sm:$0xff] }
 0x21a   : > { %2973 = vrcp.f32 %v2296_v54  ;;  %v2222_v37 = vsel %vm1821_vm3, %v2220_v25, %v2221_v59  ;;  %v2223_v16 = vrot.slane %v2968_v36, 3  ;;  %v848_v0 = vadd.f32 %v4930_v45, %v840_v23  ;;  %v1247_v22 = vpop.permute.xlu0 %1246 }
 0x21b   : > { %2975 = vrcp.f32 %v2295_v47  ;;  %v2294_v13 = vmul.f32 %v2291_v9, %v2291_v9  ;;  %v1158_v61 = vpop.permute.xlu1 %1157 }
 0x21c   : > { %v4755_v58 = vpop.eup %2969  ;;  %2977 = vrsqrt.f32 %v1513_v4  ;;  %v2224_v10 = vsel %vm1821_vm3, %v2221_v59, %v2223_v16  ;;  %v906_v48 = vadd.f32 %v4932_v35, %v848_v0  ;;  %v4935_v4 = vld [vmem:[#allocation30_spill] sm:$0xff] }
 0x21d   : > { %v2297_v63 = vadd.f32 0.1, %v2294_v13  ;;  %2979 = vrsqrt.f32 %v1537_v50  ;;  %2225 = vrot.lane.b32.xlu0 %v2222_v37, %s3096_s7  ;;  %2151 = vrot.lane.b32.xlu1 %v4755_v58, %s3091_s26  ;;  %v2141_v21 = vrot.slane %v4755_v58, 3  ;;  %v2972_v12 = vpop.eup %2971  ;;  %v4936_v50 = vld [vmem:[#allocation13_spill] sm:$0xff]  ;;  %v4939_v37 = vld [vmem:[#allocation32_spill] sm:$0xff] }
 0x21e   : > { %v1255_v6 = vpop.permute.xlu0 %1254  ;;  %v981_v29 = vrot.slane %v2972_v12, 1  ;;  %v914_v24 = vadd.f32 %v4934_v34, %v906_v48  ;;  %v4937_v7 = vrot.slane %v4936_v50, 1 }
 0x21f   : > { %2981 = vrcp.f32 %v2297_v63  ;;  %v4767_v42 = vsel %vm1821_vm3, %v2140_v15, %v2141_v21  ;;  %v1249_v3 = vpop.permute.xlu1 %1248 }
 0x220   : > { %v982_v2 = vsel %vm659_vm1, %v4937_v7, %v981_v29 }
 0x221   : > { %2233 = vrot.lane.b32.xlu0 %v2960_v57, %s3091_s26  ;;  %2227 = vrot.lane.b32.xlu1 %v2224_v10, %s3096_s7  ;;  %v4933_v57 = vld [vmem:[#allocation14_spill] sm:$0xff]  ;;  %v986_v59 = vadd.f32 %v982_v2, %v914_v24 }
 0x222   : > { %v985_v11 = vadd.f32 %v4933_v57, %v913_v49 }
 0x223   : > { %v1257_v36 = vpop.permute.xlu1 %1256  ;;  %v994_v16 = vadd.f32 %v4939_v37, %v986_v59 }
 0x224   : > { %v2974_v18 = vpop.eup %2973  ;;  %v993_v25 = vadd.f32 %v4935_v4, %v985_v11 }
 0x225   : > { %v2976_v32 = vpop.eup %2975  ;;  %2235 = vrot.lane.b32.xlu1 %v2964_v39, %s3091_s26  ;;  %v2305_v62 = vrot.slane %v2974_v18, 3  ;;  %v1070_v41 = vadd.f32 %v4713_v28, %v994_v16 }
 0x226   : > { %v2978_v44 = vpop.eup %2977  ;;  %v2304_v40 = vrot.slane %v2976_v32, 3 }
 0x227   : > { %v2980_v26 = vpop.eup %2979  ;;  %v1519_v39 = vmul.f32 %v2978_v44, %v4719_v52  ;;  %v4938_v52 = vld [vmem:[#allocation37_spill] sm:$0xff]  ;;  %v1078_v45 = vadd.f32 %v4736_v19, %v1070_v41 }
 0x228   : > { %v2306_v14 = vsel %vm1821_vm3, %v2304_v40, %v2305_v62  ;;  %v1543_v46 = vmul.f32 %v2980_v26, %v4723_v60  ;;  %v1069_v17 = vadd.f32 %v4938_v52, %v993_v25 }
 0x229   : > { %v2982_v5 = vpop.eup %2981  ;;  %2309 = vrot.lane.b32.xlu0 %v2306_v14, %s3095_s6  ;;  %v1154_v12 = vadd.f32 %v4753_v43, %v1078_v45 }
 0x22a   : > { %v2307_v54 = vrot.slane %v2982_v5, 3  ;;  %v1546_v13 = vsub.f32 %v1519_v39, %v1543_v46  ;;  %v1077_v15 = vadd.f32 %v4721_v56, %v1069_v17 }
 0x22c   : > { %v1331_v47 = vpop.permute.xlu0 %1330  ;;  %v2308_v9 = vsel %vm1821_vm3, %v2305_v62, %v2307_v54  ;;  %v1549_v63 = vmul.f32 %v1546_v13, %v1546_v13  ;;  %v1153_v23 = vadd.f32 %v4744_v53, %v1077_v15 }
 0x22d   : > { %2317 = vrot.lane.b32.xlu0 %v2976_v32, %s3091_s26  ;;  %2311 = vrot.lane.b32.xlu1 %v2308_v9, %s3095_s6  ;;  %v1162_v32 = vadd.f32 %v1158_v61, %v1154_v12 }
 0x22e   : > { %v1552_v10 = vadd.f32 0.1, %v1549_v63  ;;  %v1161_v0 = vadd.f32 %v1156_v8, %v1153_v23 }
 0x22f   : > { %v1253_v35 = vadd.f32 %v1249_v3, %v1162_v32 }
 0x230   : > { %v1333_v60 = vpop.permute.xlu1 %1332  ;;  %v2082_v27 = vpop.permute.xlu0 %2081  ;;  %v1252_v1 = vadd.f32 %v1247_v22, %v1161_v0  ;;  %2983 = vrcp.f32 %v1552_v10 }
 0x231   : > { %2319 = vrot.lane.b32.xlu1 %v2974_v18, %s3091_s26  ;;  %v1261_v40 = vadd.f32 %v1257_v36, %v1253_v35  ;;  %s4817_s26 = scalar_lea.sflag [#allocation5], %s329_s10 }
 0x232   : > { %v1260_v44 = vadd.f32 %v1255_v6, %v1252_v1 }
 0x233   : > { %v1337_v62 = vadd.f32 %v1333_v60, %v1261_v40 }
 0x234   : > { %v2106_v30 = vpop.permute.xlu1 %2105  ;;  %v1339_v20 = vpop.permute.xlu0 %1338  ;;  %v1336_v56 = vadd.f32 %v1331_v47, %v1260_v44  ;;  %v2088_v47 = vsub.f32 %v4642_v51, %v2082_v27 }
 0x235   : > { %v2112_v9 = vsub.f32 %v4597_v55, %v2106_v30 }
 0x236   : > { %v1344_v53 = vadd.f32 %v1339_v20, %v1336_v56  ;;  %v2091_v7 = vmul.f32 %v2088_v47, %v2088_v47 }
 0x237   : > { %v2115_v2 = vmul.f32 %v2112_v9, %v2112_v9 }
 0x238   : > { %v1341_v49 = vpop.permute.xlu1 %1340  ;;  %v2094_v52 = vadd.f32 0.81, %v2091_v7 }
 0x239   : > { %v1415_v18 = vpop.permute.xlu0 %1414  ;;  %v1345_v19 = vadd.f32 %v1341_v49, %v1337_v62 }
 0x23a   : > { %v1420_v26 = vadd.f32 %v1415_v18, %v1344_v53  ;;  %v2984_v14 = vpop.eup %2983  ;;  %2985 = vrsqrt.f32 %v2094_v52 }
 0x23b   : > { %v1562_v6 = vrot.slane %v2984_v14, 2 }
 0x23d   : > { %v1417_v48 = vpop.permute.xlu1 %1416  ;;  %v1423_v28 = vpop.permute.xlu0 %1422  ;;  %v1563_v54 = vsel %vm1240_vm2, %v1560_v33, %v1562_v6 }
 0x23e   : > { %v1428_v8 = vadd.f32 %v1423_v28, %v1420_v26  ;;  %v1421_v43 = vadd.f32 %v1417_v48, %v1345_v19 }
 0x241   : > { %v1425_v57 = vpop.permute.xlu1 %1424  ;;  %v1481_v11 = vpop.permute.xlu0 %1480 }
 0x242   : > { %v1486_v22 = vadd.f32 %v1481_v11, %v1428_v8  ;;  %v1429_v34 = vadd.f32 %v1425_v57, %v1421_v43 }
 0x244   : > { %v2986_v63 = vpop.eup %2985 }
 0x245   : > { %v1483_v5 = vpop.permute.xlu1 %1482  ;;  %v1489_v29 = vpop.permute.xlu0 %1488  ;;  %v2100_v27 = vmul.f32 %v2986_v63, %v2088_v47 }
 0x246   : > { %v1494_v61 = vadd.f32 %v1489_v29, %v1486_v22  ;;  %v1487_v3 = vadd.f32 %v1483_v5, %v1429_v34 }
 0x248   : > { %v1566_v24 = vadd.f32 %v4493_v38, %v1494_v61  ;;  %v2118_v38 = vadd.f32 0.81, %v2115_v2 }
 0x249   : > { %v1491_v39 = vpop.permute.xlu1 %1490  ;;  %v1569_v25 = vpop.permute.xlu0 %1568 }
 0x24a   : > { %v1495_v46 = vadd.f32 %v1491_v39, %v1487_v3  ;;  %2987 = vrsqrt.f32 %v2118_v38  ;;  %v1574_v30 = vadd.f32 %v1569_v25, %v1566_v24 }
 0x24c   : > { %v1567_v4 = vadd.f32 %v1563_v54, %v1495_v46 }
 0x24d   : > { %v1571_v36 = vpop.permute.xlu1 %1570  ;;  %v1645_v50 = vpop.permute.xlu0 %1644 }
 0x24e   : > { %v1650_v45 = vadd.f32 %v1645_v50, %v1574_v30  ;;  %v1575_v12 = vadd.f32 %v1571_v36, %v1567_v4 }
 0x251   : > { %v1647_v59 = vpop.permute.xlu1 %1646  ;;  %v1653_v13 = vpop.permute.xlu0 %1652 }
 0x252   : > { %v1658_v1 = vadd.f32 %v1653_v13, %v1650_v45  ;;  %v1651_v18 = vadd.f32 %v1647_v59, %v1575_v12 }
 0x254   : > { %v2988_v15 = vpop.eup %2987 }
 0x255   : > { %v1655_v17 = vpop.permute.xlu1 %1654  ;;  %v2124_v55 = vmul.f32 %v2988_v15, %v2112_v9 }
 0x256   : > { %v1659_v56 = vadd.f32 %v1655_v17, %v1651_v18 }
 0x257   : > { %v1729_v60 = vpop.permute.xlu0 %1728  ;;  %v2127_v23 = vsub.f32 %v2100_v27, %v2124_v55 }
 0x258   : > { %v1734_v32 = vadd.f32 %v1729_v60, %v1658_v1 }
 0x259   : > { %v2130_v0 = vmul.f32 %v2127_v23, %v2127_v23 }
 0x25b   : > { %v1737_v33 = vpop.permute.xlu0 %1736  ;;  %v2133_v35 = vadd.f32 0.1, %v2130_v0 }
 0x25c   : > { %v1731_v31 = vpop.permute.xlu1 %1730  ;;  %v1742_v48 = vadd.f32 %v1737_v33, %v1734_v32 }
 0x25d   : > { %v1735_v28 = vadd.f32 %v1731_v31, %v1659_v56  ;;  %2989 = vrcp.f32 %v2133_v35 }
 0x260   : > { %v1739_v37 = vpop.permute.xlu1 %1738 }
 0x261   : > { %v1743_v26 = vadd.f32 %v1739_v37, %v1735_v28 }
 0x264   : > { %v1828_v16 = vpop.permute.xlu0 %1827 }
 0x265   : > { %v1833_v40 = vadd.f32 %v1828_v16, %v1742_v48 }
 0x267   : > { %v2990_v24 = vpop.eup %2989 }
 0x268   : > { %v1836_v41 = vpop.permute.xlu0 %1835  ;;  %v2143_v47 = vrot.slane %v2990_v24, 3 }
 0x269   : > { %v1830_v51 = vpop.permute.xlu1 %1829  ;;  %v1841_v57 = vadd.f32 %v1836_v41, %v1833_v40 }
 0x26a   : > { %v1834_v11 = vadd.f32 %v1830_v51, %v1743_v26  ;;  %v2144_v13 = vsel %vm1821_vm3, %v2141_v21, %v2143_v47 }
 0x26d   : > { %v1838_v20 = vpop.permute.xlu1 %1837 }
 0x26e   : > { %v1912_v10 = vpop.permute.xlu0 %1911  ;;  %v1842_v43 = vadd.f32 %v1838_v20, %v1834_v11 }
 0x26f   : > { %v1917_v19 = vadd.f32 %v1912_v10, %v1841_v57 }
 0x272   : > { %v1920_v44 = vpop.permute.xlu0 %1919 }
 0x273   : > { %v1914_v49 = vpop.permute.xlu1 %1913  ;;  %v1925_v22 = vadd.f32 %v1920_v44, %v1917_v19 }
 0x274   : > { %v1918_v5 = vadd.f32 %v1914_v49, %v1842_v43 }
 0x277   : > { %v1922_v53 = vpop.permute.xlu1 %1921 }
 0x278   : > { %v1926_v6 = vadd.f32 %v1922_v53, %v1918_v5 }
 0x27b   : > { %v1996_v62 = vpop.permute.xlu0 %1995 }
 0x27c   : > { %v2001_v29 = vadd.f32 %v1996_v62, %v1925_v22 }
 0x27f   : > { %v1998_v8 = vpop.permute.xlu1 %1997  ;;  %v2004_v14 = vpop.permute.xlu0 %2003 }
 0x280   : > { %v2009_v3 = vadd.f32 %v2004_v14, %v2001_v29  ;;  %v2002_v39 = vadd.f32 %v1998_v8, %v1926_v6 }
 0x283   : > { %v2006_v34 = vpop.permute.xlu1 %2005  ;;  %v2062_v61 = vpop.permute.xlu0 %2061 }
 0x284   : > { %v2067_v46 = vadd.f32 %v2062_v61, %v2009_v3  ;;  %v2010_v25 = vadd.f32 %v2006_v34, %v2002_v39 }
 0x287   : > { %v2064_v54 = vpop.permute.xlu1 %2063  ;;  %v2070_v4 = vpop.permute.xlu0 %2069 }
 0x288   : > { %v2075_v36 = vadd.f32 %v2070_v4, %v2067_v46  ;;  %v2068_v9 = vadd.f32 %v2064_v54, %v2010_v25 }
 0x28a   : > { %v2147_v50 = vadd.f32 %v4767_v42, %v2075_v36 }
 0x28b   : > { %v2072_v7 = vpop.permute.xlu1 %2071  ;;  %v2150_v2 = vpop.permute.xlu0 %2149 }
 0x28c   : > { %v2076_v59 = vadd.f32 %v2072_v7, %v2068_v9  ;;  %v2155_v33 = vadd.f32 %v2150_v2, %v2147_v50 }
 0x28e   : > { %v2148_v52 = vadd.f32 %v2144_v13, %v2076_v59 }
 0x28f   : > { %v2152_v38 = vpop.permute.xlu1 %2151  ;;  %v2226_v17 = vpop.permute.xlu0 %2225 }
 0x290   : > { %v2231_v37 = vadd.f32 %v2226_v17, %v2155_v33  ;;  %v2156_v15 = vadd.f32 %v2152_v38, %v2148_v52 }
 0x293   : > { %v2228_v60 = vpop.permute.xlu1 %2227  ;;  %v2234_v31 = vpop.permute.xlu0 %2233 }
 0x294   : > { %v2239_v51 = vadd.f32 %v2234_v31, %v2231_v37  ;;  %v2232_v27 = vadd.f32 %v2228_v60, %v2156_v15 }
 0x297   : > { %v2236_v16 = vpop.permute.xlu1 %2235 }
 0x298   : > { %v2240_v23 = vadd.f32 %v2236_v16, %v2232_v27 }
 0x29b   : > { %v2310_v63 = vpop.permute.xlu0 %2309 }
 0x29c   : > { %v2315_v42 = vadd.f32 %v2310_v63, %v2239_v51 }
 0x29f   : > { %v2312_v55 = vpop.permute.xlu1 %2311  ;;  %v2318_v41 = vpop.permute.xlu0 %2317 }
 0x2a0   : > { %v2323_v58 = vadd.f32 %v2318_v41, %v2315_v42  ;;  %v2316_v30 = vadd.f32 %v2312_v55, %v2240_v23 }
 0x2a2   : > { %v2325_v21 = vmul.f32 0.0020408162, %v2323_v58 }
 0x2a3   : > { %v2320_v20 = vpop.permute.xlu1 %2319 }
 0x2a4   : > { %v2327_v10 = vsub.f32 0.97959185, %v2325_v21  ;;  %v2324_v45 = vadd.f32 %v2320_v20, %v2316_v30 }
 0x2a6   : > { %v2326_v0 = vmul.f32 0.0020408162, %v2324_v45  ;;  %2331 = vrot.lane.b32.xlu0 %v2327_v10, %s3098_s9 }
 0x2a8   : > { %v2328_v12 = vsub.f32 0.97959185, %v2326_v0 }
 0x2aa   : > { %2333 = vrot.lane.b32.xlu1 %v2328_v12, %s3098_s9 }
 0x318   : > { %v2332_v1 = vpop.permute.xlu0 %2331 }
 0x319   : > { %2338 = vst.msk [vmem:[%s331_s12] sm:$0xff] %vm2337_vm4, %v2332_v1 }
 0x31c   : > { %v2334_v49 = vpop.permute.xlu1 %2333 }
 0x31d   : > { %2339 = vst.msk [vmem:[%s331_s12 + $0x8] sm:$0xff] %vm2337_vm4, %v2334_v49 }
 0x31e   : > { %3024 = shalt.err (!%p3021_p5)
}
 0x31f   : > { %s3025_s6 = scalar_lea.hbm %s4815_s24, 256  ;;  %s3029_s9 = scalar_lea.hbm %s4867_s4, 512 }
 0x320   : > { %p3026_p6 = scmp.ne.s32.totalorder %s4815_s24, %s3025_s6  ;;  %p3030_p10 = scmp.lt.u32.totalorder %s4815_s24, %s4867_s4 }
 0x321   : > { %p3031_p11 = scmp.lt.u32.totalorder %s3029_s9, %s3025_s6  ;;  %p3033_p13 = scmp.lt.u32.totalorder %s3025_s6, %s4815_s24 }
 0x322   : > { %p3027_p7 = pnand %p3026_p6, %p3167_p4 }
 0x323   : > { %p3032_p12 = por %p3031_p11, %p3030_p10 }
 0x324   : > { %p3028_p9 = pneg %p3027_p7 }
 0x325   : > { %p3034_p0 = por %p3033_p13, %p3032_p12 }
 0x327   : > { %p3035_p1 = pnand %p3034_p0, %p3028_p9 }
 0x329   : > { %3038 = shalt.err (!%p3035_p1)
}
 0x32a   : > { %s3100_s12 = smov 128   ;;  %s3101_s14 = smov 8  }
 0x32b   : > { %2511 = dma.vmem_to_hbm [thread:$0]  (%p3167_p4), %s4810_s13, 256, %s4815_s24, %s4817_s26, %s3100_s12, %s3100_s12, %s3101_s14  }
 0x32c PF: > { %p2518_p2 = scmp.ge.s32.totalorder %s3089_s20, 2  ;;  %s2371_s21 = sand.u32 1, %s3069_s15  }
 0x32d   : > { %s2372_s22 = scalar_lea.sflag [#allocation5], %s2371_s21 }
 0x32e   : > { %p2514_p3 = pnand %p2518_p2, %p3174_p8 }
 0x330   : > { %3064 = dma.done.wait (!%p2514_p3), %s2372_s22, 256  }
 0x331   : > { %3066 = vsyncadd (!%p2514_p3), %s2372_s22, 4294967040  ;;  %s17_s20 = sadd.s32 1, %s3089_s20   ;;  %s4940_s15 = smov %s3073_s16 }
 0x332   : > { %p14_p5 = scmp.ge.s32.totalorder %s17_s20, 4   ;;  %s4941_s16 = smov %s3077_s17 }
 0x333   : > { %s4942_s17 = smov %s3180_s28  ;;  %s4943_s18 = smov %s3085_s19 }
 0x334   : > { %s4944_s19 = smov %s4946_s23  ;;  %16 = sbr.rel (!%p14_p5) target bundleno = 4 (0x4), region = 80 }
 0x33b   :  { %2377 = vsyncpa [#allocation5], 1 }
 0x33c   :  { %2379 = vsyncpa [#allocation5 + $0x1], 1 }

</bundles_post_ra>
